<compile_context>
chip_gen: v5e
topology: v5e:2x2
jax: 0.10.0
libtpu: 0.0.40
codegen_flags: <defaults>
</compile_context>

<pallas_src>
import functools

import jax
import jax.numpy as jnp
from jax import lax
from jax.experimental import pallas as pl
from jax.experimental.pallas import tpu as pltpu  # noqa: F401  (kept for TPU-specific tuning hooks)


# ------------------------------------------------------------------ in-kernel helpers

_SQRT1_2 = 0.7071067811865476


def _erf(x):
    # Abramowitz & Stegun 7.1.26 rational approximation of erf (|abs err| < 1.5e-7, i.e.
    # float32-accurate).  Built only from abs/exp/mul/add/where so it lowers cleanly on the
    # TPU VPU/EUP inside a Pallas kernel (exact lax.erf lowering is not relied upon).
    a1, a2, a3, a4, a5 = (0.254829592, -0.284496736, 1.421413741, -1.453152027, 1.061405429)
    p = 0.3275911
    sgn = jnp.where(x >= 0, 1.0, -1.0)
    ax = jnp.abs(x)
    t = 1.0 / (1.0 + p * ax)
    poly = t * (a1 + t * (a2 + t * (a3 + t * (a4 + t * a5))))
    return sgn * (1.0 - poly * jnp.exp(-ax * ax))


def _gelu_exact(x):
    # exact-erf GELU (PyTorch default, approximate='none')
    return 0.5 * x * (1.0 + _erf(x * _SQRT1_2))


def _lstm_cell(x_t, h, c, wih, whh, bias, hidden):
    # One LSTM step; gate order matches PyTorch (i, f, g, o).  The 4H gate tensor (128 lanes for
    # H=32) is lane-dense; the 32-lane gate slices are minor VPU/XLU work at these sizes.
    gates = (jnp.dot(x_t, wih, preferred_element_type=jnp.float32)
             + jnp.dot(h, whh, preferred_element_type=jnp.float32) + bias)       # [B, 4H]
    i = jax.nn.sigmoid(gates[:, 0 * hidden:1 * hidden])
    f = jax.nn.sigmoid(gates[:, 1 * hidden:2 * hidden])
    g = jnp.tanh(gates[:, 2 * hidden:3 * hidden])
    o = jax.nn.sigmoid(gates[:, 3 * hidden:4 * hidden])
    c_new = f * c + i * g
    h_new = o * jnp.tanh(c_new)
    return h_new, c_new


# ------------------------------------------------------------------ kernel 1: encoders + LSTM0

def _encode_lstm_kernel(xc_ref, nu_ref, de_ref, wn_ref, wd_ref,
                        wih_ref, whh_ref, b_ref, o_ref, *, hidden, seq_len):
    # time-major layout: xc [L,B,C], nu [L,B,10], output [L,B,H]
    dp = jnp.dot(de_ref[...], wd_ref[...], preferred_element_type=jnp.float32)    # [B, C], once
    wn = wn_ref[...]
    wih, whh, bias = wih_ref[...], whh_ref[...], b_ref[...]
    bsz = xc_ref.shape[1]
    h = jnp.zeros((bsz, hidden), jnp.float32)
    c = jnp.zeros((bsz, hidden), jnp.float32)
    # seq_len is small & static -> straight-line unrolled time loop (no grid steps / per-step
    # DMAs; the single HBM writeback of o_ref happens once when the kernel finishes).
    for t in range(seq_len):
        x_t = (xc_ref[t]
               + jnp.dot(nu_ref[t], wn, preferred_element_type=jnp.float32)
               + dp)                                                              # [B, C]
        h, c = _lstm_cell(x_t, h, c, wih, whh, bias, hidden)
        o_ref[t] = h


def pallas_encode_lstm(x_cate_lbc, nume_lbn, demo, w_nume, w_demo, wih, whh, bias, hidden):
    L, B, _ = x_cate_lbc.shape
    return pl.pallas_call(
        functools.partial(_encode_lstm_kernel, hidden=hidden, seq_len=L),
        out_shape=jax.ShapeDtypeStruct((L, B, hidden), jnp.float32),
    )(x_cate_lbc, nume_lbn, demo, w_nume, w_demo, wih, whh, bias)


# ------------------------------------------------------------------ kernel 2: plain LSTM layer

def _lstm_kernel(x_ref, wih_ref, whh_ref, b_ref, o_ref, *, hidden, seq_len):
    wih, whh, bias = wih_ref[...], whh_ref[...], b_ref[...]
    bsz = x_ref.shape[1]
    h = jnp.zeros((bsz, hidden), jnp.float32)
    c = jnp.zeros((bsz, hidden), jnp.float32)
    for t in range(seq_len):
        h, c = _lstm_cell(x_ref[t], h, c, wih, whh, bias, hidden)
        o_ref[t] = h


def pallas_lstm(x_lbc, wih, whh, bias, hidden):
    L, B, _ = x_lbc.shape
    return pl.pallas_call(
        functools.partial(_lstm_kernel, hidden=hidden, seq_len=L),
        out_shape=jax.ShapeDtypeStruct((L, B, hidden), jnp.float32),
    )(x_lbc, wih, whh, bias)


# ------------------------------------------------------------------ kernel 3: fused encoder layer

def _encoder_layer_kernel(src_ref, wqkv_ref, wo_ref, bn1s_ref, bn1b_ref,
                          w1_ref, b1_ref, w2_ref, b2_ref, bn2s_ref, bn2b_ref,
                          o_ref, *, bsz, seq_len, n_heads, d_k, d_v, scale):
    src = src_ref[...]                                                            # [B*L, D]
    # --- multi-head self-attention: one fused QKV matmul; (batch, head) pairs unrolled ---
    qkv = jnp.dot(src, wqkv_ref[...], preferred_element_type=jnp.float32)         # [B*L, nh*(2dk+dv)]
    k_off = n_heads * d_k
    v_off = 2 * n_heads * d_k
    ctx_rows = []
    for b in range(bsz):
        r0 = b * seq_len
        head_ctx = []
        for hh in range(n_heads):
            q = qkv[r0:r0 + seq_len, hh * d_k:(hh + 1) * d_k]                     # [L, d_k]
            k = qkv[r0:r0 + seq_len, k_off + hh * d_k:k_off + (hh + 1) * d_k]     # [L, d_k]
            v = qkv[r0:r0 + seq_len, v_off + hh * d_v:v_off + (hh + 1) * d_v]     # [L, d_v]
            # contract d_k directly (no explicit K transpose)
            s = lax.dot_general(q, k, (((1,), (1,)), ((), ())),
                                preferred_element_type=jnp.float32) * scale       # [L, L]
            s = s - jnp.max(s, axis=-1, keepdims=True)
            p = jnp.exp(s)
            p = p * pl.reciprocal(jnp.sum(p, axis=-1, keepdims=True), approx=True)
            head_ctx.append(jnp.dot(p, v, preferred_element_type=jnp.float32))    # [L, d_v]
        ctx_rows.append(jnp.concatenate(head_ctx, axis=-1))                       # [L, nh*d_v]
    ctx = jnp.concatenate(ctx_rows, axis=0)                                       # [B*L, nh*d_v]
    src2 = jnp.dot(ctx, wo_ref[...], preferred_element_type=jnp.float32)          # [B*L, D]
    # --- Add & BatchNorm1d (eval mode, folded to per-channel scale/shift) ---
    s1 = (src + src2) * bn1s_ref[...] + bn1b_ref[...]
    # --- position-wise feed-forward with exact-erf GELU ---
    ff = _gelu_exact(jnp.dot(s1, w1_ref[...], preferred_element_type=jnp.float32) + b1_ref[...])
    ff = jnp.dot(ff, w2_ref[...], preferred_element_type=jnp.float32) + b2_ref[...]
    o_ref[...] = (s1 + ff) * bn2s_ref[...] + bn2b_ref[...]


def _fold_bn(bn, eps=1e-5):
    scale = bn["gamma"] * jax.lax.rsqrt(bn["var"] + eps)
    shift = bn["beta"] - bn["mean"] * scale
    return scale.reshape(1, -1), shift.reshape(1, -1)


def pallas_encoder_layer(src2d, lp, *, bsz, seq_len, n_heads, d_k, d_v):
    m, d_model = src2d.shape
    wqkv = jnp.concatenate([lp["Wq"], lp["Wk"], lp["Wv"]], axis=1)                # [D, nh*(2dk+dv)]
    bn1s, bn1b = _fold_bn(lp["bn1"])
    bn2s, bn2b = _fold_bn(lp["bn2"])
    kernel = functools.partial(_encoder_layer_kernel, bsz=bsz, seq_len=seq_len,
                               n_heads=n_heads, d_k=d_k, d_v=d_v, scale=1.0 / d_k ** 0.5)
    return pl.pallas_call(
        kernel,
        out_shape=jax.ShapeDtypeStruct((m, d_model), jnp.float32),
    )(src2d, wqkv, lp["Wo"], bn1s, bn1b,
      lp["W1"], lp["b1"].reshape(1, -1), lp["W2"], lp["b2"].reshape(1, -1), bn2s, bn2b)


# ------------------------------------------------------------------ kernel 4: fused head

def _head_kernel(src_ref, wh_ref, bh_ref, o_ref, *, seq_len):
    # src [L, B, D];  wh [L, D, c_out] with wh[l, d, :] == w_head[d*L + l, :]
    # out[b] = sum_l gelu(src[l, b, :]) @ wh[l]  (== GELU -> transpose -> flatten -> Linear)
    acc = jnp.zeros(o_ref.shape, jnp.float32)
    for l in range(seq_len):
        g = _gelu_exact(src_ref[l])                                               # [B, D]
        acc = acc + jnp.dot(g, wh_ref[l], preferred_element_type=jnp.float32)     # [B, c_out]
    o_ref[...] = acc + bh_ref[...]


def pallas_head(src_lbd, wh_ldo, b_head_row):
    L, B, _ = src_lbd.shape
    c_out = wh_ldo.shape[-1]
    return pl.pallas_call(
        functools.partial(_head_kernel, seq_len=L),
        out_shape=jax.ShapeDtypeStruct((B, c_out), jnp.float32),
    )(src_lbd, wh_ldo, b_head_row)


# ------------------------------------------------------------------ forward pass

def lstm_attention_forward(params, cate, nume, demo, cfg):
    B = nume.shape[0]
    L, C, H = cfg["seq_len"], cfg["c_in"], cfg["hidden_size"]
    # TODO(synk): bidirectional LSTM (reverse pass) not implemented; asserted off.
    assert not cfg["bidirectional"]
    d_model = H
    n_heads, d_k, d_v = cfg["n_heads"], cfg["d_k"], cfg["d_v"]

    # ---- categorical features ------------------------------------------------
    # TODO(synk): exact CateEncoder definition is not in the reference source; approximated as a
    # sum of per-feature embedding lookups producing the same [B, c_in, L]-shaped feature map.
    x_cate = jnp.zeros((B, L, C), jnp.float32)
    for f in range(cfg["n_cate"]):
        x_cate = x_cate + params["cate_emb"][f][cate[:, f, :]]   # gather stays in XLA glue

    # layout conversion to time-major for the LSTM kernel (tiny XLA transposes)
    x_cate_lbc = jnp.transpose(x_cate, (1, 0, 2))                 # [L, B, C]
    nume_lbn = jnp.transpose(nume, (2, 0, 1))                     # [L, B, 10]

    # ---- fused input encoders + first LSTM layer (1 pallas_call, no grid) ----
    lp0 = params["lstm"][0]
    src_lbh = pallas_encode_lstm(x_cate_lbc, nume_lbn, demo,
                                 params["w_nume"], params["w_demo"],
                                 lp0["wih_t"], lp0["whh_t"], lp0["b"], H)         # [L, B, H]
    for lp in params["lstm"][1:]:                                 # rnn_dropout = identity (eval)
        src_lbh = pallas_lstm(src_lbh, lp["wih_t"], lp["whh_t"], lp["b"], H)

    # ---- fused TST encoder layers (1 pallas_call per layer) ----
    src2d = jnp.transpose(src_lbh, (1, 0, 2)).reshape(B * L, d_model)             # b-major rows
    for lp in params["encoder"]:
        src2d = pallas_encoder_layer(src2d, lp, bsz=B, seq_len=L,
                                     n_heads=n_heads, d_k=d_k, d_v=d_v)

    # ---- head: GELU -> Flatten(d_model-major) -> Linear, fused into one kernel ----
    wh = params["w_head"].reshape(d_model, L, cfg["c_out"]).transpose(1, 0, 2)    # [L, D, c_out]
    src_lbd = jnp.transpose(src2d.reshape(B, L, d_model), (1, 0, 2))              # [L, B, D]
    return pallas_head(src_lbd, wh, params["b_head"].reshape(1, -1))              # [B, c_out]


# ------------------------------------------------------------------ deterministic init

def _bn_params(d):
    return dict(gamma=jnp.ones((d,), jnp.float32), beta=jnp.zeros((d,), jnp.float32),
                mean=jnp.zeros((d,), jnp.float32), var=jnp.ones((d,), jnp.float32))


def init_params(key, cfg):
    C, H, L = cfg["c_in"], cfg["hidden_size"], cfg["seq_len"]
    n_heads, d_k, d_v, d_ff = cfg["n_heads"], cfg["d_k"], cfg["d_v"], cfg["d_ff"]
    d_model = H * (2 if cfg["bidirectional"] else 1)
    ks = iter(jax.random.split(key, 128))

    def nrm(shape, std):
        return (std * jax.random.normal(next(ks), shape)).astype(jnp.float32)

    params = {
        "cate_emb": nrm((cfg["n_cate"], cfg["cate_vocab"], C), 0.1),
        "w_nume": nrm((cfg["n_nume"], C), (2.0 / C) ** 0.5),      # kaiming_normal fan_out / relu
        "w_demo": nrm((cfg["n_demo"], C), 1.0 / cfg["n_demo"] ** 0.5),
    }

    lstm_layers, in_dim = [], C
    for _ in range(cfg["rnn_layers"]):
        std = 1.0 / H ** 0.5
        lstm_layers.append(dict(wih_t=nrm((in_dim, 4 * H), std),
                                whh_t=nrm((H, 4 * H), std),
                                b=nrm((1, 4 * H), std)))          # b_ih + b_hh combined
        in_dim = H
    params["lstm"] = lstm_layers

    enc = []
    for _ in range(cfg["encoder_layers"]):
        std = 1.0 / d_model ** 0.5
        enc.append(dict(
            Wq=nrm((d_model, n_heads * d_k), std),
            Wk=nrm((d_model, n_heads * d_k), std),
            Wv=nrm((d_model, n_heads * d_v), std),
            Wo=nrm((n_heads * d_v, d_model), 1.0 / (n_heads * d_v) ** 0.5),
            bn1=_bn_params(d_model),
            W1=nrm((d_model, d_ff), std), b1=nrm((d_ff,), std),
            W2=nrm((d_ff, d_model), 1.0 / d_ff ** 0.5), b2=nrm((d_model,), 1.0 / d_ff ** 0.5),
            bn2=_bn_params(d_model),
        ))
    params["encoder"] = enc

    params["w_head"] = nrm((L * d_model, cfg["c_out"]), 1.0 / (L * d_model) ** 0.5)
    params["b_head"] = nrm((cfg["c_out"],), 0.01)
    return params


# ------------------------------------------------------------------ main

if __name__ == "__main__":
    cfg = dict(c_in=16, c_out=3, seq_len=8, hidden_size=32, rnn_layers=1, bidirectional=False,
               n_heads=4, d_k=8, d_v=8, d_ff=64, encoder_layers=2,
               n_cate=3, cate_vocab=12, n_nume=10, n_demo=4)

    key = jax.random.PRNGKey(0)
    pkey, k1, k2, k3 = jax.random.split(key, 4)
    params = init_params(pkey, cfg)

    B = 2
    cate = jax.random.randint(k1, (B, cfg["n_cate"], cfg["seq_len"]), 0, cfg["cate_vocab"])
    nume = jax.random.normal(k2, (B, cfg["n_nume"], cfg["seq_len"]), jnp.float32)
    demo = jax.random.normal(k3, (B, cfg["n_demo"]), jnp.float32)

    fwd = jax.jit(functools.partial(lstm_attention_forward, cfg=cfg))
    out = fwd(params, cate, nume, demo)
    jax.block_until_ready(out)
    assert out.shape == (B, cfg["c_out"]), out.shape
    print("KERNEL_OK")
</pallas_src>

<mosaic_0001>
module attributes {stable_mosaic.version = 11 : i64} {
  func.func @_encode_lstm_kernel(%arg0: memref<8x2x16xf32, #tpu.memory_space<vmem>>, %arg1: memref<8x2x10xf32, #tpu.memory_space<vmem>>, %arg2: memref<2x4xf32, #tpu.memory_space<vmem>>, %arg3: memref<10x16xf32, #tpu.memory_space<vmem>>, %arg4: memref<4x16xf32, #tpu.memory_space<vmem>>, %arg5: memref<16x128xf32, #tpu.memory_space<vmem>>, %arg6: memref<32x128xf32, #tpu.memory_space<vmem>>, %arg7: memref<1x128xf32, #tpu.memory_space<vmem>>, %arg8: memref<8x2x32xf32, #tpu.memory_space<vmem>>) attributes {dimension_semantics = [], scalar_prefetch = 0 : i64, scratch_operands = 0 : i64, tpu.core_type = #tpu.core_type<tc>} {
    %c0 = arith.constant 0 : index
    %c0_0 = arith.constant 0 : index
    %0 = vector.load %arg2[%c0, %c0_0] : memref<2x4xf32, #tpu.memory_space<vmem>>, vector<2x4xf32>
    %c0_1 = arith.constant 0 : index
    %c0_2 = arith.constant 0 : index
    %1 = vector.load %arg4[%c0_1, %c0_2] : memref<4x16xf32, #tpu.memory_space<vmem>>, vector<4x16xf32>
    %cst = arith.constant dense<0.000000e+00> : vector<2x16xf32>
    %2 = tpu.matmul %0, %1, %cst {dimension_numbers = #tpu.dot_dimension_numbers<[1], [0], [0], [1], [0, 0, 1, 1], [], []>} : vector<2x4xf32>, vector<4x16xf32>, vector<2x16xf32> -> vector<2x16xf32>
    %c0_3 = arith.constant 0 : index
    %c0_4 = arith.constant 0 : index
    %3 = vector.load %arg3[%c0_3, %c0_4] : memref<10x16xf32, #tpu.memory_space<vmem>>, vector<10x16xf32>
    %c0_5 = arith.constant 0 : index
    %c0_6 = arith.constant 0 : index
    %4 = vector.load %arg5[%c0_5, %c0_6] : memref<16x128xf32, #tpu.memory_space<vmem>>, vector<16x128xf32>
    %c0_7 = arith.constant 0 : index
    %c0_8 = arith.constant 0 : index
    %5 = vector.load %arg6[%c0_7, %c0_8] : memref<32x128xf32, #tpu.memory_space<vmem>>, vector<32x128xf32>
    %c0_9 = arith.constant 0 : index
    %c0_10 = arith.constant 0 : index
    %6 = vector.load %arg7[%c0_9, %c0_10] : memref<1x128xf32, #tpu.memory_space<vmem>>, vector<1x128xf32>
    %cst_11 = arith.constant 0.000000e+00 : f32
    %7 = vector.broadcast %cst_11 : f32 to vector<2x32xf32>
    %cst_12 = arith.constant 0.000000e+00 : f32
    %8 = vector.broadcast %cst_12 : f32 to vector<2x32xf32>
    %c0_13 = arith.constant 0 : index
    %c0_14 = arith.constant 0 : index
    %c0_15 = arith.constant 0 : index
    %9 = vector.load %arg0[%c0_13, %c0_14, %c0_15] : memref<8x2x16xf32, #tpu.memory_space<vmem>>, vector<1x2x16xf32>
    %10 = vector.shape_cast %9 : vector<1x2x16xf32> to vector<2x16xf32>
    %c0_16 = arith.constant 0 : index
    %c0_17 = arith.constant 0 : index
    %c0_18 = arith.constant 0 : index
    %11 = vector.load %arg1[%c0_16, %c0_17, %c0_18] : memref<8x2x10xf32, #tpu.memory_space<vmem>>, vector<1x2x10xf32>
    %12 = vector.shape_cast %11 : vector<1x2x10xf32> to vector<2x10xf32>
    %cst_19 = arith.constant dense<0.000000e+00> : vector<2x16xf32>
    %13 = tpu.matmul %12, %3, %cst_19 {dimension_numbers = #tpu.dot_dimension_numbers<[1], [0], [0], [1], [0, 0, 1, 1], [], []>} : vector<2x10xf32>, vector<10x16xf32>, vector<2x16xf32> -> vector<2x16xf32>
    %14 = arith.addf %10, %13 : vector<2x16xf32>
    %15 = arith.addf %14, %2 : vector<2x16xf32>
    %cst_20 = arith.constant dense<0.000000e+00> : vector<2x128xf32>
    %16 = tpu.matmul %15, %4, %cst_20 {dimension_numbers = #tpu.dot_dimension_numbers<[1], [0], [0], [1], [0, 0, 1, 1], [], []>} : vector<2x16xf32>, vector<16x128xf32>, vector<2x128xf32> -> vector<2x128xf32>
    %cst_21 = arith.constant dense<0.000000e+00> : vector<2x128xf32>
    %17 = tpu.matmul %7, %5, %cst_21 {dimension_numbers = #tpu.dot_dimension_numbers<[1], [0], [0], [1], [0, 0, 1, 1], [], []>} : vector<2x32xf32>, vector<32x128xf32>, vector<2x128xf32> -> vector<2x128xf32>
    %18 = arith.addf %16, %17 : vector<2x128xf32>
    %19 = vector.broadcast %6 : vector<1x128xf32> to vector<2x128xf32>
    %20 = arith.addf %18, %19 : vector<2x128xf32>
    %21 = vector.extract_strided_slice %20 {offsets = [0, 0], sizes = [2, 32], strides = [1, 1]} : vector<2x128xf32> to vector<2x32xf32>
    %22 = arith.negf %21 : vector<2x32xf32>
    %23 = math.exp %22 : vector<2x32xf32>
    %cst_22 = arith.constant 1.000000e+00 : f32
    %24 = vector.broadcast %cst_22 : f32 to vector<2x32xf32>
    %25 = arith.addf %24, %23 : vector<2x32xf32>
    %26 = arith.divf %24, %25 : vector<2x32xf32>
    %27 = vector.extract_strided_slice %20 {offsets = [0, 32], sizes = [2, 32], strides = [1, 1]} : vector<2x128xf32> to vector<2x32xf32>
    %28 = arith.negf %27 : vector<2x32xf32>
    %29 = math.exp %28 : vector<2x32xf32>
    %cst_23 = arith.constant 1.000000e+00 : f32
    %30 = vector.broadcast %cst_23 : f32 to vector<2x32xf32>
    %31 = arith.addf %30, %29 : vector<2x32xf32>
    %32 = arith.divf %30, %31 : vector<2x32xf32>
    %33 = vector.extract_strided_slice %20 {offsets = [0, 64], sizes = [2, 32], strides = [1, 1]} : vector<2x128xf32> to vector<2x32xf32>
    %34 = math.tanh %33 : vector<2x32xf32>
    %35 = vector.extract_strided_slice %20 {offsets = [0, 96], sizes = [2, 32], strides = [1, 1]} : vector<2x128xf32> to vector<2x32xf32>
    %36 = arith.negf %35 : vector<2x32xf32>
    %37 = math.exp %36 : vector<2x32xf32>
    %cst_24 = arith.constant 1.000000e+00 : f32
    %38 = vector.broadcast %cst_24 : f32 to vector<2x32xf32>
    %39 = arith.addf %38, %37 : vector<2x32xf32>
    %40 = arith.divf %38, %39 : vector<2x32xf32>
    %41 = arith.mulf %32, %8 : vector<2x32xf32>
    %42 = arith.mulf %26, %34 : vector<2x32xf32>
    %43 = arith.addf %41, %42 : vector<2x32xf32>
    %44 = math.tanh %43 : vector<2x32xf32>
    %45 = arith.mulf %40, %44 : vector<2x32xf32>
    %c0_25 = arith.constant 0 : index
    %c0_26 = arith.constant 0 : index
    %c0_27 = arith.constant 0 : index
    %46 = vector.load %arg8[%c0_25, %c0_26, %c0_27] : memref<8x2x32xf32, #tpu.memory_space<vmem>>, vector<1x2x32xf32>
    %47 = vector.shape_cast %46 : vector<1x2x32xf32> to vector<2x32xf32>
    %48 = vector.shape_cast %45 : vector<2x32xf32> to vector<1x2x32xf32>
    tpu.vector_store %arg8[%c0_25, %c0_26, %c0_27], %48 {strides = array<i32>} : memref<8x2x32xf32, #tpu.memory_space<vmem>>, vector<1x2x32xf32>,
    %c1 = arith.constant 1 : index
    %c0_28 = arith.constant 0 : index
    %c0_29 = arith.constant 0 : index
    %49 = vector.load %arg0[%c1, %c0_28, %c0_29] : memref<8x2x16xf32, #tpu.memory_space<vmem>>, vector<1x2x16xf32>
    %50 = vector.shape_cast %49 : vector<1x2x16xf32> to vector<2x16xf32>
    %c1_30 = arith.constant 1 : index
    %c0_31 = arith.constant 0 : index
    %c0_32 = arith.constant 0 : index
    %51 = vector.load %arg1[%c1_30, %c0_31, %c0_32] : memref<8x2x10xf32, #tpu.memory_space<vmem>>, vector<1x2x10xf32>
    %52 = vector.shape_cast %51 : vector<1x2x10xf32> to vector<2x10xf32>
    %cst_33 = arith.constant dense<0.000000e+00> : vector<2x16xf32>
    %53 = tpu.matmul %52, %3, %cst_33 {dimension_numbers = #tpu.dot_dimension_numbers<[1], [0], [0], [1], [0, 0, 1, 1], [], []>} : vector<2x10xf32>, vector<10x16xf32>, vector<2x16xf32> -> vector<2x16xf32>
    %54 = arith.addf %50, %53 : vector<2x16xf32>
    %55 = arith.addf %54, %2 : vector<2x16xf32>
    %cst_34 = arith.constant dense<0.000000e+00> : vector<2x128xf32>
    %56 = tpu.matmul %55, %4, %cst_34 {dimension_numbers = #tpu.dot_dimension_numbers<[1], [0], [0], [1], [0, 0, 1, 1], [], []>} : vector<2x16xf32>, vector<16x128xf32>, vector<2x128xf32> -> vector<2x128xf32>
    %cst_35 = arith.constant dense<0.000000e+00> : vector<2x128xf32>
    %57 = tpu.matmul %45, %5, %cst_35 {dimension_numbers = #tpu.dot_dimension_numbers<[1], [0], [0], [1], [0, 0, 1, 1], [], []>} : vector<2x32xf32>, vector<32x128xf32>, vector<2x128xf32> -> vector<2x128xf32>
    %58 = arith.addf %56, %57 : vector<2x128xf32>
    %59 = vector.broadcast %6 : vector<1x128xf32> to vector<2x128xf32>
    %60 = arith.addf %58, %59 : vector<2x128xf32>
    %61 = vector.extract_strided_slice %60 {offsets = [0, 0], sizes = [2, 32], strides = [1, 1]} : vector<2x128xf32> to vector<2x32xf32>
    %62 = arith.negf %61 : vector<2x32xf32>
    %63 = math.exp %62 : vector<2x32xf32>
    %cst_36 = arith.constant 1.000000e+00 : f32
    %64 = vector.broadcast %cst_36 : f32 to vector<2x32xf32>
    %65 = arith.addf %64, %63 : vector<2x32xf32>
    %66 = arith.divf %64, %65 : vector<2x32xf32>
    %67 = vector.extract_strided_slice %60 {offsets = [0, 32], sizes = [2, 32], strides = [1, 1]} : vector<2x128xf32> to vector<2x32xf32>
    %68 = arith.negf %67 : vector<2x32xf32>
    %69 = math.exp %68 : vector<2x32xf32>
    %cst_37 = arith.constant 1.000000e+00 : f32
    %70 = vector.broadcast %cst_37 : f32 to vector<2x32xf32>
    %71 = arith.addf %70, %69 : vector<2x32xf32>
    %72 = arith.divf %70, %71 : vector<2x32xf32>
    %73 = vector.extract_strided_slice %60 {offsets = [0, 64], sizes = [2, 32], strides = [1, 1]} : vector<2x128xf32> to vector<2x32xf32>
    %74 = math.tanh %73 : vector<2x32xf32>
    %75 = vector.extract_strided_slice %60 {offsets = [0, 96], sizes = [2, 32], strides = [1, 1]} : vector<2x128xf32> to vector<2x32xf32>
    %76 = arith.negf %75 : vector<2x32xf32>
    %77 = math.exp %76 : vector<2x32xf32>
    %cst_38 = arith.constant 1.000000e+00 : f32
    %78 = vector.broadcast %cst_38 : f32 to vector<2x32xf32>
    %79 = arith.addf %78, %77 : vector<2x32xf32>
    %80 = arith.divf %78, %79 : vector<2x32xf32>
    %81 = arith.mulf %72, %43 : vector<2x32xf32>
    %82 = arith.mulf %66, %74 : vector<2x32xf32>
    %83 = arith.addf %81, %82 : vector<2x32xf32>
    %84 = math.tanh %83 : vector<2x32xf32>
    %85 = arith.mulf %80, %84 : vector<2x32xf32>
    %c1_39 = arith.constant 1 : index
    %c0_40 = arith.constant 0 : index
    %c0_41 = arith.constant 0 : index
    %86 = vector.load %arg8[%c1_39, %c0_40, %c0_41] : memref<8x2x32xf32, #tpu.memory_space<vmem>>, vector<1x2x32xf32>
    %87 = vector.shape_cast %86 : vector<1x2x32xf32> to vector<2x32xf32>
    %88 = vector.shape_cast %85 : vector<2x32xf32> to vector<1x2x32xf32>
    tpu.vector_store %arg8[%c1_39, %c0_40, %c0_41], %88 {strides = array<i32>} : memref<8x2x32xf32, #tpu.memory_space<vmem>>, vector<1x2x32xf32>,
    %c2 = arith.constant 2 : index
    %c0_42 = arith.constant 0 : index
    %c0_43 = arith.constant 0 : index
    %89 = vector.load %arg0[%c2, %c0_42, %c0_43] : memref<8x2x16xf32, #tpu.memory_space<vmem>>, vector<1x2x16xf32>
    %90 = vector.shape_cast %89 : vector<1x2x16xf32> to vector<2x16xf32>
    %c2_44 = arith.constant 2 : index
    %c0_45 = arith.constant 0 : index
    %c0_46 = arith.constant 0 : index
    %91 = vector.load %arg1[%c2_44, %c0_45, %c0_46] : memref<8x2x10xf32, #tpu.memory_space<vmem>>, vector<1x2x10xf32>
    %92 = vector.shape_cast %91 : vector<1x2x10xf32> to vector<2x10xf32>
    %cst_47 = arith.constant dense<0.000000e+00> : vector<2x16xf32>
    %93 = tpu.matmul %92, %3, %cst_47 {dimension_numbers = #tpu.dot_dimension_numbers<[1], [0], [0], [1], [0, 0, 1, 1], [], []>} : vector<2x10xf32>, vector<10x16xf32>, vector<2x16xf32> -> vector<2x16xf32>
    %94 = arith.addf %90, %93 : vector<2x16xf32>
    %95 = arith.addf %94, %2 : vector<2x16xf32>
    %cst_48 = arith.constant dense<0.000000e+00> : vector<2x128xf32>
    %96 = tpu.matmul %95, %4, %cst_48 {dimension_numbers = #tpu.dot_dimension_numbers<[1], [0], [0], [1], [0, 0, 1, 1], [], []>} : vector<2x16xf32>, vector<16x128xf32>, vector<2x128xf32> -> vector<2x128xf32>
    %cst_49 = arith.constant dense<0.000000e+00> : vector<2x128xf32>
    %97 = tpu.matmul %85, %5, %cst_49 {dimension_numbers = #tpu.dot_dimension_numbers<[1], [0], [0], [1], [0, 0, 1, 1], [], []>} : vector<2x32xf32>, vector<32x128xf32>, vector<2x128xf32> -> vector<2x128xf32>
    %98 = arith.addf %96, %97 : vector<2x128xf32>
    %99 = vector.broadcast %6 : vector<1x128xf32> to vector<2x128xf32>
    %100 = arith.addf %98, %99 : vector<2x128xf32>
    %101 = vector.extract_strided_slice %100 {offsets = [0, 0], sizes = [2, 32], strides = [1, 1]} : vector<2x128xf32> to vector<2x32xf32>
    %102 = arith.negf %101 : vector<2x32xf32>
    %103 = math.exp %102 : vector<2x32xf32>
    %cst_50 = arith.constant 1.000000e+00 : f32
    %104 = vector.broadcast %cst_50 : f32 to vector<2x32xf32>
    %105 = arith.addf %104, %103 : vector<2x32xf32>
    %106 = arith.divf %104, %105 : vector<2x32xf32>
    %107 = vector.extract_strided_slice %100 {offsets = [0, 32], sizes = [2, 32], strides = [1, 1]} : vector<2x128xf32> to vector<2x32xf32>
    %108 = arith.negf %107 : vector<2x32xf32>
    %109 = math.exp %108 : vector<2x32xf32>
    %cst_51 = arith.constant 1.000000e+00 : f32
    %110 = vector.broadcast %cst_51 : f32 to vector<2x32xf32>
    %111 = arith.addf %110, %109 : vector<2x32xf32>
    %112 = arith.divf %110, %111 : vector<2x32xf32>
    %113 = vector.extract_strided_slice %100 {offsets = [0, 64], sizes = [2, 32], strides = [1, 1]} : vector<2x128xf32> to vector<2x32xf32>
    %114 = math.tanh %113 : vector<2x32xf32>
    %115 = vector.extract_strided_slice %100 {offsets = [0, 96], sizes = [2, 32], strides = [1, 1]} : vector<2x128xf32> to vector<2x32xf32>
    %116 = arith.negf %115 : vector<2x32xf32>
    %117 = math.exp %116 : vector<2x32xf32>
    %cst_52 = arith.constant 1.000000e+00 : f32
    %118 = vector.broadcast %cst_52 : f32 to vector<2x32xf32>
    %119 = arith.addf %118, %117 : vector<2x32xf32>
    %120 = arith.divf %118, %119 : vector<2x32xf32>
    %121 = arith.mulf %112, %83 : vector<2x32xf32>
    %122 = arith.mulf %106, %114 : vector<2x32xf32>
    %123 = arith.addf %121, %122 : vector<2x32xf32>
    %124 = math.tanh %123 : vector<2x32xf32>
    %125 = arith.mulf %120, %124 : vector<2x32xf32>
    %c2_53 = arith.constant 2 : index
    %c0_54 = arith.constant 0 : index
    %c0_55 = arith.constant 0 : index
    %126 = vector.load %arg8[%c2_53, %c0_54, %c0_55] : memref<8x2x32xf32, #tpu.memory_space<vmem>>, vector<1x2x32xf32>
    %127 = vector.shape_cast %126 : vector<1x2x32xf32> to vector<2x32xf32>
    %128 = vector.shape_cast %125 : vector<2x32xf32> to vector<1x2x32xf32>
    tpu.vector_store %arg8[%c2_53, %c0_54, %c0_55], %128 {strides = array<i32>} : memref<8x2x32xf32, #tpu.memory_space<vmem>>, vector<1x2x32xf32>,
    %c3 = arith.constant 3 : index
    %c0_56 = arith.constant 0 : index
    %c0_57 = arith.constant 0 : index
    %129 = vector.load %arg0[%c3, %c0_56, %c0_57] : memref<8x2x16xf32, #tpu.memory_space<vmem>>, vector<1x2x16xf32>
    %130 = vector.shape_cast %129 : vector<1x2x16xf32> to vector<2x16xf32>
    %c3_58 = arith.constant 3 : index
    %c0_59 = arith.constant 0 : index
    %c0_60 = arith.constant 0 : index
    %131 = vector.load %arg1[%c3_58, %c0_59, %c0_60] : memref<8x2x10xf32, #tpu.memory_space<vmem>>, vector<1x2x10xf32>
    %132 = vector.shape_cast %131 : vector<1x2x10xf32> to vector<2x10xf32>
    %cst_61 = arith.constant dense<0.000000e+00> : vector<2x16xf32>
    %133 = tpu.matmul %132, %3, %cst_61 {dimension_numbers = #tpu.dot_dimension_numbers<[1], [0], [0], [1], [0, 0, 1, 1], [], []>} : vector<2x10xf32>, vector<10x16xf32>, vector<2x16xf32> -> vector<2x16xf32>
    %134 = arith.addf %130, %133 : vector<2x16xf32>
    %135 = arith.addf %134, %2 : vector<2x16xf32>
    %cst_62 = arith.constant dense<0.000000e+00> : vector<2x128xf32>
    %136 = tpu.matmul %135, %4, %cst_62 {dimension_numbers = #tpu.dot_dimension_numbers<[1], [0], [0], [1], [0, 0, 1, 1], [], []>} : vector<2x16xf32>, vector<16x128xf32>, vector<2x128xf32> -> vector<2x128xf32>
    %cst_63 = arith.constant dense<0.000000e+00> : vector<2x128xf32>
    %137 = tpu.matmul %125, %5, %cst_63 {dimension_numbers = #tpu.dot_dimension_numbers<[1], [0], [0], [1], [0, 0, 1, 1], [], []>} : vector<2x32xf32>, vector<32x128xf32>, vector<2x128xf32> -> vector<2x128xf32>
    %138 = arith.addf %136, %137 : vector<2x128xf32>
    %139 = vector.broadcast %6 : vector<1x128xf32> to vector<2x128xf32>
    %140 = arith.addf %138, %139 : vector<2x128xf32>
    %141 = vector.extract_strided_slice %140 {offsets = [0, 0], sizes = [2, 32], strides = [1, 1]} : vector<2x128xf32> to vector<2x32xf32>
    %142 = arith.negf %141 : vector<2x32xf32>
    %143 = math.exp %142 : vector<2x32xf32>
    %cst_64 = arith.constant 1.000000e+00 : f32
    %144 = vector.broadcast %cst_64 : f32 to vector<2x32xf32>
    %145 = arith.addf %144, %143 : vector<2x32xf32>
    %146 = arith.divf %144, %145 : vector<2x32xf32>
    %147 = vector.extract_strided_slice %140 {offsets = [0, 32], sizes = [2, 32], strides = [1, 1]} : vector<2x128xf32> to vector<2x32xf32>
    %148 = arith.negf %147 : vector<2x32xf32>
    %149 = math.exp %148 : vector<2x32xf32>
    %cst_65 = arith.constant 1.000000e+00 : f32
    %150 = vector.broadcast %cst_65 : f32 to vector<2x32xf32>
    %151 = arith.addf %150, %149 : vector<2x32xf32>
    %152 = arith.divf %150, %151 : vector<2x32xf32>
    %153 = vector.extract_strided_slice %140 {offsets = [0, 64], sizes = [2, 32], strides = [1, 1]} : vector<2x128xf32> to vector<2x32xf32>
    %154 = math.tanh %153 : vector<2x32xf32>
    %155 = vector.extract_strided_slice %140 {offsets = [0, 96], sizes = [2, 32], strides = [1, 1]} : vector<2x128xf32> to vector<2x32xf32>
    %156 = arith.negf %155 : vector<2x32xf32>
    %157 = math.exp %156 : vector<2x32xf32>
    %cst_66 = arith.constant 1.000000e+00 : f32
    %158 = vector.broadcast %cst_66 : f32 to vector<2x32xf32>
    %159 = arith.addf %158, %157 : vector<2x32xf32>
    %160 = arith.divf %158, %159 : vector<2x32xf32>
    %161 = arith.mulf %152, %123 : vector<2x32xf32>
    %162 = arith.mulf %146, %154 : vector<2x32xf32>
    %163 = arith.addf %161, %162 : vector<2x32xf32>
    %164 = math.tanh %163 : vector<2x32xf32>
    %165 = arith.mulf %160, %164 : vector<2x32xf32>
    %c3_67 = arith.constant 3 : index
    %c0_68 = arith.constant 0 : index
    %c0_69 = arith.constant 0 : index
    %166 = vector.load %arg8[%c3_67, %c0_68, %c0_69] : memref<8x2x32xf32, #tpu.memory_space<vmem>>, vector<1x2x32xf32>
    %167 = vector.shape_cast %166 : vector<1x2x32xf32> to vector<2x32xf32>
    %168 = vector.shape_cast %165 : vector<2x32xf32> to vector<1x2x32xf32>
    tpu.vector_store %arg8[%c3_67, %c0_68, %c0_69], %168 {strides = array<i32>} : memref<8x2x32xf32, #tpu.memory_space<vmem>>, vector<1x2x32xf32>,
    %c4 = arith.constant 4 : index
    %c0_70 = arith.constant 0 : index
    %c0_71 = arith.constant 0 : index
    %169 = vector.load %arg0[%c4, %c0_70, %c0_71] : memref<8x2x16xf32, #tpu.memory_space<vmem>>, vector<1x2x16xf32>
    %170 = vector.shape_cast %169 : vector<1x2x16xf32> to vector<2x16xf32>
    %c4_72 = arith.constant 4 : index
    %c0_73 = arith.constant 0 : index
    %c0_74 = arith.constant 0 : index
    %171 = vector.load %arg1[%c4_72, %c0_73, %c0_74] : memref<8x2x10xf32, #tpu.memory_space<vmem>>, vector<1x2x10xf32>
    %172 = vector.shape_cast %171 : vector<1x2x10xf32> to vector<2x10xf32>
    %cst_75 = arith.constant dense<0.000000e+00> : vector<2x16xf32>
    %173 = tpu.matmul %172, %3, %cst_75 {dimension_numbers = #tpu.dot_dimension_numbers<[1], [0], [0], [1], [0, 0, 1, 1], [], []>} : vector<2x10xf32>, vector<10x16xf32>, vector<2x16xf32> -> vector<2x16xf32>
    %174 = arith.addf %170, %173 : vector<2x16xf32>
    %175 = arith.addf %174, %2 : vector<2x16xf32>
    %cst_76 = arith.constant dense<0.000000e+00> : vector<2x128xf32>
    %176 = tpu.matmul %175, %4, %cst_76 {dimension_numbers = #tpu.dot_dimension_numbers<[1], [0], [0], [1], [0, 0, 1, 1], [], []>} : vector<2x16xf32>, vector<16x128xf32>, vector<2x128xf32> -> vector<2x128xf32>
    %cst_77 = arith.constant dense<0.000000e+00> : vector<2x128xf32>
    %177 = tpu.matmul %165, %5, %cst_77 {dimension_numbers = #tpu.dot_dimension_numbers<[1], [0], [0], [1], [0, 0, 1, 1], [], []>} : vector<2x32xf32>, vector<32x128xf32>, vector<2x128xf32> -> vector<2x128xf32>
    %178 = arith.addf %176, %177 : vector<2x128xf32>
    %179 = vector.broadcast %6 : vector<1x128xf32> to vector<2x128xf32>
    %180 = arith.addf %178, %179 : vector<2x128xf32>
    %181 = vector.extract_strided_slice %180 {offsets = [0, 0], sizes = [2, 32], strides = [1, 1]} : vector<2x128xf32> to vector<2x32xf32>
    %182 = arith.negf %181 : vector<2x32xf32>
    %183 = math.exp %182 : vector<2x32xf32>
    %cst_78 = arith.constant 1.000000e+00 : f32
    %184 = vector.broadcast %cst_78 : f32 to vector<2x32xf32>
    %185 = arith.addf %184, %183 : vector<2x32xf32>
    %186 = arith.divf %184, %185 : vector<2x32xf32>
    %187 = vector.extract_strided_slice %180 {offsets = [0, 32], sizes = [2, 32], strides = [1, 1]} : vector<2x128xf32> to vector<2x32xf32>
    %188 = arith.negf %187 : vector<2x32xf32>
    %189 = math.exp %188 : vector<2x32xf32>
    %cst_79 = arith.constant 1.000000e+00 : f32
    %190 = vector.broadcast %cst_79 : f32 to vector<2x32xf32>
    %191 = arith.addf %190, %189 : vector<2x32xf32>
    %192 = arith.divf %190, %191 : vector<2x32xf32>
    %193 = vector.extract_strided_slice %180 {offsets = [0, 64], sizes = [2, 32], strides = [1, 1]} : vector<2x128xf32> to vector<2x32xf32>
    %194 = math.tanh %193 : vector<2x32xf32>
    %195 = vector.extract_strided_slice %180 {offsets = [0, 96], sizes = [2, 32], strides = [1, 1]} : vector<2x128xf32> to vector<2x32xf32>
    %196 = arith.negf %195 : vector<2x32xf32>
    %197 = math.exp %196 : vector<2x32xf32>
    %cst_80 = arith.constant 1.000000e+00 : f32
    %198 = vector.broadcast %cst_80 : f32 to vector<2x32xf32>
    %199 = arith.addf %198, %197 : vector<2x32xf32>
    %200 = arith.divf %198, %199 : vector<2x32xf32>
    %201 = arith.mulf %192, %163 : vector<2x32xf32>
    %202 = arith.mulf %186, %194 : vector<2x32xf32>
    %203 = arith.addf %201, %202 : vector<2x32xf32>
    %204 = math.tanh %203 : vector<2x32xf32>
    %205 = arith.mulf %200, %204 : vector<2x32xf32>
    %c4_81 = arith.constant 4 : index
    %c0_82 = arith.constant 0 : index
    %c0_83 = arith.constant 0 : index
    %206 = vector.load %arg8[%c4_81, %c0_82, %c0_83] : memref<8x2x32xf32, #tpu.memory_space<vmem>>, vector<1x2x32xf32>
    %207 = vector.shape_cast %206 : vector<1x2x32xf32> to vector<2x32xf32>
    %208 = vector.shape_cast %205 : vector<2x32xf32> to vector<1x2x32xf32>
    tpu.vector_store %arg8[%c4_81, %c0_82, %c0_83], %208 {strides = array<i32>} : memref<8x2x32xf32, #tpu.memory_space<vmem>>, vector<1x2x32xf32>,
    %c5 = arith.constant 5 : index
    %c0_84 = arith.constant 0 : index
    %c0_85 = arith.constant 0 : index
    %209 = vector.load %arg0[%c5, %c0_84, %c0_85] : memref<8x2x16xf32, #tpu.memory_space<vmem>>, vector<1x2x16xf32>
    %210 = vector.shape_cast %209 : vector<1x2x16xf32> to vector<2x16xf32>
    %c5_86 = arith.constant 5 : index
    %c0_87 = arith.constant 0 : index
    %c0_88 = arith.constant 0 : index
    %211 = vector.load %arg1[%c5_86, %c0_87, %c0_88] : memref<8x2x10xf32, #tpu.memory_space<vmem>>, vector<1x2x10xf32>
    %212 = vector.shape_cast %211 : vector<1x2x10xf32> to vector<2x10xf32>
    %cst_89 = arith.constant dense<0.000000e+00> : vector<2x16xf32>
    %213 = tpu.matmul %212, %3, %cst_89 {dimension_numbers = #tpu.dot_dimension_numbers<[1], [0], [0], [1], [0, 0, 1, 1], [], []>} : vector<2x10xf32>, vector<10x16xf32>, vector<2x16xf32> -> vector<2x16xf32>
    %214 = arith.addf %210, %213 : vector<2x16xf32>
    %215 = arith.addf %214, %2 : vector<2x16xf32>
    %cst_90 = arith.constant dense<0.000000e+00> : vector<2x128xf32>
    %216 = tpu.matmul %215, %4, %cst_90 {dimension_numbers = #tpu.dot_dimension_numbers<[1], [0], [0], [1], [0, 0, 1, 1], [], []>} : vector<2x16xf32>, vector<16x128xf32>, vector<2x128xf32> -> vector<2x128xf32>
    %cst_91 = arith.constant dense<0.000000e+00> : vector<2x128xf32>
    %217 = tpu.matmul %205, %5, %cst_91 {dimension_numbers = #tpu.dot_dimension_numbers<[1], [0], [0], [1], [0, 0, 1, 1], [], []>} : vector<2x32xf32>, vector<32x128xf32>, vector<2x128xf32> -> vector<2x128xf32>
    %218 = arith.addf %216, %217 : vector<2x128xf32>
    %219 = vector.broadcast %6 : vector<1x128xf32> to vector<2x128xf32>
    %220 = arith.addf %218, %219 : vector<2x128xf32>
    %221 = vector.extract_strided_slice %220 {offsets = [0, 0], sizes = [2, 32], strides = [1, 1]} : vector<2x128xf32> to vector<2x32xf32>
    %222 = arith.negf %221 : vector<2x32xf32>
    %223 = math.exp %222 : vector<2x32xf32>
    %cst_92 = arith.constant 1.000000e+00 : f32
    %224 = vector.broadcast %cst_92 : f32 to vector<2x32xf32>
    %225 = arith.addf %224, %223 : vector<2x32xf32>
    %226 = arith.divf %224, %225 : vector<2x32xf32>
    %227 = vector.extract_strided_slice %220 {offsets = [0, 32], sizes = [2, 32], strides = [1, 1]} : vector<2x128xf32> to vector<2x32xf32>
    %228 = arith.negf %227 : vector<2x32xf32>
    %229 = math.exp %228 : vector<2x32xf32>
    %cst_93 = arith.constant 1.000000e+00 : f32
    %230 = vector.broadcast %cst_93 : f32 to vector<2x32xf32>
    %231 = arith.addf %230, %229 : vector<2x32xf32>
    %232 = arith.divf %230, %231 : vector<2x32xf32>
    %233 = vector.extract_strided_slice %220 {offsets = [0, 64], sizes = [2, 32], strides = [1, 1]} : vector<2x128xf32> to vector<2x32xf32>
    %234 = math.tanh %233 : vector<2x32xf32>
    %235 = vector.extract_strided_slice %220 {offsets = [0, 96], sizes = [2, 32], strides = [1, 1]} : vector<2x128xf32> to vector<2x32xf32>
    %236 = arith.negf %235 : vector<2x32xf32>
    %237 = math.exp %236 : vector<2x32xf32>
    %cst_94 = arith.constant 1.000000e+00 : f32
    %238 = vector.broadcast %cst_94 : f32 to vector<2x32xf32>
    %239 = arith.addf %238, %237 : vector<2x32xf32>
    %240 = arith.divf %238, %239 : vector<2x32xf32>
    %241 = arith.mulf %232, %203 : vector<2x32xf32>
    %242 = arith.mulf %226, %234 : vector<2x32xf32>
    %243 = arith.addf %241, %242 : vector<2x32xf32>
    %244 = math.tanh %243 : vector<2x32xf32>
    %245 = arith.mulf %240, %244 : vector<2x32xf32>
    %c5_95 = arith.constant 5 : index
    %c0_96 = arith.constant 0 : index
    %c0_97 = arith.constant 0 : index
    %246 = vector.load %arg8[%c5_95, %c0_96, %c0_97] : memref<8x2x32xf32, #tpu.memory_space<vmem>>, vector<1x2x32xf32>
    %247 = vector.shape_cast %246 : vector<1x2x32xf32> to vector<2x32xf32>
    %248 = vector.shape_cast %245 : vector<2x32xf32> to vector<1x2x32xf32>
    tpu.vector_store %arg8[%c5_95, %c0_96, %c0_97], %248 {strides = array<i32>} : memref<8x2x32xf32, #tpu.memory_space<vmem>>, vector<1x2x32xf32>,
    %c6 = arith.constant 6 : index
    %c0_98 = arith.constant 0 : index
    %c0_99 = arith.constant 0 : index
    %249 = vector.load %arg0[%c6, %c0_98, %c0_99] : memref<8x2x16xf32, #tpu.memory_space<vmem>>, vector<1x2x16xf32>
    %250 = vector.shape_cast %249 : vector<1x2x16xf32> to vector<2x16xf32>
    %c6_100 = arith.constant 6 : index
    %c0_101 = arith.constant 0 : index
    %c0_102 = arith.constant 0 : index
    %251 = vector.load %arg1[%c6_100, %c0_101, %c0_102] : memref<8x2x10xf32, #tpu.memory_space<vmem>>, vector<1x2x10xf32>
    %252 = vector.shape_cast %251 : vector<1x2x10xf32> to vector<2x10xf32>
    %cst_103 = arith.constant dense<0.000000e+00> : vector<2x16xf32>
    %253 = tpu.matmul %252, %3, %cst_103 {dimension_numbers = #tpu.dot_dimension_numbers<[1], [0], [0], [1], [0, 0, 1, 1], [], []>} : vector<2x10xf32>, vector<10x16xf32>, vector<2x16xf32> -> vector<2x16xf32>
    %254 = arith.addf %250, %253 : vector<2x16xf32>
    %255 = arith.addf %254, %2 : vector<2x16xf32>
    %cst_104 = arith.constant dense<0.000000e+00> : vector<2x128xf32>
    %256 = tpu.matmul %255, %4, %cst_104 {dimension_numbers = #tpu.dot_dimension_numbers<[1], [0], [0], [1], [0, 0, 1, 1], [], []>} : vector<2x16xf32>, vector<16x128xf32>, vector<2x128xf32> -> vector<2x128xf32>
    %cst_105 = arith.constant dense<0.000000e+00> : vector<2x128xf32>
    %257 = tpu.matmul %245, %5, %cst_105 {dimension_numbers = #tpu.dot_dimension_numbers<[1], [0], [0], [1], [0, 0, 1, 1], [], []>} : vector<2x32xf32>, vector<32x128xf32>, vector<2x128xf32> -> vector<2x128xf32>
    %258 = arith.addf %256, %257 : vector<2x128xf32>
    %259 = vector.broadcast %6 : vector<1x128xf32> to vector<2x128xf32>
    %260 = arith.addf %258, %259 : vector<2x128xf32>
    %261 = vector.extract_strided_slice %260 {offsets = [0, 0], sizes = [2, 32], strides = [1, 1]} : vector<2x128xf32> to vector<2x32xf32>
    %262 = arith.negf %261 : vector<2x32xf32>
    %263 = math.exp %262 : vector<2x32xf32>
    %cst_106 = arith.constant 1.000000e+00 : f32
    %264 = vector.broadcast %cst_106 : f32 to vector<2x32xf32>
    %265 = arith.addf %264, %263 : vector<2x32xf32>
    %266 = arith.divf %264, %265 : vector<2x32xf32>
    %267 = vector.extract_strided_slice %260 {offsets = [0, 32], sizes = [2, 32], strides = [1, 1]} : vector<2x128xf32> to vector<2x32xf32>
    %268 = arith.negf %267 : vector<2x32xf32>
    %269 = math.exp %268 : vector<2x32xf32>
    %cst_107 = arith.constant 1.000000e+00 : f32
    %270 = vector.broadcast %cst_107 : f32 to vector<2x32xf32>
    %271 = arith.addf %270, %269 : vector<2x32xf32>
    %272 = arith.divf %270, %271 : vector<2x32xf32>
    %273 = vector.extract_strided_slice %260 {offsets = [0, 64], sizes = [2, 32], strides = [1, 1]} : vector<2x128xf32> to vector<2x32xf32>
    %274 = math.tanh %273 : vector<2x32xf32>
    %275 = vector.extract_strided_slice %260 {offsets = [0, 96], sizes = [2, 32], strides = [1, 1]} : vector<2x128xf32> to vector<2x32xf32>
    %276 = arith.negf %275 : vector<2x32xf32>
    %277 = math.exp %276 : vector<2x32xf32>
    %cst_108 = arith.constant 1.000000e+00 : f32
    %278 = vector.broadcast %cst_108 : f32 to vector<2x32xf32>
    %279 = arith.addf %278, %277 : vector<2x32xf32>
    %280 = arith.divf %278, %279 : vector<2x32xf32>
    %281 = arith.mulf %272, %243 : vector<2x32xf32>
    %282 = arith.mulf %266, %274 : vector<2x32xf32>
    %283 = arith.addf %281, %282 : vector<2x32xf32>
    %284 = math.tanh %283 : vector<2x32xf32>
    %285 = arith.mulf %280, %284 : vector<2x32xf32>
    %c6_109 = arith.constant 6 : index
    %c0_110 = arith.constant 0 : index
    %c0_111 = arith.constant 0 : index
    %286 = vector.load %arg8[%c6_109, %c0_110, %c0_111] : memref<8x2x32xf32, #tpu.memory_space<vmem>>, vector<1x2x32xf32>
    %287 = vector.shape_cast %286 : vector<1x2x32xf32> to vector<2x32xf32>
    %288 = vector.shape_cast %285 : vector<2x32xf32> to vector<1x2x32xf32>
    tpu.vector_store %arg8[%c6_109, %c0_110, %c0_111], %288 {strides = array<i32>} : memref<8x2x32xf32, #tpu.memory_space<vmem>>, vector<1x2x32xf32>,
    %c7 = arith.constant 7 : index
    %c0_112 = arith.constant 0 : index
    %c0_113 = arith.constant 0 : index
    %289 = vector.load %arg0[%c7, %c0_112, %c0_113] : memref<8x2x16xf32, #tpu.memory_space<vmem>>, vector<1x2x16xf32>
    %290 = vector.shape_cast %289 : vector<1x2x16xf32> to vector<2x16xf32>
    %c7_114 = arith.constant 7 : index
    %c0_115 = arith.constant 0 : index
    %c0_116 = arith.constant 0 : index
    %291 = vector.load %arg1[%c7_114, %c0_115, %c0_116] : memref<8x2x10xf32, #tpu.memory_space<vmem>>, vector<1x2x10xf32>
    %292 = vector.shape_cast %291 : vector<1x2x10xf32> to vector<2x10xf32>
    %cst_117 = arith.constant dense<0.000000e+00> : vector<2x16xf32>
    %293 = tpu.matmul %292, %3, %cst_117 {dimension_numbers = #tpu.dot_dimension_numbers<[1], [0], [0], [1], [0, 0, 1, 1], [], []>} : vector<2x10xf32>, vector<10x16xf32>, vector<2x16xf32> -> vector<2x16xf32>
    %294 = arith.addf %290, %293 : vector<2x16xf32>
    %295 = arith.addf %294, %2 : vector<2x16xf32>
    %cst_118 = arith.constant dense<0.000000e+00> : vector<2x128xf32>
    %296 = tpu.matmul %295, %4, %cst_118 {dimension_numbers = #tpu.dot_dimension_numbers<[1], [0], [0], [1], [0, 0, 1, 1], [], []>} : vector<2x16xf32>, vector<16x128xf32>, vector<2x128xf32> -> vector<2x128xf32>
    %cst_119 = arith.constant dense<0.000000e+00> : vector<2x128xf32>
    %297 = tpu.matmul %285, %5, %cst_119 {dimension_numbers = #tpu.dot_dimension_numbers<[1], [0], [0], [1], [0, 0, 1, 1], [], []>} : vector<2x32xf32>, vector<32x128xf32>, vector<2x128xf32> -> vector<2x128xf32>
    %298 = arith.addf %296, %297 : vector<2x128xf32>
    %299 = vector.broadcast %6 : vector<1x128xf32> to vector<2x128xf32>
    %300 = arith.addf %298, %299 : vector<2x128xf32>
    %301 = vector.extract_strided_slice %300 {offsets = [0, 0], sizes = [2, 32], strides = [1, 1]} : vector<2x128xf32> to vector<2x32xf32>
    %302 = arith.negf %301 : vector<2x32xf32>
    %303 = math.exp %302 : vector<2x32xf32>
    %cst_120 = arith.constant 1.000000e+00 : f32
    %304 = vector.broadcast %cst_120 : f32 to vector<2x32xf32>
    %305 = arith.addf %304, %303 : vector<2x32xf32>
    %306 = arith.divf %304, %305 : vector<2x32xf32>
    %307 = vector.extract_strided_slice %300 {offsets = [0, 32], sizes = [2, 32], strides = [1, 1]} : vector<2x128xf32> to vector<2x32xf32>
    %308 = arith.negf %307 : vector<2x32xf32>
    %309 = math.exp %308 : vector<2x32xf32>
    %cst_121 = arith.constant 1.000000e+00 : f32
    %310 = vector.broadcast %cst_121 : f32 to vector<2x32xf32>
    %311 = arith.addf %310, %309 : vector<2x32xf32>
    %312 = arith.divf %310, %311 : vector<2x32xf32>
    %313 = vector.extract_strided_slice %300 {offsets = [0, 64], sizes = [2, 32], strides = [1, 1]} : vector<2x128xf32> to vector<2x32xf32>
    %314 = math.tanh %313 : vector<2x32xf32>
    %315 = vector.extract_strided_slice %300 {offsets = [0, 96], sizes = [2, 32], strides = [1, 1]} : vector<2x128xf32> to vector<2x32xf32>
    %316 = arith.negf %315 : vector<2x32xf32>
    %317 = math.exp %316 : vector<2x32xf32>
    %cst_122 = arith.constant 1.000000e+00 : f32
    %318 = vector.broadcast %cst_122 : f32 to vector<2x32xf32>
    %319 = arith.addf %318, %317 : vector<2x32xf32>
    %320 = arith.divf %318, %319 : vector<2x32xf32>
    %321 = arith.mulf %312, %283 : vector<2x32xf32>
    %322 = arith.mulf %306, %314 : vector<2x32xf32>
    %323 = arith.addf %321, %322 : vector<2x32xf32>
    %324 = math.tanh %323 : vector<2x32xf32>
    %325 = arith.mulf %320, %324 : vector<2x32xf32>
    %c7_123 = arith.constant 7 : index
    %c0_124 = arith.constant 0 : index
    %c0_125 = arith.constant 0 : index
    %326 = vector.load %arg8[%c7_123, %c0_124, %c0_125] : memref<8x2x32xf32, #tpu.memory_space<vmem>>, vector<1x2x32xf32>
    %327 = vector.shape_cast %326 : vector<1x2x32xf32> to vector<2x32xf32>
    %328 = vector.shape_cast %325 : vector<2x32xf32> to vector<1x2x32xf32>
    tpu.vector_store %arg8[%c7_123, %c0_124, %c0_125], %328 {strides = array<i32>} : memref<8x2x32xf32, #tpu.memory_space<vmem>>, vector<1x2x32xf32>,
    return
  }
}

module attributes {stable_mosaic.version = 11 : i64} {
  func.func @_encoder_layer_kernel(%arg0: memref<16x32xf32, #tpu.memory_space<vmem>>, %arg1: memref<32x96xf32, #tpu.memory_space<vmem>>, %arg2: memref<32x32xf32, #tpu.memory_space<vmem>>, %arg3: memref<1x32xf32, #tpu.memory_space<vmem>>, %arg4: memref<1x32xf32, #tpu.memory_space<vmem>>, %arg5: memref<32x64xf32, #tpu.memory_space<vmem>>, %arg6: memref<1x64xf32, #tpu.memory_space<vmem>>, %arg7: memref<64x32xf32, #tpu.memory_space<vmem>>, %arg8: memref<1x32xf32, #tpu.memory_space<vmem>>, %arg9: memref<1x32xf32, #tpu.memory_space<vmem>>, %arg10: memref<1x32xf32, #tpu.memory_space<vmem>>, %arg11: memref<16x32xf32, #tpu.memory_space<vmem>>) attributes {dimension_semantics = [], scalar_prefetch = 0 : i64, scratch_operands = 0 : i64, tpu.core_type = #tpu.core_type<tc>} {
    %c0 = arith.constant 0 : index
    %c0_0 = arith.constant 0 : index
    %0 = vector.load %arg0[%c0, %c0_0] : memref<16x32xf32, #tpu.memory_space<vmem>>, vector<16x32xf32>
    %c0_1 = arith.constant 0 : index
    %c0_2 = arith.constant 0 : index
    %1 = vector.load %arg1[%c0_1, %c0_2] : memref<32x96xf32, #tpu.memory_space<vmem>>, vector<32x96xf32>
    %cst = arith.constant dense<0.000000e+00> : vector<16x96xf32>
    %2 = tpu.matmul %0, %1, %cst {dimension_numbers = #tpu.dot_dimension_numbers<[1], [0], [0], [1], [0, 0, 1, 1], [], []>} : vector<16x32xf32>, vector<32x96xf32>, vector<16x96xf32> -> vector<16x96xf32>
    %3 = vector.extract_strided_slice %2 {offsets = [0, 0], sizes = [8, 8], strides = [1, 1]} : vector<16x96xf32> to vector<8x8xf32>
    %4 = vector.extract_strided_slice %2 {offsets = [0, 32], sizes = [8, 8], strides = [1, 1]} : vector<16x96xf32> to vector<8x8xf32>
    %5 = vector.extract_strided_slice %2 {offsets = [0, 64], sizes = [8, 8], strides = [1, 1]} : vector<16x96xf32> to vector<8x8xf32>
    %cst_3 = arith.constant dense<0.000000e+00> : vector<8x8xf32>
    %6 = tpu.matmul %3, %4, %cst_3 {dimension_numbers = #tpu.dot_dimension_numbers<[1], [1], [0], [0], [0, 0, 1, 0], [], []>} : vector<8x8xf32>, vector<8x8xf32>, vector<8x8xf32> -> vector<8x8xf32>
    %cst_4 = arith.constant 0.353553385 : f32
    %7 = vector.broadcast %cst_4 : f32 to vector<8x8xf32>
    %8 = arith.mulf %6, %7 : vector<8x8xf32>
    %cst_5 = arith.constant dense<0xFF800000> : vector<8xf32>
    %9 = vector.multi_reduction <maximumf>, %8, %cst_5 [1] : vector<8x8xf32> to vector<8xf32>
    %10 = vector.shape_cast %9 : vector<8xf32> to vector<8x1xf32>
    %11 = vector.broadcast %10 : vector<8x1xf32> to vector<8x8xf32>
    %12 = arith.subf %8, %11 : vector<8x8xf32>
    %13 = math.exp %12 : vector<8x8xf32>
    %cst_6 = arith.constant dense<0.000000e+00> : vector<8xf32>
    %14 = vector.multi_reduction <add>, %13, %cst_6 [1] : vector<8x8xf32> to vector<8xf32>
    %15 = vector.shape_cast %14 : vector<8xf32> to vector<8x1xf32>
    %16 = tpu.reciprocal %15 {approx = true} : vector<8x1xf32> -> vector<8x1xf32>
    %17 = vector.broadcast %16 : vector<8x1xf32> to vector<8x8xf32>
    %18 = arith.mulf %13, %17 : vector<8x8xf32>
    %cst_7 = arith.constant dense<0.000000e+00> : vector<8x8xf32>
    %19 = tpu.matmul %18, %5, %cst_7 {dimension_numbers = #tpu.dot_dimension_numbers<[1], [0], [0], [1], [0, 0, 1, 1], [], []>} : vector<8x8xf32>, vector<8x8xf32>, vector<8x8xf32> -> vector<8x8xf32>
    %20 = vector.extract_strided_slice %2 {offsets = [0, 8], sizes = [8, 8], strides = [1, 1]} : vector<16x96xf32> to vector<8x8xf32>
    %21 = vector.extract_strided_slice %2 {offsets = [0, 40], sizes = [8, 8], strides = [1, 1]} : vector<16x96xf32> to vector<8x8xf32>
    %22 = vector.extract_strided_slice %2 {offsets = [0, 72], sizes = [8, 8], strides = [1, 1]} : vector<16x96xf32> to vector<8x8xf32>
    %cst_8 = arith.constant dense<0.000000e+00> : vector<8x8xf32>
    %23 = tpu.matmul %20, %21, %cst_8 {dimension_numbers = #tpu.dot_dimension_numbers<[1], [1], [0], [0], [0, 0, 1, 0], [], []>} : vector<8x8xf32>, vector<8x8xf32>, vector<8x8xf32> -> vector<8x8xf32>
    %cst_9 = arith.constant 0.353553385 : f32
    %24 = vector.broadcast %cst_9 : f32 to vector<8x8xf32>
    %25 = arith.mulf %23, %24 : vector<8x8xf32>
    %cst_10 = arith.constant dense<0xFF800000> : vector<8xf32>
    %26 = vector.multi_reduction <maximumf>, %25, %cst_10 [1] : vector<8x8xf32> to vector<8xf32>
    %27 = vector.shape_cast %26 : vector<8xf32> to vector<8x1xf32>
    %28 = vector.broadcast %27 : vector<8x1xf32> to vector<8x8xf32>
    %29 = arith.subf %25, %28 : vector<8x8xf32>
    %30 = math.exp %29 : vector<8x8xf32>
    %cst_11 = arith.constant dense<0.000000e+00> : vector<8xf32>
    %31 = vector.multi_reduction <add>, %30, %cst_11 [1] : vector<8x8xf32> to vector<8xf32>
    %32 = vector.shape_cast %31 : vector<8xf32> to vector<8x1xf32>
    %33 = tpu.reciprocal %32 {approx = true} : vector<8x1xf32> -> vector<8x1xf32>
    %34 = vector.broadcast %33 : vector<8x1xf32> to vector<8x8xf32>
    %35 = arith.mulf %30, %34 : vector<8x8xf32>
    %cst_12 = arith.constant dense<0.000000e+00> : vector<8x8xf32>
    %36 = tpu.matmul %35, %22, %cst_12 {dimension_numbers = #tpu.dot_dimension_numbers<[1], [0], [0], [1], [0, 0, 1, 1], [], []>} : vector<8x8xf32>, vector<8x8xf32>, vector<8x8xf32> -> vector<8x8xf32>
    %37 = vector.extract_strided_slice %2 {offsets = [0, 16], sizes = [8, 8], strides = [1, 1]} : vector<16x96xf32> to vector<8x8xf32>
    %38 = vector.extract_strided_slice %2 {offsets = [0, 48], sizes = [8, 8], strides = [1, 1]} : vector<16x96xf32> to vector<8x8xf32>
    %39 = vector.extract_strided_slice %2 {offsets = [0, 80], sizes = [8, 8], strides = [1, 1]} : vector<16x96xf32> to vector<8x8xf32>
    %cst_13 = arith.constant dense<0.000000e+00> : vector<8x8xf32>
    %40 = tpu.matmul %37, %38, %cst_13 {dimension_numbers = #tpu.dot_dimension_numbers<[1], [1], [0], [0], [0, 0, 1, 0], [], []>} : vector<8x8xf32>, vector<8x8xf32>, vector<8x8xf32> -> vector<8x8xf32>
    %cst_14 = arith.constant 0.353553385 : f32
    %41 = vector.broadcast %cst_14 : f32 to vector<8x8xf32>
    %42 = arith.mulf %40, %41 : vector<8x8xf32>
    %cst_15 = arith.constant dense<0xFF800000> : vector<8xf32>
    %43 = vector.multi_reduction <maximumf>, %42, %cst_15 [1] : vector<8x8xf32> to vector<8xf32>
    %44 = vector.shape_cast %43 : vector<8xf32> to vector<8x1xf32>
    %45 = vector.broadcast %44 : vector<8x1xf32> to vector<8x8xf32>
    %46 = arith.subf %42, %45 : vector<8x8xf32>
    %47 = math.exp %46 : vector<8x8xf32>
    %cst_16 = arith.constant dense<0.000000e+00> : vector<8xf32>
    %48 = vector.multi_reduction <add>, %47, %cst_16 [1] : vector<8x8xf32> to vector<8xf32>
    %49 = vector.shape_cast %48 : vector<8xf32> to vector<8x1xf32>
    %50 = tpu.reciprocal %49 {approx = true} : vector<8x1xf32> -> vector<8x1xf32>
    %51 = vector.broadcast %50 : vector<8x1xf32> to vector<8x8xf32>
    %52 = arith.mulf %47, %51 : vector<8x8xf32>
    %cst_17 = arith.constant dense<0.000000e+00> : vector<8x8xf32>
    %53 = tpu.matmul %52, %39, %cst_17 {dimension_numbers = #tpu.dot_dimension_numbers<[1], [0], [0], [1], [0, 0, 1, 1], [], []>} : vector<8x8xf32>, vector<8x8xf32>, vector<8x8xf32> -> vector<8x8xf32>
    %54 = vector.extract_strided_slice %2 {offsets = [0, 24], sizes = [8, 8], strides = [1, 1]} : vector<16x96xf32> to vector<8x8xf32>
    %55 = vector.extract_strided_slice %2 {offsets = [0, 56], sizes = [8, 8], strides = [1, 1]} : vector<16x96xf32> to vector<8x8xf32>
    %56 = vector.extract_strided_slice %2 {offsets = [0, 88], sizes = [8, 8], strides = [1, 1]} : vector<16x96xf32> to vector<8x8xf32>
    %cst_18 = arith.constant dense<0.000000e+00> : vector<8x8xf32>
    %57 = tpu.matmul %54, %55, %cst_18 {dimension_numbers = #tpu.dot_dimension_numbers<[1], [1], [0], [0], [0, 0, 1, 0], [], []>} : vector<8x8xf32>, vector<8x8xf32>, vector<8x8xf32> -> vector<8x8xf32>
    %cst_19 = arith.constant 0.353553385 : f32
    %58 = vector.broadcast %cst_19 : f32 to vector<8x8xf32>
    %59 = arith.mulf %57, %58 : vector<8x8xf32>
    %cst_20 = arith.constant dense<0xFF800000> : vector<8xf32>
    %60 = vector.multi_reduction <maximumf>, %59, %cst_20 [1] : vector<8x8xf32> to vector<8xf32>
    %61 = vector.shape_cast %60 : vector<8xf32> to vector<8x1xf32>
    %62 = vector.broadcast %61 : vector<8x1xf32> to vector<8x8xf32>
    %63 = arith.subf %59, %62 : vector<8x8xf32>
    %64 = math.exp %63 : vector<8x8xf32>
    %cst_21 = arith.constant dense<0.000000e+00> : vector<8xf32>
    %65 = vector.multi_reduction <add>, %64, %cst_21 [1] : vector<8x8xf32> to vector<8xf32>
    %66 = vector.shape_cast %65 : vector<8xf32> to vector<8x1xf32>
    %67 = tpu.reciprocal %66 {approx = true} : vector<8x1xf32> -> vector<8x1xf32>
    %68 = vector.broadcast %67 : vector<8x1xf32> to vector<8x8xf32>
    %69 = arith.mulf %64, %68 : vector<8x8xf32>
    %cst_22 = arith.constant dense<0.000000e+00> : vector<8x8xf32>
    %70 = tpu.matmul %69, %56, %cst_22 {dimension_numbers = #tpu.dot_dimension_numbers<[1], [0], [0], [1], [0, 0, 1, 1], [], []>} : vector<8x8xf32>, vector<8x8xf32>, vector<8x8xf32> -> vector<8x8xf32>
    %71 = tpu.concatenate %19, %36, %53, %70 in 1 : vector<8x8xf32>, vector<8x8xf32>, vector<8x8xf32>, vector<8x8xf32> -> vector<8x32xf32>
    %72 = vector.extract_strided_slice %2 {offsets = [8, 0], sizes = [8, 8], strides = [1, 1]} : vector<16x96xf32> to vector<8x8xf32>
    %73 = vector.extract_strided_slice %2 {offsets = [8, 32], sizes = [8, 8], strides = [1, 1]} : vector<16x96xf32> to vector<8x8xf32>
    %74 = vector.extract_strided_slice %2 {offsets = [8, 64], sizes = [8, 8], strides = [1, 1]} : vector<16x96xf32> to vector<8x8xf32>
    %cst_23 = arith.constant dense<0.000000e+00> : vector<8x8xf32>
    %75 = tpu.matmul %72, %73, %cst_23 {dimension_numbers = #tpu.dot_dimension_numbers<[1], [1], [0], [0], [0, 0, 1, 0], [], []>} : vector<8x8xf32>, vector<8x8xf32>, vector<8x8xf32> -> vector<8x8xf32>
    %cst_24 = arith.constant 0.353553385 : f32
    %76 = vector.broadcast %cst_24 : f32 to vector<8x8xf32>
    %77 = arith.mulf %75, %76 : vector<8x8xf32>
    %cst_25 = arith.constant dense<0xFF800000> : vector<8xf32>
    %78 = vector.multi_reduction <maximumf>, %77, %cst_25 [1] : vector<8x8xf32> to vector<8xf32>
    %79 = vector.shape_cast %78 : vector<8xf32> to vector<8x1xf32>
    %80 = vector.broadcast %79 : vector<8x1xf32> to vector<8x8xf32>
    %81 = arith.subf %77, %80 : vector<8x8xf32>
    %82 = math.exp %81 : vector<8x8xf32>
    %cst_26 = arith.constant dense<0.000000e+00> : vector<8xf32>
    %83 = vector.multi_reduction <add>, %82, %cst_26 [1] : vector<8x8xf32> to vector<8xf32>
    %84 = vector.shape_cast %83 : vector<8xf32> to vector<8x1xf32>
    %85 = tpu.reciprocal %84 {approx = true} : vector<8x1xf32> -> vector<8x1xf32>
    %86 = vector.broadcast %85 : vector<8x1xf32> to vector<8x8xf32>
    %87 = arith.mulf %82, %86 : vector<8x8xf32>
    %cst_27 = arith.constant dense<0.000000e+00> : vector<8x8xf32>
    %88 = tpu.matmul %87, %74, %cst_27 {dimension_numbers = #tpu.dot_dimension_numbers<[1], [0], [0], [1], [0, 0, 1, 1], [], []>} : vector<8x8xf32>, vector<8x8xf32>, vector<8x8xf32> -> vector<8x8xf32>
    %89 = vector.extract_strided_slice %2 {offsets = [8, 8], sizes = [8, 8], strides = [1, 1]} : vector<16x96xf32> to vector<8x8xf32>
    %90 = vector.extract_strided_slice %2 {offsets = [8, 40], sizes = [8, 8], strides = [1, 1]} : vector<16x96xf32> to vector<8x8xf32>
    %91 = vector.extract_strided_slice %2 {offsets = [8, 72], sizes = [8, 8], strides = [1, 1]} : vector<16x96xf32> to vector<8x8xf32>
    %cst_28 = arith.constant dense<0.000000e+00> : vector<8x8xf32>
    %92 = tpu.matmul %89, %90, %cst_28 {dimension_numbers = #tpu.dot_dimension_numbers<[1], [1], [0], [0], [0, 0, 1, 0], [], []>} : vector<8x8xf32>, vector<8x8xf32>, vector<8x8xf32> -> vector<8x8xf32>
    %cst_29 = arith.constant 0.353553385 : f32
    %93 = vector.broadcast %cst_29 : f32 to vector<8x8xf32>
    %94 = arith.mulf %92, %93 : vector<8x8xf32>
    %cst_30 = arith.constant dense<0xFF800000> : vector<8xf32>
    %95 = vector.multi_reduction <maximumf>, %94, %cst_30 [1] : vector<8x8xf32> to vector<8xf32>
    %96 = vector.shape_cast %95 : vector<8xf32> to vector<8x1xf32>
    %97 = vector.broadcast %96 : vector<8x1xf32> to vector<8x8xf32>
    %98 = arith.subf %94, %97 : vector<8x8xf32>
    %99 = math.exp %98 : vector<8x8xf32>
    %cst_31 = arith.constant dense<0.000000e+00> : vector<8xf32>
    %100 = vector.multi_reduction <add>, %99, %cst_31 [1] : vector<8x8xf32> to vector<8xf32>
    %101 = vector.shape_cast %100 : vector<8xf32> to vector<8x1xf32>
    %102 = tpu.reciprocal %101 {approx = true} : vector<8x1xf32> -> vector<8x1xf32>
    %103 = vector.broadcast %102 : vector<8x1xf32> to vector<8x8xf32>
    %104 = arith.mulf %99, %103 : vector<8x8xf32>
    %cst_32 = arith.constant dense<0.000000e+00> : vector<8x8xf32>
    %105 = tpu.matmul %104, %91, %cst_32 {dimension_numbers = #tpu.dot_dimension_numbers<[1], [0], [0], [1], [0, 0, 1, 1], [], []>} : vector<8x8xf32>, vector<8x8xf32>, vector<8x8xf32> -> vector<8x8xf32>
    %106 = vector.extract_strided_slice %2 {offsets = [8, 16], sizes = [8, 8], strides = [1, 1]} : vector<16x96xf32> to vector<8x8xf32>
    %107 = vector.extract_strided_slice %2 {offsets = [8, 48], sizes = [8, 8], strides = [1, 1]} : vector<16x96xf32> to vector<8x8xf32>
    %108 = vector.extract_strided_slice %2 {offsets = [8, 80], sizes = [8, 8], strides = [1, 1]} : vector<16x96xf32> to vector<8x8xf32>
    %cst_33 = arith.constant dense<0.000000e+00> : vector<8x8xf32>
    %109 = tpu.matmul %106, %107, %cst_33 {dimension_numbers = #tpu.dot_dimension_numbers<[1], [1], [0], [0], [0, 0, 1, 0], [], []>} : vector<8x8xf32>, vector<8x8xf32>, vector<8x8xf32> -> vector<8x8xf32>
    %cst_34 = arith.constant 0.353553385 : f32
    %110 = vector.broadcast %cst_34 : f32 to vector<8x8xf32>
    %111 = arith.mulf %109, %110 : vector<8x8xf32>
    %cst_35 = arith.constant dense<0xFF800000> : vector<8xf32>
    %112 = vector.multi_reduction <maximumf>, %111, %cst_35 [1] : vector<8x8xf32> to vector<8xf32>
    %113 = vector.shape_cast %112 : vector<8xf32> to vector<8x1xf32>
    %114 = vector.broadcast %113 : vector<8x1xf32> to vector<8x8xf32>
    %115 = arith.subf %111, %114 : vector<8x8xf32>
    %116 = math.exp %115 : vector<8x8xf32>
    %cst_36 = arith.constant dense<0.000000e+00> : vector<8xf32>
    %117 = vector.multi_reduction <add>, %116, %cst_36 [1] : vector<8x8xf32> to vector<8xf32>
    %118 = vector.shape_cast %117 : vector<8xf32> to vector<8x1xf32>
    %119 = tpu.reciprocal %118 {approx = true} : vector<8x1xf32> -> vector<8x1xf32>
    %120 = vector.broadcast %119 : vector<8x1xf32> to vector<8x8xf32>
    %121 = arith.mulf %116, %120 : vector<8x8xf32>
    %cst_37 = arith.constant dense<0.000000e+00> : vector<8x8xf32>
    %122 = tpu.matmul %121, %108, %cst_37 {dimension_numbers = #tpu.dot_dimension_numbers<[1], [0], [0], [1], [0, 0, 1, 1], [], []>} : vector<8x8xf32>, vector<8x8xf32>, vector<8x8xf32> -> vector<8x8xf32>
    %123 = vector.extract_strided_slice %2 {offsets = [8, 24], sizes = [8, 8], strides = [1, 1]} : vector<16x96xf32> to vector<8x8xf32>
    %124 = vector.extract_strided_slice %2 {offsets = [8, 56], sizes = [8, 8], strides = [1, 1]} : vector<16x96xf32> to vector<8x8xf32>
    %125 = vector.extract_strided_slice %2 {offsets = [8, 88], sizes = [8, 8], strides = [1, 1]} : vector<16x96xf32> to vector<8x8xf32>
    %cst_38 = arith.constant dense<0.000000e+00> : vector<8x8xf32>
    %126 = tpu.matmul %123, %124, %cst_38 {dimension_numbers = #tpu.dot_dimension_numbers<[1], [1], [0], [0], [0, 0, 1, 0], [], []>} : vector<8x8xf32>, vector<8x8xf32>, vector<8x8xf32> -> vector<8x8xf32>
    %cst_39 = arith.constant 0.353553385 : f32
    %127 = vector.broadcast %cst_39 : f32 to vector<8x8xf32>
    %128 = arith.mulf %126, %127 : vector<8x8xf32>
    %cst_40 = arith.constant dense<0xFF800000> : vector<8xf32>
    %129 = vector.multi_reduction <maximumf>, %128, %cst_40 [1] : vector<8x8xf32> to vector<8xf32>
    %130 = vector.shape_cast %129 : vector<8xf32> to vector<8x1xf32>
    %131 = vector.broadcast %130 : vector<8x1xf32> to vector<8x8xf32>
    %132 = arith.subf %128, %131 : vector<8x8xf32>
    %133 = math.exp %132 : vector<8x8xf32>
    %cst_41 = arith.constant dense<0.000000e+00> : vector<8xf32>
    %134 = vector.multi_reduction <add>, %133, %cst_41 [1] : vector<8x8xf32> to vector<8xf32>
    %135 = vector.shape_cast %134 : vector<8xf32> to vector<8x1xf32>
    %136 = tpu.reciprocal %135 {approx = true} : vector<8x1xf32> -> vector<8x1xf32>
    %137 = vector.broadcast %136 : vector<8x1xf32> to vector<8x8xf32>
    %138 = arith.mulf %133, %137 : vector<8x8xf32>
    %cst_42 = arith.constant dense<0.000000e+00> : vector<8x8xf32>
    %139 = tpu.matmul %138, %125, %cst_42 {dimension_numbers = #tpu.dot_dimension_numbers<[1], [0], [0], [1], [0, 0, 1, 1], [], []>} : vector<8x8xf32>, vector<8x8xf32>, vector<8x8xf32> -> vector<8x8xf32>
    %140 = tpu.concatenate %88, %105, %122, %139 in 1 : vector<8x8xf32>, vector<8x8xf32>, vector<8x8xf32>, vector<8x8xf32> -> vector<8x32xf32>
    %141 = tpu.concatenate %71, %140 in 0 : vector<8x32xf32>, vector<8x32xf32> -> vector<16x32xf32>
    %c0_43 = arith.constant 0 : index
    %c0_44 = arith.constant 0 : index
    %142 = vector.load %arg2[%c0_43, %c0_44] : memref<32x32xf32, #tpu.memory_space<vmem>>, vector<32x32xf32>
    %cst_45 = arith.constant dense<0.000000e+00> : vector<16x32xf32>
    %143 = tpu.matmul %141, %142, %cst_45 {dimension_numbers = #tpu.dot_dimension_numbers<[1], [0], [0], [1], [0, 0, 1, 1], [], []>} : vector<16x32xf32>, vector<32x32xf32>, vector<16x32xf32> -> vector<16x32xf32>
    %144 = arith.addf %0, %143 : vector<16x32xf32>
    %c0_46 = arith.constant 0 : index
    %c0_47 = arith.constant 0 : index
    %145 = vector.load %arg3[%c0_46, %c0_47] : memref<1x32xf32, #tpu.memory_space<vmem>>, vector<1x32xf32>
    %146 = vector.broadcast %145 : vector<1x32xf32> to vector<16x32xf32>
    %147 = arith.mulf %144, %146 : vector<16x32xf32>
    %c0_48 = arith.constant 0 : index
    %c0_49 = arith.constant 0 : index
    %148 = vector.load %arg4[%c0_48, %c0_49] : memref<1x32xf32, #tpu.memory_space<vmem>>, vector<1x32xf32>
    %149 = vector.broadcast %148 : vector<1x32xf32> to vector<16x32xf32>
    %150 = arith.addf %147, %149 : vector<16x32xf32>
    %c0_50 = arith.constant 0 : index
    %c0_51 = arith.constant 0 : index
    %151 = vector.load %arg5[%c0_50, %c0_51] : memref<32x64xf32, #tpu.memory_space<vmem>>, vector<32x64xf32>
    %cst_52 = arith.constant dense<0.000000e+00> : vector<16x64xf32>
    %152 = tpu.matmul %150, %151, %cst_52 {dimension_numbers = #tpu.dot_dimension_numbers<[1], [0], [0], [1], [0, 0, 1, 1], [], []>} : vector<16x32xf32>, vector<32x64xf32>, vector<16x64xf32> -> vector<16x64xf32>
    %c0_53 = arith.constant 0 : index
    %c0_54 = arith.constant 0 : index
    %153 = vector.load %arg6[%c0_53, %c0_54] : memref<1x64xf32, #tpu.memory_space<vmem>>, vector<1x64xf32>
    %154 = vector.broadcast %153 : vector<1x64xf32> to vector<16x64xf32>
    %155 = arith.addf %152, %154 : vector<16x64xf32>
    %cst_55 = arith.constant 5.000000e-01 : f32
    %156 = vector.broadcast %cst_55 : f32 to vector<16x64xf32>
    %157 = arith.mulf %156, %155 : vector<16x64xf32>
    %cst_56 = arith.constant 0.707106769 : f32
    %158 = vector.broadcast %cst_56 : f32 to vector<16x64xf32>
    %159 = arith.mulf %155, %158 : vector<16x64xf32>
    %cst_57 = arith.constant 0.000000e+00 : f32
    %160 = vector.broadcast %cst_57 : f32 to vector<16x64xf32>
    %161 = arith.cmpf oge, %159, %160 : vector<16x64xf32>
    %cst_58 = arith.constant 1.000000e+00 : f32
    %cst_59 = arith.constant -1.000000e+00 : f32
    %162 = vector.broadcast %cst_58 : f32 to vector<16x64xf32>
    %163 = vector.broadcast %cst_59 : f32 to vector<16x64xf32>
    %164 = arith.select %161, %162, %163 : vector<16x64xi1>, vector<16x64xf32>
    %165 = math.absf %159 : vector<16x64xf32>
    %cst_60 = arith.constant 0.327591091 : f32
    %166 = vector.broadcast %cst_60 : f32 to vector<16x64xf32>
    %167 = arith.mulf %166, %165 : vector<16x64xf32>
    %cst_61 = arith.constant 1.000000e+00 : f32
    %168 = vector.broadcast %cst_61 : f32 to vector<16x64xf32>
    %169 = arith.addf %168, %167 : vector<16x64xf32>
    %cst_62 = arith.constant 1.000000e+00 : f32
    %170 = vector.broadcast %cst_62 : f32 to vector<16x64xf32>
    %171 = arith.divf %170, %169 : vector<16x64xf32>
    %cst_63 = arith.constant 1.06140542 : f32
    %172 = vector.broadcast %cst_63 : f32 to vector<16x64xf32>
    %173 = arith.mulf %171, %172 : vector<16x64xf32>
    %cst_64 = arith.constant -1.45315206 : f32
    %174 = vector.broadcast %cst_64 : f32 to vector<16x64xf32>
    %175 = arith.addf %174, %173 : vector<16x64xf32>
    %176 = arith.mulf %171, %175 : vector<16x64xf32>
    %cst_65 = arith.constant 1.42141378 : f32
    %177 = vector.broadcast %cst_65 : f32 to vector<16x64xf32>
    %178 = arith.addf %177, %176 : vector<16x64xf32>
    %179 = arith.mulf %171, %178 : vector<16x64xf32>
    %cst_66 = arith.constant -0.284496725 : f32
    %180 = vector.broadcast %cst_66 : f32 to vector<16x64xf32>
    %181 = arith.addf %180, %179 : vector<16x64xf32>
    %182 = arith.mulf %171, %181 : vector<16x64xf32>
    %cst_67 = arith.constant 0.254829586 : f32
    %183 = vector.broadcast %cst_67 : f32 to vector<16x64xf32>
    %184 = arith.addf %183, %182 : vector<16x64xf32>
    %185 = arith.mulf %171, %184 : vector<16x64xf32>
    %cst_68 = arith.constant 0.000000e+00 : f32
    %186 = vector.broadcast %cst_68 : f32 to vector<16x64xf32>
    %187 = arith.subf %186, %165 : vector<16x64xf32>
    %188 = arith.mulf %187, %165 : vector<16x64xf32>
    %189 = math.exp %188 : vector<16x64xf32>
    %190 = arith.mulf %185, %189 : vector<16x64xf32>
    %cst_69 = arith.constant 1.000000e+00 : f32
    %191 = vector.broadcast %cst_69 : f32 to vector<16x64xf32>
    %192 = arith.subf %191, %190 : vector<16x64xf32>
    %193 = arith.mulf %164, %192 : vector<16x64xf32>
    %cst_70 = arith.constant 1.000000e+00 : f32
    %194 = vector.broadcast %cst_70 : f32 to vector<16x64xf32>
    %195 = arith.addf %194, %193 : vector<16x64xf32>
    %196 = arith.mulf %157, %195 : vector<16x64xf32>
    %c0_71 = arith.constant 0 : index
    %c0_72 = arith.constant 0 : index
    %197 = vector.load %arg7[%c0_71, %c0_72] : memref<64x32xf32, #tpu.memory_space<vmem>>, vector<64x32xf32>
    %cst_73 = arith.constant dense<0.000000e+00> : vector<16x32xf32>
    %198 = tpu.matmul %196, %197, %cst_73 {dimension_numbers = #tpu.dot_dimension_numbers<[1], [0], [0], [1], [0, 0, 1, 1], [], []>} : vector<16x64xf32>, vector<64x32xf32>, vector<16x32xf32> -> vector<16x32xf32>
    %c0_74 = arith.constant 0 : index
    %c0_75 = arith.constant 0 : index
    %199 = vector.load %arg8[%c0_74, %c0_75] : memref<1x32xf32, #tpu.memory_space<vmem>>, vector<1x32xf32>
    %200 = vector.broadcast %199 : vector<1x32xf32> to vector<16x32xf32>
    %201 = arith.addf %198, %200 : vector<16x32xf32>
    %202 = arith.addf %150, %201 : vector<16x32xf32>
    %c0_76 = arith.constant 0 : index
    %c0_77 = arith.constant 0 : index
    %203 = vector.load %arg9[%c0_76, %c0_77] : memref<1x32xf32, #tpu.memory_space<vmem>>, vector<1x32xf32>
    %204 = vector.broadcast %203 : vector<1x32xf32> to vector<16x32xf32>
    %205 = arith.mulf %202, %204 : vector<16x32xf32>
    %c0_78 = arith.constant 0 : index
    %c0_79 = arith.constant 0 : index
    %206 = vector.load %arg10[%c0_78, %c0_79] : memref<1x32xf32, #tpu.memory_space<vmem>>, vector<1x32xf32>
    %207 = vector.broadcast %206 : vector<1x32xf32> to vector<16x32xf32>
    %208 = arith.addf %205, %207 : vector<16x32xf32>
    %c0_80 = arith.constant 0 : index
    %c0_81 = arith.constant 0 : index
    %209 = vector.load %arg11[%c0_80, %c0_81] : memref<16x32xf32, #tpu.memory_space<vmem>>, vector<16x32xf32>
    tpu.vector_store %arg11[%c0_80, %c0_81], %208 {strides = array<i32>} : memref<16x32xf32, #tpu.memory_space<vmem>>, vector<16x32xf32>,
    return
  }
}

module attributes {stable_mosaic.version = 11 : i64} {
  func.func @_head_kernel(%arg0: memref<8x2x32xf32, #tpu.memory_space<vmem>>, %arg1: memref<8x32x3xf32, #tpu.memory_space<vmem>>, %arg2: memref<1x3xf32, #tpu.memory_space<vmem>>, %arg3: memref<2x3xf32, #tpu.memory_space<vmem>>) attributes {dimension_semantics = [], scalar_prefetch = 0 : i64, scratch_operands = 0 : i64, tpu.core_type = #tpu.core_type<tc>} {
    %cst = arith.constant 0.000000e+00 : f32
    %0 = vector.broadcast %cst : f32 to vector<2x3xf32>
    %c0 = arith.constant 0 : index
    %c0_0 = arith.constant 0 : index
    %c0_1 = arith.constant 0 : index
    %1 = vector.load %arg0[%c0, %c0_0, %c0_1] : memref<8x2x32xf32, #tpu.memory_space<vmem>>, vector<1x2x32xf32>
    %2 = vector.shape_cast %1 : vector<1x2x32xf32> to vector<2x32xf32>
    %cst_2 = arith.constant 5.000000e-01 : f32
    %3 = vector.broadcast %cst_2 : f32 to vector<2x32xf32>
    %4 = arith.mulf %3, %2 : vector<2x32xf32>
    %cst_3 = arith.constant 0.707106769 : f32
    %5 = vector.broadcast %cst_3 : f32 to vector<2x32xf32>
    %6 = arith.mulf %2, %5 : vector<2x32xf32>
    %cst_4 = arith.constant 0.000000e+00 : f32
    %7 = vector.broadcast %cst_4 : f32 to vector<2x32xf32>
    %8 = arith.cmpf oge, %6, %7 : vector<2x32xf32>
    %cst_5 = arith.constant 1.000000e+00 : f32
    %cst_6 = arith.constant -1.000000e+00 : f32
    %9 = vector.broadcast %cst_5 : f32 to vector<2x32xf32>
    %10 = vector.broadcast %cst_6 : f32 to vector<2x32xf32>
    %11 = arith.select %8, %9, %10 : vector<2x32xi1>, vector<2x32xf32>
    %12 = math.absf %6 : vector<2x32xf32>
    %cst_7 = arith.constant 0.327591091 : f32
    %13 = vector.broadcast %cst_7 : f32 to vector<2x32xf32>
    %14 = arith.mulf %13, %12 : vector<2x32xf32>
    %cst_8 = arith.constant 1.000000e+00 : f32
    %15 = vector.broadcast %cst_8 : f32 to vector<2x32xf32>
    %16 = arith.addf %15, %14 : vector<2x32xf32>
    %cst_9 = arith.constant 1.000000e+00 : f32
    %17 = vector.broadcast %cst_9 : f32 to vector<2x32xf32>
    %18 = arith.divf %17, %16 : vector<2x32xf32>
    %cst_10 = arith.constant 1.06140542 : f32
    %19 = vector.broadcast %cst_10 : f32 to vector<2x32xf32>
    %20 = arith.mulf %18, %19 : vector<2x32xf32>
    %cst_11 = arith.constant -1.45315206 : f32
    %21 = vector.broadcast %cst_11 : f32 to vector<2x32xf32>
    %22 = arith.addf %21, %20 : vector<2x32xf32>
    %23 = arith.mulf %18, %22 : vector<2x32xf32>
    %cst_12 = arith.constant 1.42141378 : f32
    %24 = vector.broadcast %cst_12 : f32 to vector<2x32xf32>
    %25 = arith.addf %24, %23 : vector<2x32xf32>
    %26 = arith.mulf %18, %25 : vector<2x32xf32>
    %cst_13 = arith.constant -0.284496725 : f32
    %27 = vector.broadcast %cst_13 : f32 to vector<2x32xf32>
    %28 = arith.addf %27, %26 : vector<2x32xf32>
    %29 = arith.mulf %18, %28 : vector<2x32xf32>
    %cst_14 = arith.constant 0.254829586 : f32
    %30 = vector.broadcast %cst_14 : f32 to vector<2x32xf32>
    %31 = arith.addf %30, %29 : vector<2x32xf32>
    %32 = arith.mulf %18, %31 : vector<2x32xf32>
    %cst_15 = arith.constant 0.000000e+00 : f32
    %33 = vector.broadcast %cst_15 : f32 to vector<2x32xf32>
    %34 = arith.subf %33, %12 : vector<2x32xf32>
    %35 = arith.mulf %34, %12 : vector<2x32xf32>
    %36 = math.exp %35 : vector<2x32xf32>
    %37 = arith.mulf %32, %36 : vector<2x32xf32>
    %cst_16 = arith.constant 1.000000e+00 : f32
    %38 = vector.broadcast %cst_16 : f32 to vector<2x32xf32>
    %39 = arith.subf %38, %37 : vector<2x32xf32>
    %40 = arith.mulf %11, %39 : vector<2x32xf32>
    %cst_17 = arith.constant 1.000000e+00 : f32
    %41 = vector.broadcast %cst_17 : f32 to vector<2x32xf32>
    %42 = arith.addf %41, %40 : vector<2x32xf32>
    %43 = arith.mulf %4, %42 : vector<2x32xf32>
    %c0_18 = arith.constant 0 : index
    %c0_19 = arith.constant 0 : index
    %c0_20 = arith.constant 0 : index
    %44 = vector.load %arg1[%c0_18, %c0_19, %c0_20] : memref<8x32x3xf32, #tpu.memory_space<vmem>>, vector<1x32x3xf32>
    %45 = vector.shape_cast %44 : vector<1x32x3xf32> to vector<32x3xf32>
    %cst_21 = arith.constant dense<0.000000e+00> : vector<2x3xf32>
    %46 = tpu.matmul %43, %45, %cst_21 {dimension_numbers = #tpu.dot_dimension_numbers<[1], [0], [0], [1], [0, 0, 1, 1], [], []>} : vector<2x32xf32>, vector<32x3xf32>, vector<2x3xf32> -> vector<2x3xf32>
    %47 = arith.addf %0, %46 : vector<2x3xf32>
    %c1 = arith.constant 1 : index
    %c0_22 = arith.constant 0 : index
    %c0_23 = arith.constant 0 : index
    %48 = vector.load %arg0[%c1, %c0_22, %c0_23] : memref<8x2x32xf32, #tpu.memory_space<vmem>>, vector<1x2x32xf32>
    %49 = vector.shape_cast %48 : vector<1x2x32xf32> to vector<2x32xf32>
    %cst_24 = arith.constant 5.000000e-01 : f32
    %50 = vector.broadcast %cst_24 : f32 to vector<2x32xf32>
    %51 = arith.mulf %50, %49 : vector<2x32xf32>
    %cst_25 = arith.constant 0.707106769 : f32
    %52 = vector.broadcast %cst_25 : f32 to vector<2x32xf32>
    %53 = arith.mulf %49, %52 : vector<2x32xf32>
    %cst_26 = arith.constant 0.000000e+00 : f32
    %54 = vector.broadcast %cst_26 : f32 to vector<2x32xf32>
    %55 = arith.cmpf oge, %53, %54 : vector<2x32xf32>
    %cst_27 = arith.constant 1.000000e+00 : f32
    %cst_28 = arith.constant -1.000000e+00 : f32
    %56 = vector.broadcast %cst_27 : f32 to vector<2x32xf32>
    %57 = vector.broadcast %cst_28 : f32 to vector<2x32xf32>
    %58 = arith.select %55, %56, %57 : vector<2x32xi1>, vector<2x32xf32>
    %59 = math.absf %53 : vector<2x32xf32>
    %cst_29 = arith.constant 0.327591091 : f32
    %60 = vector.broadcast %cst_29 : f32 to vector<2x32xf32>
    %61 = arith.mulf %60, %59 : vector<2x32xf32>
    %cst_30 = arith.constant 1.000000e+00 : f32
    %62 = vector.broadcast %cst_30 : f32 to vector<2x32xf32>
    %63 = arith.addf %62, %61 : vector<2x32xf32>
    %cst_31 = arith.constant 1.000000e+00 : f32
    %64 = vector.broadcast %cst_31 : f32 to vector<2x32xf32>
    %65 = arith.divf %64, %63 : vector<2x32xf32>
    %cst_32 = arith.constant 1.06140542 : f32
    %66 = vector.broadcast %cst_32 : f32 to vector<2x32xf32>
    %67 = arith.mulf %65, %66 : vector<2x32xf32>
    %cst_33 = arith.constant -1.45315206 : f32
    %68 = vector.broadcast %cst_33 : f32 to vector<2x32xf32>
    %69 = arith.addf %68, %67 : vector<2x32xf32>
    %70 = arith.mulf %65, %69 : vector<2x32xf32>
    %cst_34 = arith.constant 1.42141378 : f32
    %71 = vector.broadcast %cst_34 : f32 to vector<2x32xf32>
    %72 = arith.addf %71, %70 : vector<2x32xf32>
    %73 = arith.mulf %65, %72 : vector<2x32xf32>
    %cst_35 = arith.constant -0.284496725 : f32
    %74 = vector.broadcast %cst_35 : f32 to vector<2x32xf32>
    %75 = arith.addf %74, %73 : vector<2x32xf32>
    %76 = arith.mulf %65, %75 : vector<2x32xf32>
    %cst_36 = arith.constant 0.254829586 : f32
    %77 = vector.broadcast %cst_36 : f32 to vector<2x32xf32>
    %78 = arith.addf %77, %76 : vector<2x32xf32>
    %79 = arith.mulf %65, %78 : vector<2x32xf32>
    %cst_37 = arith.constant 0.000000e+00 : f32
    %80 = vector.broadcast %cst_37 : f32 to vector<2x32xf32>
    %81 = arith.subf %80, %59 : vector<2x32xf32>
    %82 = arith.mulf %81, %59 : vector<2x32xf32>
    %83 = math.exp %82 : vector<2x32xf32>
    %84 = arith.mulf %79, %83 : vector<2x32xf32>
    %cst_38 = arith.constant 1.000000e+00 : f32
    %85 = vector.broadcast %cst_38 : f32 to vector<2x32xf32>
    %86 = arith.subf %85, %84 : vector<2x32xf32>
    %87 = arith.mulf %58, %86 : vector<2x32xf32>
    %cst_39 = arith.constant 1.000000e+00 : f32
    %88 = vector.broadcast %cst_39 : f32 to vector<2x32xf32>
    %89 = arith.addf %88, %87 : vector<2x32xf32>
    %90 = arith.mulf %51, %89 : vector<2x32xf32>
    %c1_40 = arith.constant 1 : index
    %c0_41 = arith.constant 0 : index
    %c0_42 = arith.constant 0 : index
    %91 = vector.load %arg1[%c1_40, %c0_41, %c0_42] : memref<8x32x3xf32, #tpu.memory_space<vmem>>, vector<1x32x3xf32>
    %92 = vector.shape_cast %91 : vector<1x32x3xf32> to vector<32x3xf32>
    %cst_43 = arith.constant dense<0.000000e+00> : vector<2x3xf32>
    %93 = tpu.matmul %90, %92, %cst_43 {dimension_numbers = #tpu.dot_dimension_numbers<[1], [0], [0], [1], [0, 0, 1, 1], [], []>} : vector<2x32xf32>, vector<32x3xf32>, vector<2x3xf32> -> vector<2x3xf32>
    %94 = arith.addf %47, %93 : vector<2x3xf32>
    %c2 = arith.constant 2 : index
    %c0_44 = arith.constant 0 : index
    %c0_45 = arith.constant 0 : index
    %95 = vector.load %arg0[%c2, %c0_44, %c0_45] : memref<8x2x32xf32, #tpu.memory_space<vmem>>, vector<1x2x32xf32>
    %96 = vector.shape_cast %95 : vector<1x2x32xf32> to vector<2x32xf32>
    %cst_46 = arith.constant 5.000000e-01 : f32
    %97 = vector.broadcast %cst_46 : f32 to vector<2x32xf32>
    %98 = arith.mulf %97, %96 : vector<2x32xf32>
    %cst_47 = arith.constant 0.707106769 : f32
    %99 = vector.broadcast %cst_47 : f32 to vector<2x32xf32>
    %100 = arith.mulf %96, %99 : vector<2x32xf32>
    %cst_48 = arith.constant 0.000000e+00 : f32
    %101 = vector.broadcast %cst_48 : f32 to vector<2x32xf32>
    %102 = arith.cmpf oge, %100, %101 : vector<2x32xf32>
    %cst_49 = arith.constant 1.000000e+00 : f32
    %cst_50 = arith.constant -1.000000e+00 : f32
    %103 = vector.broadcast %cst_49 : f32 to vector<2x32xf32>
    %104 = vector.broadcast %cst_50 : f32 to vector<2x32xf32>
    %105 = arith.select %102, %103, %104 : vector<2x32xi1>, vector<2x32xf32>
    %106 = math.absf %100 : vector<2x32xf32>
    %cst_51 = arith.constant 0.327591091 : f32
    %107 = vector.broadcast %cst_51 : f32 to vector<2x32xf32>
    %108 = arith.mulf %107, %106 : vector<2x32xf32>
    %cst_52 = arith.constant 1.000000e+00 : f32
    %109 = vector.broadcast %cst_52 : f32 to vector<2x32xf32>
    %110 = arith.addf %109, %108 : vector<2x32xf32>
    %cst_53 = arith.constant 1.000000e+00 : f32
    %111 = vector.broadcast %cst_53 : f32 to vector<2x32xf32>
    %112 = arith.divf %111, %110 : vector<2x32xf32>
    %cst_54 = arith.constant 1.06140542 : f32
    %113 = vector.broadcast %cst_54 : f32 to vector<2x32xf32>
    %114 = arith.mulf %112, %113 : vector<2x32xf32>
    %cst_55 = arith.constant -1.45315206 : f32
    %115 = vector.broadcast %cst_55 : f32 to vector<2x32xf32>
    %116 = arith.addf %115, %114 : vector<2x32xf32>
    %117 = arith.mulf %112, %116 : vector<2x32xf32>
    %cst_56 = arith.constant 1.42141378 : f32
    %118 = vector.broadcast %cst_56 : f32 to vector<2x32xf32>
    %119 = arith.addf %118, %117 : vector<2x32xf32>
    %120 = arith.mulf %112, %119 : vector<2x32xf32>
    %cst_57 = arith.constant -0.284496725 : f32
    %121 = vector.broadcast %cst_57 : f32 to vector<2x32xf32>
    %122 = arith.addf %121, %120 : vector<2x32xf32>
    %123 = arith.mulf %112, %122 : vector<2x32xf32>
    %cst_58 = arith.constant 0.254829586 : f32
    %124 = vector.broadcast %cst_58 : f32 to vector<2x32xf32>
    %125 = arith.addf %124, %123 : vector<2x32xf32>
    %126 = arith.mulf %112, %125 : vector<2x32xf32>
    %cst_59 = arith.constant 0.000000e+00 : f32
    %127 = vector.broadcast %cst_59 : f32 to vector<2x32xf32>
    %128 = arith.subf %127, %106 : vector<2x32xf32>
    %129 = arith.mulf %128, %106 : vector<2x32xf32>
    %130 = math.exp %129 : vector<2x32xf32>
    %131 = arith.mulf %126, %130 : vector<2x32xf32>
    %cst_60 = arith.constant 1.000000e+00 : f32
    %132 = vector.broadcast %cst_60 : f32 to vector<2x32xf32>
    %133 = arith.subf %132, %131 : vector<2x32xf32>
    %134 = arith.mulf %105, %133 : vector<2x32xf32>
    %cst_61 = arith.constant 1.000000e+00 : f32
    %135 = vector.broadcast %cst_61 : f32 to vector<2x32xf32>
    %136 = arith.addf %135, %134 : vector<2x32xf32>
    %137 = arith.mulf %98, %136 : vector<2x32xf32>
    %c2_62 = arith.constant 2 : index
    %c0_63 = arith.constant 0 : index
    %c0_64 = arith.constant 0 : index
    %138 = vector.load %arg1[%c2_62, %c0_63, %c0_64] : memref<8x32x3xf32, #tpu.memory_space<vmem>>, vector<1x32x3xf32>
    %139 = vector.shape_cast %138 : vector<1x32x3xf32> to vector<32x3xf32>
    %cst_65 = arith.constant dense<0.000000e+00> : vector<2x3xf32>
    %140 = tpu.matmul %137, %139, %cst_65 {dimension_numbers = #tpu.dot_dimension_numbers<[1], [0], [0], [1], [0, 0, 1, 1], [], []>} : vector<2x32xf32>, vector<32x3xf32>, vector<2x3xf32> -> vector<2x3xf32>
    %141 = arith.addf %94, %140 : vector<2x3xf32>
    %c3 = arith.constant 3 : index
    %c0_66 = arith.constant 0 : index
    %c0_67 = arith.constant 0 : index
    %142 = vector.load %arg0[%c3, %c0_66, %c0_67] : memref<8x2x32xf32, #tpu.memory_space<vmem>>, vector<1x2x32xf32>
    %143 = vector.shape_cast %142 : vector<1x2x32xf32> to vector<2x32xf32>
    %cst_68 = arith.constant 5.000000e-01 : f32
    %144 = vector.broadcast %cst_68 : f32 to vector<2x32xf32>
    %145 = arith.mulf %144, %143 : vector<2x32xf32>
    %cst_69 = arith.constant 0.707106769 : f32
    %146 = vector.broadcast %cst_69 : f32 to vector<2x32xf32>
    %147 = arith.mulf %143, %146 : vector<2x32xf32>
    %cst_70 = arith.constant 0.000000e+00 : f32
    %148 = vector.broadcast %cst_70 : f32 to vector<2x32xf32>
    %149 = arith.cmpf oge, %147, %148 : vector<2x32xf32>
    %cst_71 = arith.constant 1.000000e+00 : f32
    %cst_72 = arith.constant -1.000000e+00 : f32
    %150 = vector.broadcast %cst_71 : f32 to vector<2x32xf32>
    %151 = vector.broadcast %cst_72 : f32 to vector<2x32xf32>
    %152 = arith.select %149, %150, %151 : vector<2x32xi1>, vector<2x32xf32>
    %153 = math.absf %147 : vector<2x32xf32>
    %cst_73 = arith.constant 0.327591091 : f32
    %154 = vector.broadcast %cst_73 : f32 to vector<2x32xf32>
    %155 = arith.mulf %154, %153 : vector<2x32xf32>
    %cst_74 = arith.constant 1.000000e+00 : f32
    %156 = vector.broadcast %cst_74 : f32 to vector<2x32xf32>
    %157 = arith.addf %156, %155 : vector<2x32xf32>
    %cst_75 = arith.constant 1.000000e+00 : f32
    %158 = vector.broadcast %cst_75 : f32 to vector<2x32xf32>
    %159 = arith.divf %158, %157 : vector<2x32xf32>
    %cst_76 = arith.constant 1.06140542 : f32
    %160 = vector.broadcast %cst_76 : f32 to vector<2x32xf32>
    %161 = arith.mulf %159, %160 : vector<2x32xf32>
    %cst_77 = arith.constant -1.45315206 : f32
    %162 = vector.broadcast %cst_77 : f32 to vector<2x32xf32>
    %163 = arith.addf %162, %161 : vector<2x32xf32>
    %164 = arith.mulf %159, %163 : vector<2x32xf32>
    %cst_78 = arith.constant 1.42141378 : f32
    %165 = vector.broadcast %cst_78 : f32 to vector<2x32xf32>
    %166 = arith.addf %165, %164 : vector<2x32xf32>
    %167 = arith.mulf %159, %166 : vector<2x32xf32>
    %cst_79 = arith.constant -0.284496725 : f32
    %168 = vector.broadcast %cst_79 : f32 to vector<2x32xf32>
    %169 = arith.addf %168, %167 : vector<2x32xf32>
    %170 = arith.mulf %159, %169 : vector<2x32xf32>
    %cst_80 = arith.constant 0.254829586 : f32
    %171 = vector.broadcast %cst_80 : f32 to vector<2x32xf32>
    %172 = arith.addf %171, %170 : vector<2x32xf32>
    %173 = arith.mulf %159, %172 : vector<2x32xf32>
    %cst_81 = arith.constant 0.000000e+00 : f32
    %174 = vector.broadcast %cst_81 : f32 to vector<2x32xf32>
    %175 = arith.subf %174, %153 : vector<2x32xf32>
    %176 = arith.mulf %175, %153 : vector<2x32xf32>
    %177 = math.exp %176 : vector<2x32xf32>
    %178 = arith.mulf %173, %177 : vector<2x32xf32>
    %cst_82 = arith.constant 1.000000e+00 : f32
    %179 = vector.broadcast %cst_82 : f32 to vector<2x32xf32>
    %180 = arith.subf %179, %178 : vector<2x32xf32>
    %181 = arith.mulf %152, %180 : vector<2x32xf32>
    %cst_83 = arith.constant 1.000000e+00 : f32
    %182 = vector.broadcast %cst_83 : f32 to vector<2x32xf32>
    %183 = arith.addf %182, %181 : vector<2x32xf32>
    %184 = arith.mulf %145, %183 : vector<2x32xf32>
    %c3_84 = arith.constant 3 : index
    %c0_85 = arith.constant 0 : index
    %c0_86 = arith.constant 0 : index
    %185 = vector.load %arg1[%c3_84, %c0_85, %c0_86] : memref<8x32x3xf32, #tpu.memory_space<vmem>>, vector<1x32x3xf32>
    %186 = vector.shape_cast %185 : vector<1x32x3xf32> to vector<32x3xf32>
    %cst_87 = arith.constant dense<0.000000e+00> : vector<2x3xf32>
    %187 = tpu.matmul %184, %186, %cst_87 {dimension_numbers = #tpu.dot_dimension_numbers<[1], [0], [0], [1], [0, 0, 1, 1], [], []>} : vector<2x32xf32>, vector<32x3xf32>, vector<2x3xf32> -> vector<2x3xf32>
    %188 = arith.addf %141, %187 : vector<2x3xf32>
    %c4 = arith.constant 4 : index
    %c0_88 = arith.constant 0 : index
    %c0_89 = arith.constant 0 : index
    %189 = vector.load %arg0[%c4, %c0_88, %c0_89] : memref<8x2x32xf32, #tpu.memory_space<vmem>>, vector<1x2x32xf32>
    %190 = vector.shape_cast %189 : vector<1x2x32xf32> to vector<2x32xf32>
    %cst_90 = arith.constant 5.000000e-01 : f32
    %191 = vector.broadcast %cst_90 : f32 to vector<2x32xf32>
    %192 = arith.mulf %191, %190 : vector<2x32xf32>
    %cst_91 = arith.constant 0.707106769 : f32
    %193 = vector.broadcast %cst_91 : f32 to vector<2x32xf32>
    %194 = arith.mulf %190, %193 : vector<2x32xf32>
    %cst_92 = arith.constant 0.000000e+00 : f32
    %195 = vector.broadcast %cst_92 : f32 to vector<2x32xf32>
    %196 = arith.cmpf oge, %194, %195 : vector<2x32xf32>
    %cst_93 = arith.constant 1.000000e+00 : f32
    %cst_94 = arith.constant -1.000000e+00 : f32
    %197 = vector.broadcast %cst_93 : f32 to vector<2x32xf32>
    %198 = vector.broadcast %cst_94 : f32 to vector<2x32xf32>
    %199 = arith.select %196, %197, %198 : vector<2x32xi1>, vector<2x32xf32>
    %200 = math.absf %194 : vector<2x32xf32>
    %cst_95 = arith.constant 0.327591091 : f32
    %201 = vector.broadcast %cst_95 : f32 to vector<2x32xf32>
    %202 = arith.mulf %201, %200 : vector<2x32xf32>
    %cst_96 = arith.constant 1.000000e+00 : f32
    %203 = vector.broadcast %cst_96 : f32 to vector<2x32xf32>
    %204 = arith.addf %203, %202 : vector<2x32xf32>
    %cst_97 = arith.constant 1.000000e+00 : f32
    %205 = vector.broadcast %cst_97 : f32 to vector<2x32xf32>
    %206 = arith.divf %205, %204 : vector<2x32xf32>
    %cst_98 = arith.constant 1.06140542 : f32
    %207 = vector.broadcast %cst_98 : f32 to vector<2x32xf32>
    %208 = arith.mulf %206, %207 : vector<2x32xf32>
    %cst_99 = arith.constant -1.45315206 : f32
    %209 = vector.broadcast %cst_99 : f32 to vector<2x32xf32>
    %210 = arith.addf %209, %208 : vector<2x32xf32>
    %211 = arith.mulf %206, %210 : vector<2x32xf32>
    %cst_100 = arith.constant 1.42141378 : f32
    %212 = vector.broadcast %cst_100 : f32 to vector<2x32xf32>
    %213 = arith.addf %212, %211 : vector<2x32xf32>
    %214 = arith.mulf %206, %213 : vector<2x32xf32>
    %cst_101 = arith.constant -0.284496725 : f32
    %215 = vector.broadcast %cst_101 : f32 to vector<2x32xf32>
    %216 = arith.addf %215, %214 : vector<2x32xf32>
    %217 = arith.mulf %206, %216 : vector<2x32xf32>
    %cst_102 = arith.constant 0.254829586 : f32
    %218 = vector.broadcast %cst_102 : f32 to vector<2x32xf32>
    %219 = arith.addf %218, %217 : vector<2x32xf32>
    %220 = arith.mulf %206, %219 : vector<2x32xf32>
    %cst_103 = arith.constant 0.000000e+00 : f32
    %221 = vector.broadcast %cst_103 : f32 to vector<2x32xf32>
    %222 = arith.subf %221, %200 : vector<2x32xf32>
    %223 = arith.mulf %222, %200 : vector<2x32xf32>
    %224 = math.exp %223 : vector<2x32xf32>
    %225 = arith.mulf %220, %224 : vector<2x32xf32>
    %cst_104 = arith.constant 1.000000e+00 : f32
    %226 = vector.broadcast %cst_104 : f32 to vector<2x32xf32>
    %227 = arith.subf %226, %225 : vector<2x32xf32>
    %228 = arith.mulf %199, %227 : vector<2x32xf32>
    %cst_105 = arith.constant 1.000000e+00 : f32
    %229 = vector.broadcast %cst_105 : f32 to vector<2x32xf32>
    %230 = arith.addf %229, %228 : vector<2x32xf32>
    %231 = arith.mulf %192, %230 : vector<2x32xf32>
    %c4_106 = arith.constant 4 : index
    %c0_107 = arith.constant 0 : index
    %c0_108 = arith.constant 0 : index
    %232 = vector.load %arg1[%c4_106, %c0_107, %c0_108] : memref<8x32x3xf32, #tpu.memory_space<vmem>>, vector<1x32x3xf32>
    %233 = vector.shape_cast %232 : vector<1x32x3xf32> to vector<32x3xf32>
    %cst_109 = arith.constant dense<0.000000e+00> : vector<2x3xf32>
    %234 = tpu.matmul %231, %233, %cst_109 {dimension_numbers = #tpu.dot_dimension_numbers<[1], [0], [0], [1], [0, 0, 1, 1], [], []>} : vector<2x32xf32>, vector<32x3xf32>, vector<2x3xf32> -> vector<2x3xf32>
    %235 = arith.addf %188, %234 : vector<2x3xf32>
    %c5 = arith.constant 5 : index
    %c0_110 = arith.constant 0 : index
    %c0_111 = arith.constant 0 : index
    %236 = vector.load %arg0[%c5, %c0_110, %c0_111] : memref<8x2x32xf32, #tpu.memory_space<vmem>>, vector<1x2x32xf32>
    %237 = vector.shape_cast %236 : vector<1x2x32xf32> to vector<2x32xf32>
    %cst_112 = arith.constant 5.000000e-01 : f32
    %238 = vector.broadcast %cst_112 : f32 to vector<2x32xf32>
    %239 = arith.mulf %238, %237 : vector<2x32xf32>
    %cst_113 = arith.constant 0.707106769 : f32
    %240 = vector.broadcast %cst_113 : f32 to vector<2x32xf32>
    %241 = arith.mulf %237, %240 : vector<2x32xf32>
    %cst_114 = arith.constant 0.000000e+00 : f32
    %242 = vector.broadcast %cst_114 : f32 to vector<2x32xf32>
    %243 = arith.cmpf oge, %241, %242 : vector<2x32xf32>
    %cst_115 = arith.constant 1.000000e+00 : f32
    %cst_116 = arith.constant -1.000000e+00 : f32
    %244 = vector.broadcast %cst_115 : f32 to vector<2x32xf32>
    %245 = vector.broadcast %cst_116 : f32 to vector<2x32xf32>
    %246 = arith.select %243, %244, %245 : vector<2x32xi1>, vector<2x32xf32>
    %247 = math.absf %241 : vector<2x32xf32>
    %cst_117 = arith.constant 0.327591091 : f32
    %248 = vector.broadcast %cst_117 : f32 to vector<2x32xf32>
    %249 = arith.mulf %248, %247 : vector<2x32xf32>
    %cst_118 = arith.constant 1.000000e+00 : f32
    %250 = vector.broadcast %cst_118 : f32 to vector<2x32xf32>
    %251 = arith.addf %250, %249 : vector<2x32xf32>
    %cst_119 = arith.constant 1.000000e+00 : f32
    %252 = vector.broadcast %cst_119 : f32 to vector<2x32xf32>
    %253 = arith.divf %252, %251 : vector<2x32xf32>
    %cst_120 = arith.constant 1.06140542 : f32
    %254 = vector.broadcast %cst_120 : f32 to vector<2x32xf32>
    %255 = arith.mulf %253, %254 : vector<2x32xf32>
    %cst_121 = arith.constant -1.45315206 : f32
    %256 = vector.broadcast %cst_121 : f32 to vector<2x32xf32>
    %257 = arith.addf %256, %255 : vector<2x32xf32>
    %258 = arith.mulf %253, %257 : vector<2x32xf32>
    %cst_122 = arith.constant 1.42141378 : f32
    %259 = vector.broadcast %cst_122 : f32 to vector<2x32xf32>
    %260 = arith.addf %259, %258 : vector<2x32xf32>
    %261 = arith.mulf %253, %260 : vector<2x32xf32>
    %cst_123 = arith.constant -0.284496725 : f32
    %262 = vector.broadcast %cst_123 : f32 to vector<2x32xf32>
    %263 = arith.addf %262, %261 : vector<2x32xf32>
    %264 = arith.mulf %253, %263 : vector<2x32xf32>
    %cst_124 = arith.constant 0.254829586 : f32
    %265 = vector.broadcast %cst_124 : f32 to vector<2x32xf32>
    %266 = arith.addf %265, %264 : vector<2x32xf32>
    %267 = arith.mulf %253, %266 : vector<2x32xf32>
    %cst_125 = arith.constant 0.000000e+00 : f32
    %268 = vector.broadcast %cst_125 : f32 to vector<2x32xf32>
    %269 = arith.subf %268, %247 : vector<2x32xf32>
    %270 = arith.mulf %269, %247 : vector<2x32xf32>
    %271 = math.exp %270 : vector<2x32xf32>
    %272 = arith.mulf %267, %271 : vector<2x32xf32>
    %cst_126 = arith.constant 1.000000e+00 : f32
    %273 = vector.broadcast %cst_126 : f32 to vector<2x32xf32>
    %274 = arith.subf %273, %272 : vector<2x32xf32>
    %275 = arith.mulf %246, %274 : vector<2x32xf32>
    %cst_127 = arith.constant 1.000000e+00 : f32
    %276 = vector.broadcast %cst_127 : f32 to vector<2x32xf32>
    %277 = arith.addf %276, %275 : vector<2x32xf32>
    %278 = arith.mulf %239, %277 : vector<2x32xf32>
    %c5_128 = arith.constant 5 : index
    %c0_129 = arith.constant 0 : index
    %c0_130 = arith.constant 0 : index
    %279 = vector.load %arg1[%c5_128, %c0_129, %c0_130] : memref<8x32x3xf32, #tpu.memory_space<vmem>>, vector<1x32x3xf32>
    %280 = vector.shape_cast %279 : vector<1x32x3xf32> to vector<32x3xf32>
    %cst_131 = arith.constant dense<0.000000e+00> : vector<2x3xf32>
    %281 = tpu.matmul %278, %280, %cst_131 {dimension_numbers = #tpu.dot_dimension_numbers<[1], [0], [0], [1], [0, 0, 1, 1], [], []>} : vector<2x32xf32>, vector<32x3xf32>, vector<2x3xf32> -> vector<2x3xf32>
    %282 = arith.addf %235, %281 : vector<2x3xf32>
    %c6 = arith.constant 6 : index
    %c0_132 = arith.constant 0 : index
    %c0_133 = arith.constant 0 : index
    %283 = vector.load %arg0[%c6, %c0_132, %c0_133] : memref<8x2x32xf32, #tpu.memory_space<vmem>>, vector<1x2x32xf32>
    %284 = vector.shape_cast %283 : vector<1x2x32xf32> to vector<2x32xf32>
    %cst_134 = arith.constant 5.000000e-01 : f32
    %285 = vector.broadcast %cst_134 : f32 to vector<2x32xf32>
    %286 = arith.mulf %285, %284 : vector<2x32xf32>
    %cst_135 = arith.constant 0.707106769 : f32
    %287 = vector.broadcast %cst_135 : f32 to vector<2x32xf32>
    %288 = arith.mulf %284, %287 : vector<2x32xf32>
    %cst_136 = arith.constant 0.000000e+00 : f32
    %289 = vector.broadcast %cst_136 : f32 to vector<2x32xf32>
    %290 = arith.cmpf oge, %288, %289 : vector<2x32xf32>
    %cst_137 = arith.constant 1.000000e+00 : f32
    %cst_138 = arith.constant -1.000000e+00 : f32
    %291 = vector.broadcast %cst_137 : f32 to vector<2x32xf32>
    %292 = vector.broadcast %cst_138 : f32 to vector<2x32xf32>
    %293 = arith.select %290, %291, %292 : vector<2x32xi1>, vector<2x32xf32>
    %294 = math.absf %288 : vector<2x32xf32>
    %cst_139 = arith.constant 0.327591091 : f32
    %295 = vector.broadcast %cst_139 : f32 to vector<2x32xf32>
    %296 = arith.mulf %295, %294 : vector<2x32xf32>
    %cst_140 = arith.constant 1.000000e+00 : f32
    %297 = vector.broadcast %cst_140 : f32 to vector<2x32xf32>
    %298 = arith.addf %297, %296 : vector<2x32xf32>
    %cst_141 = arith.constant 1.000000e+00 : f32
    %299 = vector.broadcast %cst_141 : f32 to vector<2x32xf32>
    %300 = arith.divf %299, %298 : vector<2x32xf32>
    %cst_142 = arith.constant 1.06140542 : f32
    %301 = vector.broadcast %cst_142 : f32 to vector<2x32xf32>
    %302 = arith.mulf %300, %301 : vector<2x32xf32>
    %cst_143 = arith.constant -1.45315206 : f32
    %303 = vector.broadcast %cst_143 : f32 to vector<2x32xf32>
    %304 = arith.addf %303, %302 : vector<2x32xf32>
    %305 = arith.mulf %300, %304 : vector<2x32xf32>
    %cst_144 = arith.constant 1.42141378 : f32
    %306 = vector.broadcast %cst_144 : f32 to vector<2x32xf32>
    %307 = arith.addf %306, %305 : vector<2x32xf32>
    %308 = arith.mulf %300, %307 : vector<2x32xf32>
    %cst_145 = arith.constant -0.284496725 : f32
    %309 = vector.broadcast %cst_145 : f32 to vector<2x32xf32>
    %310 = arith.addf %309, %308 : vector<2x32xf32>
    %311 = arith.mulf %300, %310 : vector<2x32xf32>
    %cst_146 = arith.constant 0.254829586 : f32
    %312 = vector.broadcast %cst_146 : f32 to vector<2x32xf32>
    %313 = arith.addf %312, %311 : vector<2x32xf32>
    %314 = arith.mulf %300, %313 : vector<2x32xf32>
    %cst_147 = arith.constant 0.000000e+00 : f32
    %315 = vector.broadcast %cst_147 : f32 to vector<2x32xf32>
    %316 = arith.subf %315, %294 : vector<2x32xf32>
    %317 = arith.mulf %316, %294 : vector<2x32xf32>
    %318 = math.exp %317 : vector<2x32xf32>
    %319 = arith.mulf %314, %318 : vector<2x32xf32>
    %cst_148 = arith.constant 1.000000e+00 : f32
    %320 = vector.broadcast %cst_148 : f32 to vector<2x32xf32>
    %321 = arith.subf %320, %319 : vector<2x32xf32>
    %322 = arith.mulf %293, %321 : vector<2x32xf32>
    %cst_149 = arith.constant 1.000000e+00 : f32
    %323 = vector.broadcast %cst_149 : f32 to vector<2x32xf32>
    %324 = arith.addf %323, %322 : vector<2x32xf32>
    %325 = arith.mulf %286, %324 : vector<2x32xf32>
    %c6_150 = arith.constant 6 : index
    %c0_151 = arith.constant 0 : index
    %c0_152 = arith.constant 0 : index
    %326 = vector.load %arg1[%c6_150, %c0_151, %c0_152] : memref<8x32x3xf32, #tpu.memory_space<vmem>>, vector<1x32x3xf32>
    %327 = vector.shape_cast %326 : vector<1x32x3xf32> to vector<32x3xf32>
    %cst_153 = arith.constant dense<0.000000e+00> : vector<2x3xf32>
    %328 = tpu.matmul %325, %327, %cst_153 {dimension_numbers = #tpu.dot_dimension_numbers<[1], [0], [0], [1], [0, 0, 1, 1], [], []>} : vector<2x32xf32>, vector<32x3xf32>, vector<2x3xf32> -> vector<2x3xf32>
    %329 = arith.addf %282, %328 : vector<2x3xf32>
    %c7 = arith.constant 7 : index
    %c0_154 = arith.constant 0 : index
    %c0_155 = arith.constant 0 : index
    %330 = vector.load %arg0[%c7, %c0_154, %c0_155] : memref<8x2x32xf32, #tpu.memory_space<vmem>>, vector<1x2x32xf32>
    %331 = vector.shape_cast %330 : vector<1x2x32xf32> to vector<2x32xf32>
    %cst_156 = arith.constant 5.000000e-01 : f32
    %332 = vector.broadcast %cst_156 : f32 to vector<2x32xf32>
    %333 = arith.mulf %332, %331 : vector<2x32xf32>
    %cst_157 = arith.constant 0.707106769 : f32
    %334 = vector.broadcast %cst_157 : f32 to vector<2x32xf32>
    %335 = arith.mulf %331, %334 : vector<2x32xf32>
    %cst_158 = arith.constant 0.000000e+00 : f32
    %336 = vector.broadcast %cst_158 : f32 to vector<2x32xf32>
    %337 = arith.cmpf oge, %335, %336 : vector<2x32xf32>
    %cst_159 = arith.constant 1.000000e+00 : f32
    %cst_160 = arith.constant -1.000000e+00 : f32
    %338 = vector.broadcast %cst_159 : f32 to vector<2x32xf32>
    %339 = vector.broadcast %cst_160 : f32 to vector<2x32xf32>
    %340 = arith.select %337, %338, %339 : vector<2x32xi1>, vector<2x32xf32>
    %341 = math.absf %335 : vector<2x32xf32>
    %cst_161 = arith.constant 0.327591091 : f32
    %342 = vector.broadcast %cst_161 : f32 to vector<2x32xf32>
    %343 = arith.mulf %342, %341 : vector<2x32xf32>
    %cst_162 = arith.constant 1.000000e+00 : f32
    %344 = vector.broadcast %cst_162 : f32 to vector<2x32xf32>
    %345 = arith.addf %344, %343 : vector<2x32xf32>
    %cst_163 = arith.constant 1.000000e+00 : f32
    %346 = vector.broadcast %cst_163 : f32 to vector<2x32xf32>
    %347 = arith.divf %346, %345 : vector<2x32xf32>
    %cst_164 = arith.constant 1.06140542 : f32
    %348 = vector.broadcast %cst_164 : f32 to vector<2x32xf32>
    %349 = arith.mulf %347, %348 : vector<2x32xf32>
    %cst_165 = arith.constant -1.45315206 : f32
    %350 = vector.broadcast %cst_165 : f32 to vector<2x32xf32>
    %351 = arith.addf %350, %349 : vector<2x32xf32>
    %352 = arith.mulf %347, %351 : vector<2x32xf32>
    %cst_166 = arith.constant 1.42141378 : f32
    %353 = vector.broadcast %cst_166 : f32 to vector<2x32xf32>
    %354 = arith.addf %353, %352 : vector<2x32xf32>
    %355 = arith.mulf %347, %354 : vector<2x32xf32>
    %cst_167 = arith.constant -0.284496725 : f32
    %356 = vector.broadcast %cst_167 : f32 to vector<2x32xf32>
    %357 = arith.addf %356, %355 : vector<2x32xf32>
    %358 = arith.mulf %347, %357 : vector<2x32xf32>
    %cst_168 = arith.constant 0.254829586 : f32
    %359 = vector.broadcast %cst_168 : f32 to vector<2x32xf32>
    %360 = arith.addf %359, %358 : vector<2x32xf32>
    %361 = arith.mulf %347, %360 : vector<2x32xf32>
    %cst_169 = arith.constant 0.000000e+00 : f32
    %362 = vector.broadcast %cst_169 : f32 to vector<2x32xf32>
    %363 = arith.subf %362, %341 : vector<2x32xf32>
    %364 = arith.mulf %363, %341 : vector<2x32xf32>
    %365 = math.exp %364 : vector<2x32xf32>
    %366 = arith.mulf %361, %365 : vector<2x32xf32>
    %cst_170 = arith.constant 1.000000e+00 : f32
    %367 = vector.broadcast %cst_170 : f32 to vector<2x32xf32>
    %368 = arith.subf %367, %366 : vector<2x32xf32>
    %369 = arith.mulf %340, %368 : vector<2x32xf32>
    %cst_171 = arith.constant 1.000000e+00 : f32
    %370 = vector.broadcast %cst_171 : f32 to vector<2x32xf32>
    %371 = arith.addf %370, %369 : vector<2x32xf32>
    %372 = arith.mulf %333, %371 : vector<2x32xf32>
    %c7_172 = arith.constant 7 : index
    %c0_173 = arith.constant 0 : index
    %c0_174 = arith.constant 0 : index
    %373 = vector.load %arg1[%c7_172, %c0_173, %c0_174] : memref<8x32x3xf32, #tpu.memory_space<vmem>>, vector<1x32x3xf32>
    %374 = vector.shape_cast %373 : vector<1x32x3xf32> to vector<32x3xf32>
    %cst_175 = arith.constant dense<0.000000e+00> : vector<2x3xf32>
    %375 = tpu.matmul %372, %374, %cst_175 {dimension_numbers = #tpu.dot_dimension_numbers<[1], [0], [0], [1], [0, 0, 1, 1], [], []>} : vector<2x32xf32>, vector<32x3xf32>, vector<2x3xf32> -> vector<2x3xf32>
    %376 = arith.addf %329, %375 : vector<2x3xf32>
    %c0_176 = arith.constant 0 : index
    %c0_177 = arith.constant 0 : index
    %377 = vector.load %arg2[%c0_176, %c0_177] : memref<1x3xf32, #tpu.memory_space<vmem>>, vector<1x3xf32>
    %378 = vector.broadcast %377 : vector<1x3xf32> to vector<2x3xf32>
    %379 = arith.addf %376, %378 : vector<2x3xf32>
    %c0_178 = arith.constant 0 : index
    %c0_179 = arith.constant 0 : index
    %380 = vector.load %arg3[%c0_178, %c0_179] : memref<2x3xf32, #tpu.memory_space<vmem>>, vector<2x3xf32>
    tpu.vector_store %arg3[%c0_178, %c0_179], %379 {strides = array<i32>} : memref<2x3xf32, #tpu.memory_space<vmem>>, vector<2x3xf32>,
    return
  }
}

</mosaic_0001>

<bundles_post_ra>
// kernel: lstm_attention_forward.7
= control target key start
LH: loop header
LB: loop body
LE: loop exit
PB: predicated region body
PF: predicated region fallthrough
CT: control target
= control target key end

     0   :  { %s1135_s0 = inlined_call_operand.vmem [shape: f32[8,2,32], index: 0, kind: input, shape index: {}]   ;;  %s1136_s1 = inlined_call_operand.vmem [shape: f32[8,32,3], index: 1, kind: input, shape index: {}]   ;;  %s1137_s2 = inlined_call_operand.vmem [shape: f32[1,3], index: 2, kind: input, shape index: {}]   ;;  %s1138_s3 = inlined_call_operand.hbm [shape: f32[2,3], index: 3, kind: output, shape index: {}]  }
   0x1   :  { %v614_v0 = vld [vmem:[%s1136_s1 + $0x58] sm:$0xff]  ;;  %v613_v3 = vld [vmem:[%s1136_s1 + $0x50] sm:$0xff]  ;;  %v612_v7 = vld [vmem:[%s1136_s1 + $0x48] sm:$0xff] }
   0x2   :  { %v607_v1 = vld [vmem:[%s1136_s1 + $0x38] sm:$0xff]  ;;  %216 = vmatpush.msra.mxu2 %v614_v0  ;;  %v606_v5 = vld [vmem:[%s1136_s1 + $0x30] sm:$0xff]  ;;  %v605_v9 = vld [vmem:[%s1136_s1 + $0x28] sm:$0xff] }
   0x3   :  { %v59_v2 = vld [vmem:[%s1136_s1 + $0x18] sm:$0xff]  ;;  %123 = vmatpush.msra.mxu0 %v607_v1  ;;  %v58_v6 = vld [vmem:[%s1136_s1 + $0x10] sm:$0xff]  ;;  %v57_v10 = vld [vmem:[%s1136_s1 + $0x8] sm:$0xff] }
   0x4   :  { %v620_v4 = vld [vmem:[%s1136_s1 + $0x78] sm:$0xff]  ;;  %146 = vmatpush.msra.mxu1 %v59_v2  ;;  %v619_v8 = vld [vmem:[%s1136_s1 + $0x70] sm:$0xff]  ;;  %217 = vmatpush.msra.mxu2 %v613_v3  ;;  %v611_v11 = vld [vmem:[%s1136_s1 + $0x40] sm:$0xff] }
   0x5   :  { %287 = vmatpush.msra.mxu3 %v620_v4  ;;  %124 = vmatpush.msra.mxu0 %v606_v5  ;;  %v618_v12 = vld [vmem:[%s1136_s1 + $0x68] sm:$0xff]  ;;  %v610_v13 = vld [vmem:[%s1135_s0 + $0x4] sm:$0x3]  ;;  %v774_v14 = vld [vmem:[%s1135_s0 + $0x2] sm:$0x3] }
   0x6   :  { %147 = vmatpush.msra.mxu1 %v58_v6  ;;  %218 = vmatpush.msra.mxu2 %v612_v7  ;;  %v157_v15 = vmul.f32 0.70710677, %v610_v13  ;;  %v777_v16 = vmul.f32 0.70710677, %v774_v14  ;;  %v782_v17 = vld [vmem:[%s1135_s0] sm:$0x3] }
   0x7   :  { %288 = vmatpush.msra.mxu3 %v619_v8  ;;  %125 = vmatpush.msra.mxu0 %v605_v9  ;;  %v787_v18 = vld [vmem:[%s1135_s0 + $0x6] sm:$0x3]  ;;  %v791_v21 = vmul.f32 0.70710677, %v782_v17 }
   0x8   :  { %148 = vmatpush.msra.mxu1 %v57_v10  ;;  %219 = vmatpush.msra.mxu2 %v611_v11  ;;  %v160_v19 = vand.u32 2147483647, %v157_v15  ;;  %v66_v20 = vand.u32 2147483647, %v777_v16  ;;  %v794_v22 = vmul.f32 0.70710677, %v787_v18 }
   0x9   :  { %289 = vmatpush.msra.mxu3 %v618_v12  ;;  %v20_v25 = vand.u32 2147483647, %v791_v21  ;;  %vm158_vm0 = vcmp.ge.f32.partialorder %v157_v15, 0.0 }
   0xa   :  { %v161_v23 = vmul.f32 0.3275911, %v160_v19  ;;  %v67_v24 = vmul.f32 0.3275911, %v66_v20  ;;  %v798_v26 = vand.u32 2147483647, %v794_v22 }
   0xb   :  { %v187_v29 = vsub.f32 0.0, %v160_v19  ;;  %v21_v30 = vmul.f32 0.3275911, %v20_v25  ;;  %v93_v32 = vsub.f32 0.0, %v66_v20 }
   0xc   :  { %v162_v27 = vadd.f32 1.0, %v161_v23  ;;  %v68_v28 = vadd.f32 1.0, %v67_v24  ;;  %v232_v31 = vmul.f32 0.3275911, %v798_v26 }
   0xe   :  { %649 = vrcp.f32 %v162_v27 }
   0xf   :  { %651 = vrcp.f32 %v68_v28 }
  0x10   :  { %8 = vsyncpa [#allocation3], 0  ;;  %v804_v33 = vld [vmem:[%s1135_s0 + $0xc] sm:$0x3]  ;;  %v188_v34 = vmul.f32 %v187_v29, %v160_v19  ;;  %v806_v35 = vadd.f32 1.0, %v21_v30  ;;  %v47_v36 = vsub.f32 0.0, %v20_v25  ;;  %v94_v43 = vmul.f32 %v93_v32, %v66_v20 }
  0x11   :  { %v808_v37 = vmul.f32 0.5, %v610_v13  ;;  %v707_v38 = vmov -1.0   ;;  %v172_v40 = vand.u32 2147483647, %v162_v27  ;;  %v813_v41 = vadd.f32 1.0, %v232_v31  ;;  %v638_v9 = vld [vmem:[%s1136_s1 + $0xd8] sm:$0xff] }
  0x12   :  { %v811_v39 = vsel %vm158_vm0, 1.0, %v707_v38  ;;  %v174_v42 = vand.u32 2147483648, %v162_v27  ;;  %653 = vrcp.f32 %v806_v35  ;;  %v817_v44 = vmul.f32 0.70710677, %v804_v33  ;;  %v604_v10 = vld [vmem:[%s1136_s1 + $0x20] sm:$0xff]  ;;  %500 = vmatpush.msrb.mxu2 %v638_v9  ;;  %v626_v53 = vld [vmem:[%s1136_s1 + $0x98] sm:$0xff] }
  0x13   :  { %v78_v46 = vand.u32 2147483647, %v68_v28  ;;  %v80_v47 = vand.u32 2147483648, %v68_v28  ;;  %655 = vrcp.f32 %v813_v41  ;;  %v258_v48 = vsub.f32 0.0, %v798_v26  ;;  %v56_v11 = vld [vmem:[%s1136_s1] sm:$0xff]  ;;  %126 = vmatpush.msra.mxu0 %v604_v10  ;;  %v636_v63 = vld [vmem:[%s1136_s1 + $0xc8] sm:$0xff] }
  0x14   :  { %v650_v45 = vpop.eup %649  ;;  %vm168_vm1 = vweird.f32 %v162_v27  ;;  %v821_v51 = vmul.f32 1.442695, %v188_v34  ;;  %v48_v52 = vmul.f32 %v47_v36, %v20_v25  ;;  %vm823_vm3 = vcmp.eq.f32.partialorder %v172_v40, 8.507059e+37  ;;  %v617_v15 = vld [vmem:[%s1136_s1 + $0x60] sm:$0xff]  ;;  %149 = vmatpush.msra.mxu1 %v56_v11  ;;  %s708_s11 = smov [#allocation2]   ;;  %s594_s15 = sshll.u32 %s1138_s3, 4  ;;  %s595_s15 = int_to_ptr.hbm [resolvable:$true] %s594_s15 }
  0x15   :  { %v652_v49 = vpop.eup %651  ;;  %v164_v50 = vmul.f32 %v650_v45, %v162_v27  ;;  %vm169_vm2 = vweird.f32 %v650_v45  ;;  %vm74_vm4 = vweird.f32 %v68_v28  ;;  %v175_v56 = vor.u32 1.1754944e-38, %v174_v42  ;;  %290 = vmatpush.msra.mxu3 %v617_v15  ;;  %358 = vmatpush.msrb.mxu0 %v626_v53  ;;  %v623_v11 = vld [vmem:[%s1136_s1 + $0x80] sm:$0xff]  ;;  %s592_s12 = sshll.u32 %s708_s11, 4  ;;  %s593_s12 = int_to_ptr.vmem [resolvable:$true] %s592_s12 }
  0x16   :  { %v70_v54 = vmul.f32 %v652_v49, %v68_v28  ;;  %vm75_vm5 = vweird.f32 %v652_v49  ;;  %v827_v57 = vmul.f32 1.442695, %v94_v43  ;;  %vm829_vm6 = vcmp.eq.f32.partialorder %v78_v46, 8.507059e+37  ;;  %vm837_vm8 = vmor %vm168_vm1, %vm169_vm2 }
  0x17   :  { %v165_v55 = vsub.f32 1.0, %v164_v50  ;;  %v81_v60 = vor.u32 1.1754944e-38, %v80_v47  ;;  %vm28_vm7 = vweird.f32 %v806_v35  ;;  %v32_v0 = vand.u32 2147483647, %v806_v35  ;;  %vm848_vm9 = vmor %vm74_vm4, %vm75_vm5 }
  0x18   :  { %v71_v58 = vsub.f32 1.0, %v70_v54  ;;  %v834_v61 = vpop.eup %653  ;;  %v34_v1 = vand.u32 2147483648, %v806_v35  ;;  %v843_v2 = vmul.f32 1.442695, %v48_v52  ;;  %vm239_vm10 = vweird.f32 %v813_v41  ;;  %v644_v54 = vld [vmem:[%s1136_s1 + $0xf8] sm:$0xff] }
  0x19   :  { %v166_v62 = vmul.f32 %v650_v45, %v165_v55  ;;  %v845_v3 = vpop.eup %655  ;;  %v24_v6 = vmul.f32 %v834_v61, %v806_v35  ;;  %v243_v7 = vand.u32 2147483647, %v813_v41  ;;  %vm64_vm11 = vcmp.ge.f32.partialorder %v777_v16, 0.0  ;;  %v930_v55 = vld [vmem:[%s1135_s0 + $0x8] sm:$0x3]  ;;  %571 = vmatpush.msrb.mxu3 %v644_v54 }
  0x1a   :  { %v72_v4 = vmul.f32 %v652_v49, %v71_v58  ;;  %v235_v12 = vmul.f32 %v845_v3, %v813_v41  ;;  %v245_v13 = vand.u32 2147483648, %v813_v41  ;;  %vm29_vm12 = vweird.f32 %v834_v61  ;;  %v637_v41 = vld [vmem:[%s1136_s1 + $0xd0] sm:$0xff]  ;;  %v624_v16 = vld [vmem:[%s1136_s1 + $0x88] sm:$0xff] }
  0x1b   :  { %v167_v8 = vadd.f32 %v650_v45, %v166_v62  ;;  %v25_v20 = vsub.f32 1.0, %v24_v6  ;;  %v874_v23 = vand.u32 2147483647, %v817_v44  ;;  %vm878_vm13 = vcmp.eq.f32.partialorder %v32_v0, 8.507059e+37  ;;  %vm898_vm15 = vmor %vm28_vm7, %vm29_vm12  ;;  %501 = vmatpush.msrb.mxu2 %v637_v41  ;;  %v632_v62 = vld [vmem:[%s1136_s1 + $0xb8] sm:$0xff] }
  0x1c   :  { %v73_v19 = vadd.f32 %v652_v49, %v72_v4  ;;  %v236_v27 = vsub.f32 1.0, %v235_v12  ;;  %vm240_vm14 = vweird.f32 %v845_v3  ;;  %v35_v40 = vor.u32 1.1754944e-38, %v34_v1  ;;  %429 = vmatpush.msrb.mxu1 %v632_v62  ;;  %v643_v1 = vld [vmem:[%s1136_s1 + $0xf0] sm:$0xff]  ;;  %v630_v12 = vld [vmem:[%s1136_s1 + $0xa8] sm:$0xff] }
  0x1d   :  { %v171_v24 = vsel %vm837_vm8, %v650_v45, %v167_v8  ;;  %v26_v30 = vmul.f32 %v834_v61, %v25_v20  ;;  %v445_v31 = vmul.f32 0.3275911, %v874_v23  ;;  %vm907_vm0 = vmor %vm239_vm10, %vm240_vm14  ;;  %v246_v47 = vor.u32 1.1754944e-38, %v245_v13  ;;  %v631_v4 = vld [vmem:[%s1136_s1 + $0xb0] sm:$0xff]  ;;  %502 = vmatpush.msrb.mxu2 %v636_v63  ;;  %v642_v8 = vld [vmem:[%s1136_s1 + $0xe8] sm:$0xff]  ;;  %572 = vmatpush.msrb.mxu3 %v643_v1 }
  0x1e   :  { %v885_v28 = vsel %vm823_vm3, %v175_v56, %v171_v24  ;;  %v77_v29 = vsel %vm848_vm9, %v652_v49, %v73_v19  ;;  %v237_v42 = vmul.f32 %v845_v3, %v236_v27  ;;  %vm914_vm1 = vcmp.eq.f32.partialorder %v243_v7, 8.507059e+37  ;;  %v635_v7 = vld [vmem:[%s1136_s1 + $0xc0] sm:$0xff]  ;;  %430 = vmatpush.msrb.mxu1 %v631_v4 }
  0x1f   :  { %v178_v32 = vmul.f32 1.0614054, %v885_v28  ;;  %v894_v34 = vsel %vm829_vm6, %v81_v60, %v77_v29  ;;  %v27_v45 = vadd.f32 %v834_v61, %v26_v30  ;;  %v911_v49 = vadd.f32 1.0, %v445_v31  ;;  %v625_v60 = vld [vmem:[%s1136_s1 + $0x90] sm:$0xff]  ;;  %503 = vmatpush.msrb.mxu2 %v635_v7  ;;  %573 = vmatpush.msrb.mxu3 %v642_v8 }
  0x20   :  { %v84_v43 = vmul.f32 1.0614054, %v894_v34  ;;  %v238_v50 = vadd.f32 %v845_v3, %v237_v42  ;;  %v259_v59 = vmul.f32 %v258_v48, %v798_v26  ;;  %v952_v26 = vsel %vm64_vm11, 1.0, %v707_v38  ;;  %359 = vmatpush.msrb.mxu0 %v625_v60  ;;  %431 = vmatpush.msrb.mxu1 %v630_v12  ;;  %v1024_v60 = vld [vmem:[%s1135_s0 + $0xe] sm:$0x3] }
  0x21   :  { %v179_v35 = vadd.f32 -1.4531521, %v178_v32  ;;  %v31_v58 = vsel %vm898_vm15, %v834_v61, %v27_v45  ;;  %657 = vrcp.f32 %v911_v49  ;;  %vm18_vm2 = vcmp.ge.f32.partialorder %v791_v21, 0.0 }
  0x22   :  { %v85_v56 = vadd.f32 -1.4531521, %v84_v43  ;;  %v956_v48 = vsel %vm878_vm13, %v35_v40, %v31_v58  ;;  %v242_v0 = vsel %vm907_vm0, %v845_v3, %v238_v50  ;;  %659 = vpow2.f32 %v821_v51  ;;  %360 = vmatpush.msrb.mxu0 %v624_v16 }
  0x23   :  { %v180_v61 = vmul.f32 %v179_v35, %v885_v28  ;;  %v38_v3 = vmul.f32 1.0614054, %v956_v48  ;;  %v975_v6 = vsel %vm914_vm1, %v246_v47, %v242_v0  ;;  %661 = vpow2.f32 %v827_v57 }
  0x24   :  { %v86_v5 = vmul.f32 %v85_v56, %v894_v34  ;;  %v249_v10 = vmul.f32 1.0614054, %v975_v6  ;;  %v993_v51 = vmul.f32 0.70710677, %v930_v55  ;;  %v999_v20 = vsel %vm18_vm2, 1.0, %v707_v38  ;;  %361 = vmatpush.msrb.mxu0 %v623_v11 }
  0x25   :  { %v181_v9 = vadd.f32 1.4214138, %v180_v61  ;;  %v39_v15 = vadd.f32 -1.4531521, %v38_v3  ;;  %663 = vpow2.f32 %v843_v2  ;;  %v260_v29 = vmul.f32 1.442695, %v259_v59 }
  0x26   :  { %v87_v13 = vadd.f32 1.4214138, %v86_v5  ;;  %v250_v24 = vadd.f32 -1.4531521, %v249_v10  ;;  %v456_v30 = vand.u32 2147483647, %v911_v49  ;;  %vm452_vm3 = vweird.f32 %v911_v49 }
  0x27   :  { %v182_v19 = vmul.f32 %v181_v9, %v885_v28  ;;  %v658_v25 = vpop.eup %657  ;;  %v40_v27 = vmul.f32 %v39_v15, %v956_v48  ;;  %v458_v36 = vand.u32 2147483648, %v911_v49  ;;  %v1010_v42 = vand.u32 2147483647, %v993_v51  ;;  %v641_v3 = vld [vmem:[%s1136_s1 + $0xe0] sm:$0xff] }
  0x28   :  { %v88_v57 = vmul.f32 %v87_v13, %v894_v34  ;;  %v251_v32 = vmul.f32 %v250_v24, %v975_v6  ;;  %v448_v21 = vmul.f32 %v658_v25, %v911_v49  ;;  %v660_v43 = vpop.eup %659  ;;  %vm453_vm4 = vweird.f32 %v658_v25  ;;  %574 = vmatpush.msrb.mxu3 %v641_v3 }
  0x29   :  { %v183_v31 = vadd.f32 -0.28449672, %v182_v19  ;;  %v41_v40 = vadd.f32 1.4214138, %v40_v27  ;;  %v662_v35 = vpop.eup %661  ;;  %vm229_vm5 = vcmp.ge.f32.partialorder %v794_v22, 0.0  ;;  %vm1016_vm6 = vcmp.eq.f32.partialorder %v456_v30, 8.507059e+37  ;;  %vm1029_vm7 = vmor %vm452_vm3, %vm453_vm4 }
  0x2a   :  { %v89_v2 = vadd.f32 -0.28449672, %v88_v57  ;;  %v252_v46 = vadd.f32 1.4214138, %v251_v32  ;;  %v449_v47 = vsub.f32 1.0, %v448_v21  ;;  %v459_v59 = vor.u32 1.1754944e-38, %v458_v36 }
  0x2b   :  { %v184_v45 = vmul.f32 %v183_v31, %v885_v28  ;;  %v42_v52 = vmul.f32 %v41_v40, %v956_v48  ;;  %v664_v41 = vpop.eup %663  ;;  %665 = vpow2.f32 %v260_v29  ;;  %v303_v0 = vmul.f32 0.3275911, %v1010_v42  ;;  %v1058_v19 = vld [vmem:[%s1135_s0 + $0xa] sm:$0x3] }
  0x2c   :  { %v90_v50 = vmul.f32 %v89_v2, %v894_v34  ;;  %v253_v56 = vmul.f32 %v252_v46, %v975_v6  ;;  %v450_v58 = vmul.f32 %v658_v25, %v449_v47  ;;  %v471_v5 = vsub.f32 0.0, %v874_v23 }
  0x2d   :  { %v185_v54 = vadd.f32 0.2548296, %v184_v45  ;;  %v43_v63 = vadd.f32 -0.28449672, %v42_v52  ;;  %vm107_vm8 = vcmask 261120   ;;  %v1041_v8 = vadd.f32 1.0, %v303_v0 }
  0x2e   :  { %v91_v62 = vadd.f32 0.2548296, %v90_v50  ;;  %v254_v16 = vadd.f32 -0.28449672, %v253_v56  ;;  %v451_v4 = vadd.f32 %v658_v25, %v450_v58  ;;  %v1044_v9 = vmul.f32 0.70710677, %v1024_v60 }
  0x2f   :  { %v186_v1 = vmul.f32 %v185_v54, %v885_v28  ;;  %v44_v49 = vmul.f32 %v43_v63, %v956_v48  ;;  %v62_v10 = vmul.f32 0.5, %v774_v14  ;;  %667 = vrcp.f32 %v1041_v8 }
  0x30   :  { %v92_v7 = vmul.f32 %v91_v62, %v894_v34  ;;  %v255_v11 = vmul.f32 %v254_v16, %v975_v6  ;;  %v455_v12 = vsel %vm1029_vm7, %v658_v25, %v451_v4  ;;  %v472_v27 = vmul.f32 %v471_v5, %v874_v23 }
  0x31   :  { %v191_v28 = vmul.f32 %v660_v43, %v186_v1  ;;  %v45_v15 = vadd.f32 0.2548296, %v44_v49  ;;  %v1052_v34 = vsel %vm1016_vm6, %v459_v59, %v455_v12  ;;  %v666_v25 = vpop.eup %665  ;;  %v16_v30 = vmul.f32 0.5, %v782_v17 }
  0x32   :  { %v97_v13 = vmul.f32 %v662_v35, %v92_v7  ;;  %v256_v14 = vadd.f32 0.2548296, %v255_v11  ;;  %v462_v57 = vmul.f32 1.0614054, %v1052_v34  ;;  %v1065_v32 = vand.u32 2147483647, %v1044_v9 }
  0x33   :  { %v192_v24 = vsub.f32 1.0, %v191_v28  ;;  %v46_v31 = vmul.f32 %v45_v15, %v956_v48  ;;  %v230_v36 = vsel %vm229_vm5, 1.0, %v707_v38  ;;  %v227_v45 = vmul.f32 0.5, %v787_v18 }
  0x34   :  { %v98_v29 = vsub.f32 1.0, %v97_v13  ;;  %v257_v2 = vmul.f32 %v256_v14, %v975_v6  ;;  %v463_v40 = vadd.f32 -1.4531521, %v462_v57  ;;  %v1075_v17 = vmul.f32 0.70710677, %v1058_v19 }
  0x35   :  { %v193_v21 = vmul.f32 %v192_v24, %v811_v39  ;;  %v51_v43 = vmul.f32 %v664_v41, %v46_v31  ;;  %v473_v39 = vmul.f32 1.442695, %v472_v27  ;;  %v668_v35 = vpop.eup %667  ;;  %vm310_vm9 = vweird.f32 %v1041_v8 }
  0x36   :  { %v99_v23 = vmul.f32 %v98_v29, %v952_v26  ;;  %v262_v46 = vmul.f32 %v666_v25, %v257_v2  ;;  %v464_v47 = vmul.f32 %v463_v40, %v1052_v34  ;;  %v516_v6 = vmul.f32 0.3275911, %v1065_v32 }
  0x37   :  { %v194_v48 = vadd.f32 1.0, %v193_v21  ;;  %v52_v22 = vsub.f32 1.0, %v51_v43  ;;  %v306_v18 = vmul.f32 %v668_v35, %v1041_v8  ;;  %v314_v56 = vand.u32 2147483647, %v1041_v8 }
  0x38   :  { %v100_v50 = vadd.f32 1.0, %v99_v23  ;;  %v263_v52 = vsub.f32 1.0, %v262_v46  ;;  %v465_v53 = vadd.f32 1.4214138, %v464_v47  ;;  %v316_v58 = vand.u32 2147483648, %v1041_v8 }
  0x39   :  { %v195_v26 = vmul.f32 %v194_v48, %v808_v37  ;;  %v53_v54 = vmul.f32 %v52_v22, %v999_v20  ;;  %v307_v63 = vsub.f32 1.0, %v306_v18  ;;  %vm311_vm10 = vweird.f32 %v668_v35 }
  0x3a   :  { %v101_v41 = vmul.f32 %v100_v50, %v62_v10  ;;  %v264_v59 = vmul.f32 %v263_v52, %v230_v36  ;;  %v466_v62 = vmul.f32 %v465_v53, %v1052_v34  ;;  %669 = vpow2.f32 %v473_v39  ;;  %vm1093_vm11 = vmor %vm310_vm9, %vm311_vm10  ;;  %v629_v10 = vld [vmem:[%s1136_s1 + $0xa0] sm:$0xff] }
  0x3b   :  { %615 = vmatmul.msk.f32.vlgmr.msra.gmra.mxu2 %vm107_vm8, %v195_v26  ;;  %v54_v37 = vadd.f32 1.0, %v53_v54  ;;  %v517_v61 = vadd.f32 1.0, %v516_v6  ;;  %v1089_v0 = vand.u32 2147483647, %v1075_v17  ;;  %v308_v16 = vmul.f32 %v668_v35, %v307_v63  ;;  %432 = vmatpush.msrb.mxu1 %v629_v10 }
  0x3c   :  { %608 = vmatmul.msk.f32.vlgmr.msra.gmra.mxu0 %vm107_vm8, %v101_v41  ;;  %v265_v20 = vadd.f32 1.0, %v264_v59  ;;  %v467_v1 = vadd.f32 -0.28449672, %v466_v62  ;;  %v317_v3 = vor.u32 1.1754944e-38, %v316_v58  ;;  %vm315_vm12 = vcmp.eq.f32.partialorder %v314_v56, 8.507059e+37 }
  0x3d   :  { %v55_v4 = vmul.f32 %v54_v37, %v16_v30  ;;  %671 = vrcp.f32 %v517_v61  ;;  %v309_v28 = vadd.f32 %v668_v35, %v308_v16  ;;  %v329_v11 = vsub.f32 0.0, %v1010_v42 }
  0x3e   :  { %v266_v7 = vmul.f32 %v265_v20, %v227_v45  ;;  %v468_v49 = vmul.f32 %v467_v1, %v1052_v34  ;;  %v374_v8 = vmul.f32 0.3275911, %v1089_v0  ;;  %vm442_vm13 = vcmp.ge.f32.partialorder %v817_v44, 0.0 }
  0x3f   :  { %609 = vmatmul.msk.f32.vlgmr.msra.gmra.mxu1 %vm107_vm8, %v55_v4  ;;  %v313_v13 = vsel %vm1093_vm11, %v668_v35, %v309_v28  ;;  %v330_v29 = vmul.f32 %v329_v11, %v1010_v42  ;;  %v443_v30 = vsel %vm442_vm13, 1.0, %v707_v38  ;;  %vm523_vm14 = vweird.f32 %v517_v61 }
  0x40   :  { %621 = vmatmul.msk.f32.vlgmr.msra.gmra.mxu3 %vm107_vm8, %v266_v7  ;;  %v469_v12 = vadd.f32 0.2548296, %v468_v49  ;;  %v670_v15 = vpop.eup %669  ;;  %v318_v24 = vsel %vm315_vm12, %v317_v3, %v313_v13  ;;  %v375_v14 = vadd.f32 1.0, %v374_v8  ;;  %v527_v2 = vand.u32 2147483647, %v517_v61 }
  0x41   :  { %v320_v27 = vmul.f32 1.0614054, %v318_v24  ;;  %v529_v40 = vand.u32 2147483648, %v517_v61  ;;  %v331_v45 = vmul.f32 1.442695, %v330_v29  ;;  %v542_v6 = vsub.f32 0.0, %v1065_v32 }
  0x42   :  { %v470_v57 = vmul.f32 %v469_v12, %v1052_v34  ;;  %673 = vrcp.f32 %v375_v14  ;;  %v440_v34 = vmul.f32 0.5, %v804_v33  ;;  %vm528_vm1 = vcmp.eq.f32.partialorder %v527_v2, 8.507059e+37 }
  0x43   :  { %v672_v25 = vpop.eup %671  ;;  %v321_v21 = vadd.f32 -1.4531521, %v320_v27  ;;  %v530_v42 = vor.u32 1.1754944e-38, %v529_v40  ;;  %675 = vpow2.f32 %v331_v45  ;;  %vm381_vm2 = vweird.f32 %v375_v14 }
  0x44   :  { %v475_v31 = vmul.f32 %v670_v15, %v470_v57  ;;  %v519_v36 = vmul.f32 %v672_v25, %v517_v61  ;;  %vm524_vm15 = vweird.f32 %v672_v25  ;;  %v385_v33 = vand.u32 2147483647, %v375_v14 }
  0x45   :  { %v322_v43 = vmul.f32 %v321_v21, %v318_v24  ;;  %vm525_vm0 = vmor %vm523_vm14, %vm524_vm15  ;;  %v387_v54 = vand.u32 2147483648, %v375_v14  ;;  %v543_v62 = vmul.f32 %v542_v6, %v1065_v32  ;;  %vm300_vm4 = vcmp.ge.f32.partialorder %v993_v51, 0.0 }
  0x46   :  { %v476_v23 = vsub.f32 1.0, %v475_v31  ;;  %v520_v44 = vsub.f32 1.0, %v519_v36  ;;  %vm386_vm6 = vcmp.eq.f32.partialorder %v385_v33, 8.507059e+37  ;;  %v400_v7 = vsub.f32 0.0, %v1089_v0 }
  0x47   :  { %v323_v46 = vadd.f32 1.4214138, %v322_v43  ;;  %v388_v1 = vor.u32 1.1754944e-38, %v387_v54  ;;  %v544_v3 = vmul.f32 1.442695, %v543_v62  ;;  %v301_v32 = vsel %vm300_vm4, 1.0, %v707_v38 }
  0x48   :  { %v477_v48 = vmul.f32 %v476_v23, %v443_v30  ;;  %v521_v47 = vmul.f32 %v672_v25, %v520_v44  ;;  %v674_v22 = vpop.eup %673  ;;  %v401_v51 = vmul.f32 %v400_v7, %v1089_v0  ;;  %v298_v15 = vmul.f32 0.5, %v930_v55 }
  0x49   :  { %v324_v35 = vmul.f32 %v323_v46, %v318_v24  ;;  %v377_v18 = vmul.f32 %v674_v22, %v375_v14  ;;  %vm382_vm3 = vweird.f32 %v674_v22  ;;  %v676_v20 = vpop.eup %675  ;;  %677 = vpow2.f32 %v544_v3 }
  0x4a   :  { %v478_v39 = vadd.f32 1.0, %v477_v48  ;;  %v522_v50 = vadd.f32 %v672_v25, %v521_v47  ;;  %vm383_vm5 = vmor %vm381_vm2, %vm382_vm3  ;;  %v402_v30 = vmul.f32 1.442695, %v401_v51  ;;  %vm513_vm7 = vcmp.ge.f32.partialorder %v1044_v9, 0.0 }
  0x4b   :  { %v325_v52 = vadd.f32 -0.28449672, %v324_v35  ;;  %v378_v59 = vsub.f32 1.0, %v377_v18  ;;  %v514_v43 = vsel %vm513_vm7, 1.0, %v707_v38  ;;  %vm371_vm9 = vcmp.ge.f32.partialorder %v1075_v17, 0.0 }
  0x4c   :  { %v479_v26 = vmul.f32 %v478_v39, %v440_v34  ;;  %v526_v53 = vsel %vm525_vm0, %v672_v25, %v522_v50  ;;  %679 = vpow2.f32 %v402_v30  ;;  %v511_v34 = vmul.f32 0.5, %v1024_v60 }
  0x4d   :  { %v531_v41 = vsel %vm528_vm1, %v530_v42, %v526_v53  ;;  %v326_v56 = vmul.f32 %v325_v52, %v318_v24  ;;  %v379_v61 = vmul.f32 %v674_v22, %v378_v59  ;;  %v372_v50 = vsel %vm371_vm9, 1.0, %v707_v38 }
  0x4e   :  { %639 = vmatmul.msk.f32.vlgmr.msrb.gmra.mxu2 %vm107_vm8, %v479_v26  ;;  %v533_v58 = vmul.f32 1.0614054, %v531_v41  ;;  %v369_v6 = vmul.f32 0.5, %v1058_v19  ;;  %v648_v19 = vld [vmem:[%s1137_s2] ss:$0 sm:$0xff] }
  0x4f   :  { %v327_v63 = vadd.f32 0.2548296, %v326_v56  ;;  %v380_v5 = vadd.f32 %v674_v22, %v379_v61  ;;  %v678_v2 = vpop.eup %677 }
  0x50   :  { %v534_v37 = vadd.f32 -1.4531521, %v533_v58 }
  0x51   :  { %v328_v16 = vmul.f32 %v327_v63, %v318_v24  ;;  %v384_v10 = vsel %vm383_vm5, %v674_v22, %v380_v5 }
  0x52   :  { %v535_v4 = vmul.f32 %v534_v37, %v531_v41  ;;  %v389_v11 = vsel %vm386_vm6, %v388_v1, %v384_v10  ;;  %v680_v47 = vpop.eup %679 }
  0x53   :  { %v333_v49 = vmul.f32 %v676_v20, %v328_v16  ;;  %v391_v13 = vmul.f32 1.0614054, %v389_v11 }
  0x54   :  { %v536_v28 = vadd.f32 1.4214138, %v535_v4 }
  0x55   :  { %v334_v8 = vsub.f32 1.0, %v333_v49  ;;  %v392_v57 = vadd.f32 -1.4531521, %v391_v13 }
  0x56   :  { %v537_v12 = vmul.f32 %v536_v28, %v531_v41 }
  0x57   :  { %v335_v24 = vmul.f32 %v334_v8, %v301_v32  ;;  %v393_v29 = vmul.f32 %v392_v57, %v389_v11 }
  0x58   :  { %v538_v14 = vadd.f32 -0.28449672, %v537_v12 }
  0x59   :  { %v336_v27 = vadd.f32 1.0, %v335_v24  ;;  %v394_v36 = vadd.f32 1.4214138, %v393_v29 }
  0x5a   :  { %v539_v25 = vmul.f32 %v538_v14, %v531_v41 }
  0x5b   :  { %v337_v31 = vmul.f32 %v336_v27, %v298_v15  ;;  %v395_v23 = vmul.f32 %v394_v36, %v389_v11 }
  0x5c   :  { %v540_v21 = vadd.f32 0.2548296, %v539_v25 }
  0x5d   :  { %627 = vmatmul.msk.f32.vlgmr.msrb.gmra.mxu0 %vm107_vm8, %v337_v31  ;;  %v396_v55 = vadd.f32 -0.28449672, %v395_v23 }
  0x5e   :  { %v541_v40 = vmul.f32 %v540_v21, %v531_v41 }
  0x5f   :  { %v397_v45 = vmul.f32 %v396_v55, %v389_v11 }
  0x60   :  { %v546_v0 = vmul.f32 %v678_v2, %v541_v40 }
  0x61   :  { %v398_v46 = vadd.f32 0.2548296, %v397_v45 }
  0x62   :  { %v547_v44 = vsub.f32 1.0, %v546_v0 }
  0x63   :  { %v399_v39 = vmul.f32 %v398_v46, %v389_v11 }
  0x64   :  { %v548_v48 = vmul.f32 %v547_v44, %v514_v43 }
  0x65   :  { %v404_v9 = vmul.f32 %v680_v47, %v399_v39 }
  0x66   :  { %v549_v42 = vadd.f32 1.0, %v548_v48 }
  0x67   :  { %v405_v22 = vsub.f32 1.0, %v404_v9 }
  0x68   :  { %v550_v35 = vmul.f32 %v549_v42, %v511_v34 }
  0x69   :  { %v406_v26 = vmul.f32 %v405_v22, %v372_v50 }
  0x6a   :  { %645 = vmatmul.msk.f32.vlgmr.msrb.gmra.mxu3 %vm107_vm8, %v550_v35 }
  0x6b   :  { %v407_v52 = vadd.f32 1.0, %v406_v26 }
  0x6d   :  { %v408_v53 = vmul.f32 %v407_v52, %v369_v6 }
  0x6f   :  { %633 = vmatmul.msk.f32.vlgmr.msrb.gmra.mxu1 %vm107_vm8, %v408_v53  ;;  %vm585_vm8 = vcmask 17408  }
  0xb9   :  { %v128_v60 = vpop.f32.mrf.mxu0 }
  0xbc   :  { %v151_v18 = vpop.f32.mrf.mxu1 }
  0xbd   :  { %v152_v33 = vadd.f32 %v151_v18, %v128_v60 }
  0xbe   :  { %v221_v41 = vpop.f32.mrf.mxu2 }
  0xbf   :  { %v224_v17 = vadd.f32 %v221_v41, %v152_v33 }
  0xc3   :  { %v292_v54 = vpop.f32.mrf.mxu3 }
  0xc4   :  { %v295_v56 = vadd.f32 %v292_v54, %v224_v17 }
  0xd1   :  { %v505_v62 = vpop.f32.mrf.mxu2 }
  0xda   :  { %v363_v58 = vpop.f32.mrf.mxu0 }
  0xdb   :  { %v366_v59 = vadd.f32 %v363_v58, %v295_v56 }
  0xec   :  { %v434_v38 = vpop.f32.mrf.mxu1 }
  0xed   :  { %v437_v63 = vadd.f32 %v434_v38, %v366_v59  ;;  %v576_v37 = vpop.f32.mrf.mxu3 }
  0xef   :  { %v508_v61 = vadd.f32 %v505_v62, %v437_v63 }
  0xf1   :  { %v579_v20 = vadd.f32 %v576_v37, %v508_v61 }
  0xf3   :  { %v584_v1 = vadd.f32 %v648_v19, %v579_v20 }
  0xf5   :  { %586 = vst.msk [vmem:[#allocation2] sm:$0x3] %vm585_vm8, %v584_v1 }
  0xf6   :  { %597 = dma.vmem_to_hbm [thread:$0]  %s593_s12, 32, %s595_s15, [#allocation3]  }
  0xf7   :  { %705 = dma.done.wait [#allocation3], 32  }
  0xf8   :  { %706 = vsyncadd [#allocation3], 4294967264 }
  0xf9   :  { %602 = vsyncpa [#allocation3], 1 }

// kernel: lstm_attention_forward.5
= control target key start
LH: loop header
LB: loop body
LE: loop exit
PB: predicated region body
PF: predicated region fallthrough
CT: control target
= control target key end

     0   :  { %vm44_vm0 = vcmask 261120   ;;  %s952_s27 = smov 120   ;;  %s953_s28 = smov 96   ;;  %vm77_vm1 = vcmask 64512   ;;  %vm351_vm2 = vcmask 130048   ;;  %vm353_vm3 = vcmask 195584   ;;  %s1258_s1 = inlined_call_operand.vmem [shape: f32[32,96], index: 1, kind: input, shape index: {}]   ;;  %s1259_s0 = inlined_call_operand.vmem [shape: f32[16,32], index: 0, kind: input, shape index: {}]   ;;  %s1260_s2 = inlined_call_operand.vmem [shape: f32[32,32], index: 2, kind: input, shape index: {}]   ;;  %s1261_s3 = inlined_call_operand.vmem [shape: f32[1,32], index: 3, kind: input, shape index: {}]   ;;  %s1262_s4 = inlined_call_operand.vmem [shape: f32[1,32], index: 4, kind: input, shape index: {}]   ;;  %s1263_s6 = inlined_call_operand.vmem [shape: f32[1,64], index: 6, kind: input, shape index: {}]   ;;  %s1264_s5 = inlined_call_operand.vmem [shape: f32[32,64], index: 5, kind: input, shape index: {}]   ;;  %s1265_s8 = inlined_call_operand.vmem [shape: f32[1,32], index: 8, kind: input, shape index: {}]   ;;  %s1266_s9 = inlined_call_operand.vmem [shape: f32[1,32], index: 9, kind: input, shape index: {}]   ;;  %s1267_s10 = inlined_call_operand.vmem [shape: f32[1,32], index: 10, kind: input, shape index: {}]   ;;  %s1268_s7 = inlined_call_operand.vmem [shape: f32[64,32], index: 7, kind: input, shape index: {}]   ;;  %s1269_s11 = inlined_call_operand.vmem [shape: f32[16,32], index: 11, kind: output, shape index: {}]  }
   0x1   :  { %v43_v0 = vld [vmem:[%s1258_s1 + $0x18] sm:$0xff]  ;;  %v42_v1 = vld [vmem:[%s1258_s1 + $0x10] sm:$0xff]  ;;  %v41_v2 = vld [vmem:[%s1258_s1 + $0x8] sm:$0xff]  ;;  %s955_s29 = smov 80   ;;  %s956_s30 = smov 112   ;;  %vm809_vm9 = vcmask 523264  }
   0x2   :  { %63 = vmatpush.msra.mxu0 %v43_v0  ;;  %v40_v3 = vld [vmem:[%s1258_s1] sm:$0xff]  ;;  %s954_s1 = smov 64   ;;  %s957_s12 = smov 88   ;;  %v1076_v27 = vld [vmem:[%s1259_s0 + $0x8] sm:$0xff] }
   0x3   :  { %v1042_v4 = vld [vmem:[%s1259_s0] sm:$0xff]  ;;  %s958_s15 = smov 48   ;;  %s959_s16 = smov 72  }
   0x4   :  { %64 = vmatpush.msra.mxu0 %v42_v1  ;;  %s960_s0 = smov 56   ;;  %s961_s17 = smov 104  }
   0x5   :  { %s962_s18 = smov 40   ;;  %s963_s19 = smov 8  }
   0x6   :  { %65 = vmatpush.msra.mxu0 %v41_v2  ;;  %s964_s20 = smov 16   ;;  %s965_s21 = smov 24  }
   0x8   :  { %66 = vmatpush.msra.mxu0 %v40_v3 }
   0x9   :  { %859 = vmatmul.msk.f32.vlgmr.msra.gmra.mxu0 %vm44_vm0, %v1042_v4 }
  0x11   :  { %860 = vmatmul.msk.f32.gmra.mxu0 %vm44_vm0, %v1076_v27 }
  0x86   :  { %v1046_v5 = vpop.f32.mrf.mxu0 }
  0x87   :  { %140 = vrot.lane.b32.xlu2 %v1046_v5, %s952_s27  ;;  %75 = vrot.lane.b32.xlu0 %v1046_v5, %s953_s28 }
  0x8e   :  { %v1084_v35 = vpop.f32.mrf.mxu0 }
  0x8f   :  { %114 = vrot.lane.b32.xlu2 %v1046_v5, %s954_s1 }
  0x97   :  { %208 = vrot.lane.b32.xlu2 %v1046_v5, %s955_s29 }
  0x9f   :  { %206 = vrot.lane.b32.xlu2 %v1046_v5, %s956_s30 }
  0xe1   :  { %v141_v6 = vpop.permute.xlu2 %140 }
  0xe9   :  { %v115_v7 = vpop.permute.xlu2 %114 }
  0xf1   :  { %v209_v9 = vpop.permute.xlu2 %208 }
  0xf9   :  { %v76_v8 = vpop.permute.xlu0 %75  ;;  %v207_v21 = vpop.permute.xlu2 %206 }
  0xfa   :  { %861 = vmatpush.xpose.msk.msra.mxu1 %vm77_vm1, %v76_v8 }
  0xfd   :  { %862 = vmatmul.msk.f32.vlgmr.msra.gmra.mxu1 %vm77_vm1, %v1046_v5 }
  0xfe   :  { %135 = vmatpush.msrb.mxu1 %v115_v7 }
 0x100   :  { %867 = vmatpush.xpose.msk.msra.mxu1 %vm77_vm1, %v209_v9 }
 0x17a   :  { %v99_v10 = vpop.f32.mrf.mxu1 }
 0x17b   :  { %v102_v11 = vmul.f32 0.35355338, %v99_v10 }
 0x17d   :  { %v103_v12 = vsel %vm77_vm1, %v102_v11, -inf }
 0x17e   :  { %104 = vmax.xlane.f32.xlu0 %v103_v12 }
 0x1f1   :  { %v105_v13 = vpop.xlane.xlu0 %104 }
 0x1f2   :  { %v106_v14 = vsub.f32 %v102_v11, %v105_v13 }
 0x1f4   :  { %v107_v15 = vmul.f32 1.442695, %v106_v14 }
 0x1f6   :  { %912 = vpow2.f32 %v107_v15 }
 0x1fc   :  { %v913_v16 = vpop.eup %912 }
 0x1fd   :  { %v109_v17 = vsel %vm77_vm1, %v913_v16, 0.0 }
 0x1fe   :  { %110 = vadd.xlane.f32.xlu1 %v109_v17 }
 0x217   :  { %142 = vrot.lane.b32.xlu1 %v1046_v5, %s957_s12 }
 0x271   :  { %v111_v18 = vpop.xlane.xlu1 %110 }
 0x272   :  { %914 = vrcp.f32 %v111_v18 }
 0x278   :  { %v915_v19 = vpop.eup %914 }
 0x279   :  { %v113_v20 = vmul.f32 %v915_v19, %v913_v16 }
 0x27b   :  { %863 = vmatmul.msk.f32.vlgmr.msrb.gmra.mxu1 %vm77_vm1, %v113_v20 }
 0x283   :  { %868 = vmatmul.msk.f32.vlgmr.msra.gmra.mxu1 %vm77_vm1, %v207_v21 }
 0x289   :  { %v143_v22 = vpop.permute.xlu1 %142 }
 0x28a   :  { %864 = vmatpush.xpose.msk.msra.mxu3 %vm77_vm1, %v143_v22 }
 0x28d   :  { %865 = vmatmul.msk.f32.vlgmr.msra.gmra.mxu3 %vm77_vm1, %v141_v6 }
 0x2f8   :  { %v1070_v23 = vpop.f32.mrf.mxu1 }
 0x300   :  { %v231_v24 = vpop.f32.mrf.mxu1 }
 0x301   :  { %v234_v25 = vmul.f32 0.35355338, %v231_v24 }
 0x303   :  { %v235_v26 = vsel %vm77_vm1, %v234_v25, -inf }
 0x304   :  { %236 = vmax.xlane.f32.xlu1 %v235_v26 }
 0x310   :  { %v165_v28 = vpop.f32.mrf.mxu3 }
 0x311   :  { %v168_v29 = vmul.f32 0.35355338, %v165_v28 }
 0x313   :  { %v169_v30 = vsel %vm77_vm1, %v168_v29, -inf }
 0x314   :  { %170 = vmax.xlane.f32.xlu2 %v169_v30 }
 0x31d   :  { %246 = vrot.lane.b32.xlu1 %v1046_v5, %s958_s15 }
 0x325   :  { %420 = vrot.lane.b32.xlu1 %v1084_v35, %s952_s27 }
 0x32c   :  { %274 = vrot.lane.b32.xlu2 %v1046_v5, %s959_s16 }
 0x32d   :  { %486 = vrot.lane.b32.xlu1 %v1084_v35, %s956_s30 }
 0x334   :  { %422 = vrot.lane.b32.xlu2 %v1084_v35, %s957_s12 }
 0x33c   :  { %554 = vrot.lane.b32.xlu2 %v1084_v35, %s959_s16 }
 0x377   :  { %v237_v31 = vpop.xlane.xlu1 %236 }
 0x378   :  { %v238_v39 = vsub.f32 %v234_v25, %v237_v31 }
 0x37a   :  { %v239_v40 = vmul.f32 1.442695, %v238_v39 }
 0x387   :  { %v171_v32 = vpop.xlane.xlu2 %170 }
 0x388   :  { %v172_v33 = vsub.f32 %v168_v29, %v171_v32 }
 0x38a   :  { %v173_v34 = vmul.f32 1.442695, %v172_v33 }
 0x38c   :  { %916 = vpow2.f32 %v173_v34 }
 0x38d   :  { %918 = vpow2.f32 %v239_v40 }
 0x38f   :  { %v247_v36 = vpop.permute.xlu1 %246  ;;  %v275_v44 = vpop.permute.xlu2 %274 }
 0x390   :  { %267 = vmatpush.msrb.mxu3 %v247_v36 }
 0x392   :  { %v917_v37 = vpop.eup %916 }
 0x393   :  { %v175_v38 = vsel %vm77_vm1, %v917_v37, 0.0  ;;  %v919_v41 = vpop.eup %918 }
 0x394   :  { %176 = vadd.xlane.f32.xlu0 %v175_v38  ;;  %v241_v42 = vsel %vm77_vm1, %v919_v41, 0.0 }
 0x397   :  { %v423_v46 = vpop.permute.xlu2 %422  ;;  %v421_v52 = vpop.permute.xlu1 %420 }
 0x39f   :  { %v555_v50 = vpop.permute.xlu2 %554  ;;  %v487_v58 = vpop.permute.xlu1 %486 }
 0x3a8   :  { %180 = vrot.lane.b32.xlu0 %v1046_v5, %s960_s0 }
 0x3b0   :  { %272 = vrot.lane.b32.xlu0 %v1046_v5, %s961_s17 }
 0x3b8   :  { %356 = vrot.lane.b32.xlu0 %v1084_v35, %s953_s28 }
 0x3c0   :  { %488 = vrot.lane.b32.xlu0 %v1084_v35, %s955_s29 }
 0x3ea   :  { %242 = vadd.xlane.f32.xlu0 %v241_v42 }
 0x3fe   :  { %552 = vrot.lane.b32.xlu0 %v1084_v35, %s961_s17 }
 0x407   :  { %v177_v43 = vpop.xlane.xlu0 %176 }
 0x408   :  { %920 = vrcp.f32 %v177_v43 }
 0x40e   :  { %v921_v45 = vpop.eup %920 }
 0x40f   :  { %v179_v48 = vmul.f32 %v921_v45, %v917_v37 }
 0x41a   :  { %v181_v47 = vpop.permute.xlu0 %180 }
 0x41b   :  { %201 = vmatpush.msra.mxu2 %v181_v47 }
 0x41c   :  { %866 = vmatmul.msk.f32.vlgmr.msra.gmra.mxu2 %vm77_vm1, %v179_v48 }
 0x41d   :  { %870 = vmatpush.xpose.msk.msrb.mxu2 %vm77_vm1, %v275_v44 }
 0x421   :  { %876 = vmatpush.xpose.msk.msra.mxu2 %vm77_vm1, %v423_v46 }
 0x422   :  { %v273_v49 = vpop.permute.xlu0 %272 }
 0x424   :  { %871 = vmatmul.msk.f32.vlgmr.msrb.gmra.mxu2 %vm77_vm1, %v273_v49 }
 0x425   :  { %882 = vmatpush.xpose.msk.msrb.mxu2 %vm77_vm1, %v555_v50 }
 0x42a   :  { %v357_v51 = vpop.permute.xlu0 %356 }
 0x42b   :  { %873 = vmatpush.xpose.msk.msra.mxu3 %vm77_vm1, %v357_v51 }
 0x42c   :  { %877 = vmatmul.msk.f32.vlgmr.msra.gmra.mxu2 %vm77_vm1, %v421_v52 }
 0x432   :  { %v489_v53 = vpop.permute.xlu0 %488 }
 0x45d   :  { %v243_v54 = vpop.xlane.xlu0 %242 }
 0x45e   :  { %922 = vrcp.f32 %v243_v54  ;;  %v635_v54 = vld [vmem:[%s1260_s2 + $0x10] sm:$0xff] }
 0x464   :  { %v923_v55 = vpop.eup %922 }
 0x465   :  { %v245_v56 = vmul.f32 %v923_v55, %v919_v41  ;;  %v634_v55 = vld [vmem:[%s1260_s2 + $0x8] sm:$0xff] }
 0x467   :  { %869 = vmatmul.msk.f32.vlgmr.msrb.gmra.mxu3 %vm77_vm1, %v245_v56 }
 0x468   :  { %879 = vmatpush.xpose.msk.msrb.mxu3 %vm77_vm1, %v489_v53  ;;  %v636_v53 = vld [vmem:[%s1260_s2 + $0x18] sm:$0xff] }
 0x46f   :  { %874 = vmatmul.msk.f32.vlgmr.msra.gmra.mxu3 %vm77_vm1, %v1084_v35 }
 0x470   :  { %v553_v57 = vpop.permute.xlu0 %552  ;;  %655 = vmatpush.msra.mxu3 %v636_v53 }
 0x471   :  { %883 = vmatmul.msk.f32.vlgmr.msrb.gmra.mxu2 %vm77_vm1, %v553_v57 }
 0x472   :  { %656 = vmatpush.msra.mxu3 %v635_v54 }
 0x474   :  { %657 = vmatpush.msra.mxu3 %v634_v55 }
 0x477   :  { %880 = vmatmul.msk.f32.vlgmr.msrb.gmra.mxu3 %vm77_vm1, %v487_v58 }
 0x49f   :  { %v203_v59 = vpop.f32.mrf.mxu2 }
 0x4a7   :  { %v297_v60 = vpop.f32.mrf.mxu2 }
 0x4a8   :  { %v300_v61 = vmul.f32 0.35355338, %v297_v60 }
 0x4aa   :  { %v301_v62 = vsel %vm77_vm1, %v300_v61, -inf }
 0x4ab   :  { %302 = vmax.xlane.f32.xlu2 %v301_v62  ;;  %v633_v62 = vld [vmem:[%s1260_s2] sm:$0xff] }
 0x4ac   :  { %658 = vmatpush.msra.mxu3 %v633_v62 }
 0x4af   :  { %v445_v63 = vpop.f32.mrf.mxu2 }
 0x4b0   :  { %v448_v0 = vmul.f32 0.35355338, %v445_v63 }
 0x4b2   :  { %v449_v1 = vsel %vm77_vm1, %v448_v0, -inf }
 0x4b3   :  { %450 = vmax.xlane.f32.xlu0 %v449_v1 }
 0x4ea   :  { %v269_v2 = vpop.f32.mrf.mxu3 }
 0x4f2   :  { %v379_v3 = vpop.f32.mrf.mxu3 }
 0x4f3   :  { %v382_v6 = vmul.f32 0.35355338, %v379_v3 }
 0x4f4   :  { %v577_v8 = vpop.f32.mrf.mxu2 }
 0x4f5   :  { %v383_v7 = vsel %vm77_vm1, %v382_v6, -inf  ;;  %v580_v9 = vmul.f32 0.35355338, %v577_v8 }
 0x4f6   :  { %384 = vmax.xlane.f32.xlu1 %v383_v7 }
 0x4f7   :  { %v581_v10 = vsel %vm77_vm1, %v580_v9, -inf }
 0x4fa   :  { %v511_v29 = vpop.f32.mrf.mxu3 }
 0x4fb   :  { %v514_v31 = vmul.f32 0.35355338, %v511_v29 }
 0x4fd   :  { %v515_v32 = vsel %vm77_vm1, %v514_v31, -inf }
 0x4fe   :  { %582 = vmax.xlane.f32.xlu1 %v581_v10 }
 0x51e   :  { %v303_v11 = vpop.xlane.xlu2 %302 }
 0x51f   :  { %v304_v12 = vsub.f32 %v300_v61, %v303_v11 }
 0x521   :  { %v305_v13 = vmul.f32 1.442695, %v304_v12 }
 0x523   :  { %924 = vpow2.f32 %v305_v13  ;;  %v683_v13 = vld [vmem:[%s1264_s5 + $0x18] sm:$0xff] }
 0x526   :  { %v451_v14 = vpop.xlane.xlu0 %450 }
 0x527   :  { %v452_v15 = vsub.f32 %v448_v0, %v451_v14  ;;  %v681_v14 = vld [vmem:[%s1264_s5 + $0x8] sm:$0xff] }
 0x529   :  { %v925_v16 = vpop.eup %924  ;;  %v453_v17 = vmul.f32 1.442695, %v452_v15  ;;  %v680_v15 = vld [vmem:[%s1264_s5] sm:$0xff] }
 0x52a   :  { %v307_v18 = vsel %vm77_vm1, %v925_v16, 0.0 }
 0x52b   :  { %926 = vpow2.f32 %v453_v17  ;;  %308 = vadd.xlane.f32.xlu0 %v307_v18 }
 0x531   :  { %v1121_v19 = vpop.eup %926 }
 0x532   :  { %v455_v20 = vsel %vm77_vm1, %v1121_v19, 0.0 }
 0x533   :  { %456 = vadd.xlane.f32.xlu1 %v455_v20 }
 0x53f   :  { %312 = vrot.lane.b32.xlu0 %v1046_v5, %s962_s18 }
 0x547   :  { %526 = vrot.lane.b32.xlu0 %v1084_v35, %s958_s15 }
 0x54c   :  { %394 = vrot.lane.b32.xlu1 %v1084_v35, %s954_s1 }
 0x54f   :  { %592 = vrot.lane.b32.xlu0 %v1084_v35, %s962_s18 }
 0x554   :  { %339 = vrot.lane.b32.xlu1 %v203_v59, %s963_s19 }
 0x557   :  { %343 = vrot.lane.b32.xlu0 %v269_v2, %s964_s20 }
 0x569   :  { %v385_v21 = vpop.xlane.xlu1 %384 }
 0x56a   :  { %v386_v26 = vsub.f32 %v382_v6, %v385_v21 }
 0x56c   :  { %v387_v30 = vmul.f32 1.442695, %v386_v26 }
 0x571   :  { %v583_v22 = vpop.xlane.xlu1 %582 }
 0x572   :  { %v584_v24 = vsub.f32 %v580_v9, %v583_v22 }
 0x574   :  { %v585_v25 = vmul.f32 1.442695, %v584_v24 }
 0x576   :  { %928 = vpow2.f32 %v585_v25 }
 0x577   :  { %930 = vpow2.f32 %v387_v30 }
 0x57c   :  { %v1133_v5 = vpop.eup %928 }
 0x57d   :  { %v587_v28 = vsel %vm77_vm1, %v1133_v5, 0.0  ;;  %v931_v33 = vpop.eup %930 }
 0x57e   :  { %588 = vadd.xlane.f32.xlu2 %v587_v28  ;;  %v389_v34 = vsel %vm77_vm1, %v931_v33, 0.0  ;;  %v1206_v28 = vld [vmem:[%s1263_s6] ss:$0 sm:$0xff] }
 0x586   :  { %516 = vmax.xlane.f32.xlu2 %v515_v32 }
 0x58e   :  { %390 = vadd.xlane.f32.xlu2 %v389_v34 }
 0x59e   :  { %v309_v36 = vpop.xlane.xlu0 %308 }
 0x59f   :  { %932 = vrcp.f32 %v309_v36  ;;  %v804_v36 = vld [vmem:[%s1268_s7 + $0x38] sm:$0xff] }
 0x5a0   :  { %824 = vmatpush.msra.mxu2 %v804_v36 }
 0x5a5   :  { %v933_v37 = vpop.eup %932 }
 0x5a6   :  { %v311_v38 = vmul.f32 %v933_v37, %v925_v16  ;;  %v457_v40 = vpop.xlane.xlu1 %456  ;;  %v1185_v16 = vld [vmem:[%s1261_s3] ss:$0 sm:$0xff]  ;;  %v803_v37 = vld [vmem:[%s1268_s7 + $0x30] sm:$0xff] }
 0x5a7   :  { %825 = vmatpush.msra.mxu2 %v803_v37 }
 0x5b1   :  { %v313_v39 = vpop.permute.xlu0 %312 }
 0x5b2   :  { %333 = vmatpush.msrb.mxu1 %v313_v39  ;;  %v801_v39 = vld [vmem:[%s1268_s7 + $0x20] sm:$0xff] }
 0x5b3   :  { %872 = vmatmul.msk.f32.vlgmr.msrb.gmra.mxu1 %vm77_vm1, %v311_v38  ;;  %v802_v38 = vld [vmem:[%s1268_s7 + $0x28] sm:$0xff] }
 0x5b4   :  { %826 = vmatpush.msra.mxu2 %v802_v38 }
 0x5b6   :  { %827 = vmatpush.msra.mxu2 %v801_v39 }
 0x5b9   :  { %v527_v42 = vpop.permute.xlu0 %526 }
 0x5be   :  { %v395_v41 = vpop.permute.xlu1 %394 }
 0x5bf   :  { %415 = vmatpush.msrb.mxu0 %v395_v41  ;;  %v800_v41 = vld [vmem:[%s1268_s7 + $0x18] sm:$0xff] }
 0x5c0   :  { %828 = vmatpush.msra.mxu2 %v800_v41 }
 0x5c1   :  { %547 = vmatpush.msra.mxu0 %v527_v42  ;;  %v593_v61 = vpop.permute.xlu0 %592 }
 0x5c6   :  { %v340_v1 = vpop.permute.xlu1 %339 }
 0x5c7   :  { %v350_v3 = vsel %vm77_vm1, %v1070_v23, %v340_v1  ;;  %v682_v23 = vld [vmem:[%s1264_s5 + $0x10] sm:$0xff] }
 0x5c9   :  { %v344_v2 = vpop.permute.xlu0 %343 }
 0x5ca   :  { %v352_v6 = vsel %vm351_vm2, %v350_v3, %v344_v2 }
 0x5f1   :  { %v589_v43 = vpop.xlane.xlu2 %588 }
 0x5f9   :  { %v517_v44 = vpop.xlane.xlu2 %516 }
 0x5fa   :  { %v518_v45 = vsub.f32 %v514_v31, %v517_v44 }
 0x5fc   :  { %v519_v46 = vmul.f32 1.442695, %v518_v45 }
 0x5fe   :  { %934 = vpow2.f32 %v519_v46  ;;  %v798_v46 = vld [vmem:[%s1268_s7 + $0x8] sm:$0xff] }
 0x601   :  { %v391_v47 = vpop.xlane.xlu2 %390 }
 0x602   :  { %936 = vrcp.f32 %v391_v47 }
 0x603   :  { %938 = vrcp.f32 %v457_v40 }
 0x604   :  { %v935_v48 = vpop.eup %934 }
 0x605   :  { %v521_v49 = vsel %vm77_vm1, %v935_v48, 0.0 }
 0x606   :  { %522 = vadd.xlane.f32.xlu2 %v521_v49  ;;  %v797_v49 = vld [vmem:[%s1268_s7] sm:$0xff] }
 0x608   :  { %v937_v50 = vpop.eup %936 }
 0x609   :  { %v393_v51 = vmul.f32 %v937_v50, %v931_v33  ;;  %v939_v56 = vpop.eup %938 }
 0x60a   :  { %v459_v58 = vmul.f32 %v939_v56, %v1121_v19  ;;  %v1191_v19 = vld [vmem:[%s1262_s4] ss:$0 sm:$0xff] }
 0x60b   :  { %875 = vmatmul.msk.f32.vlgmr.msrb.gmra.mxu0 %vm77_vm1, %v393_v51 }
 0x60c   :  { %706 = vmatpush.msrb.mxu0 %v683_v13 }
 0x60e   :  { %707 = vmatpush.msrb.mxu0 %v682_v23 }
 0x610   :  { %708 = vmatpush.msrb.mxu0 %v681_v14 }
 0x612   :  { %709 = vmatpush.msrb.mxu0 %v680_v15  ;;  %v909_v15 = vld [vmem:[%s1265_s8] ss:$0 sm:$0xff] }
 0x61e   :  { %460 = vrot.lane.b32.xlu2 %v1084_v35, %s960_s0 }
 0x630   :  { %v335_v52 = vpop.f32.mrf.mxu1 }
 0x631   :  { %347 = vrot.lane.b32.xlu1 %v335_v52, %s965_s21 }
 0x679   :  { %v523_v35 = vpop.xlane.xlu2 %522 }
 0x67a   :  { %940 = vrcp.f32 %v523_v35 }
 0x67b   :  { %942 = vrcp.f32 %v589_v43  ;;  %v799_v43 = vld [vmem:[%s1268_s7 + $0x10] sm:$0xff] }
 0x67c   :  { %829 = vmatpush.msra.mxu2 %v799_v43 }
 0x67e   :  { %830 = vmatpush.msra.mxu2 %v798_v46 }
 0x680   :  { %v941_v57 = vpop.eup %940  ;;  %831 = vmatpush.msra.mxu2 %v797_v49 }
 0x681   :  { %v525_v59 = vmul.f32 %v941_v57, %v935_v48  ;;  %v461_v60 = vpop.permute.xlu2 %460  ;;  %v943_v63 = vpop.eup %942 }
 0x682   :  { %481 = vmatpush.msra.mxu1 %v461_v60  ;;  %v591_v0 = vmul.f32 %v943_v63, %v1133_v5 }
 0x683   :  { %878 = vmatmul.msk.f32.vlgmr.msra.gmra.mxu1 %vm77_vm1, %v459_v58  ;;  %881 = vmatmul.msk.f32.vlgmr.msra.gmra.mxu0 %vm77_vm1, %v525_v59 }
 0x684   :  { %613 = vmatpush.msrb.mxu1 %v593_v61 }
 0x688   :  { %v417_v9 = vpop.f32.mrf.mxu0 }
 0x68b   :  { %884 = vmatmul.msk.f32.vlgmr.msrb.gmra.mxu1 %vm77_vm1, %v591_v0 }
 0x6a3   :  { %v348_v7 = vpop.permute.xlu1 %347 }
 0x6a4   :  { %v354_v8 = vsel %vm353_vm3, %v352_v6, %v348_v7  ;;  %v966_v6 = vmov -1.0  }
 0x6a5   :  { %885 = vmatmul.msk.f32.vlgmr.msra.gmra.mxu3 %vm44_vm0, %v354_v8 }
 0x700   :  { %v483_v10 = vpop.f32.mrf.mxu1  ;;  %v549_v11 = vpop.f32.mrf.mxu0 }
 0x701   :  { %619 = vrot.lane.b32.xlu2 %v483_v10, %s963_s19  ;;  %623 = vrot.lane.b32.xlu0 %v549_v11, %s964_s20 }
 0x708   :  { %v615_v12 = vpop.f32.mrf.mxu1 }
 0x709   :  { %627 = vrot.lane.b32.xlu1 %v615_v12, %s965_s21 }
 0x728   :  { %v660_v17 = vpop.f32.mrf.mxu3 }
 0x729   :  { %v666_v18 = vadd.f32 %v660_v17, %v1042_v4 }
 0x72b   :  { %v672_v20 = vmul.f32 %v1185_v16, %v666_v18 }
 0x72d   :  { %v1195_v21 = vadd.f32 %v1191_v19, %v672_v20  ;;  %v910_v20 = vld [vmem:[%s1266_s9] ss:$0 sm:$0xff] }
 0x72f   :  { %887 = vmatmul.msk.f32.vlgmr.msrb.gmra.mxu0 %vm44_vm0, %v1195_v21 }
 0x75b   :  { %v620_v22 = vpop.permute.xlu2 %619 }
 0x75c   :  { %v630_v25 = vsel %vm77_vm1, %v417_v9, %v620_v22 }
 0x773   :  { %v624_v24 = vpop.permute.xlu0 %623 }
 0x774   :  { %v631_v5 = vsel %vm351_vm2, %v630_v25, %v624_v24 }
 0x77b   :  { %v628_v4 = vpop.permute.xlu1 %627 }
 0x77c   :  { %v632_v26 = vsel %vm353_vm3, %v631_v5, %v628_v4 }
 0x77d   :  { %886 = vmatmul.msk.f32.gmra.mxu3 %vm44_vm0, %v632_v26 }
 0x7ac   :  { %v711_v29 = vpop.f32.mrf.mxu0 }
 0x7ad   :  { %v712_v30 = vadd.f32 %v1206_v28, %v711_v29 }
 0x7af   :  { %v719_v31 = vmul.f32 0.70710677, %v712_v30  ;;  %v717_v9 = vmul.f32 0.5, %v712_v30 }
 0x7b1   :  { %v725_v32 = vand.u32 2147483647, %v719_v31  ;;  %vm721_vm8 = vcmp.ge.f32.partialorder %v719_v31, 0.0 }
 0x7b2   :  { %v723_v7 = vsel %vm721_vm8, 1.0, %v966_v6 }
 0x7b3   :  { %v727_v33 = vmul.f32 0.3275911, %v725_v32  ;;  %v779_v54 = vsub.f32 0.0, %v725_v32 }
 0x7b5   :  { %v729_v34 = vadd.f32 1.0, %v727_v33  ;;  %v781_v56 = vmul.f32 %v779_v54, %v725_v32 }
 0x7b7   :  { %944 = vrcp.f32 %v729_v34  ;;  %v742_v45 = vand.u32 2147483648, %v729_v34  ;;  %v740_v48 = vand.u32 2147483647, %v729_v34  ;;  %vm736_vm5 = vweird.f32 %v729_v34 }
 0x7b8   :  { %v783_v59 = vmul.f32 1.442695, %v781_v56 }
 0x7b9   :  { %v743_v51 = vor.u32 1.1754944e-38, %v742_v45  ;;  %vm741_vm7 = vcmp.eq.f32.partialorder %v740_v48, 8.507059e+37 }
 0x7ba   :  { %946 = vpow2.f32 %v783_v59 }
 0x7bd   :  { %v945_v40 = vpop.eup %944 }
 0x7be   :  { %v732_v42 = vmul.f32 %v945_v40, %v729_v34  ;;  %vm737_vm4 = vweird.f32 %v945_v40 }
 0x7bf   :  { %vm738_vm6 = vmor %vm736_vm5, %vm737_vm4 }
 0x7c0   :  { %v733_v44 = vsub.f32 1.0, %v732_v42  ;;  %v947_v1 = vpop.eup %946 }
 0x7c2   :  { %v734_v47 = vmul.f32 %v945_v40, %v733_v44 }
 0x7c4   :  { %v735_v50 = vadd.f32 %v945_v40, %v734_v47 }
 0x7c6   :  { %v739_v52 = vsel %vm738_vm6, %v945_v40, %v735_v50 }
 0x7c7   :  { %v744_v53 = vsel %vm741_vm7, %v743_v51, %v739_v52 }
 0x7c8   :  { %v761_v55 = vmul.f32 1.0614054, %v744_v53 }
 0x7ca   :  { %v763_v35 = vadd.f32 -1.4531521, %v761_v55 }
 0x7cc   :  { %v765_v57 = vmul.f32 %v763_v35, %v744_v53 }
 0x7ce   :  { %v767_v58 = vadd.f32 1.4214138, %v765_v57 }
 0x7d0   :  { %v769_v60 = vmul.f32 %v767_v58, %v744_v53 }
 0x7d2   :  { %v771_v61 = vadd.f32 -0.28449672, %v769_v60 }
 0x7d4   :  { %v773_v62 = vmul.f32 %v771_v61, %v744_v53 }
 0x7d6   :  { %v775_v63 = vadd.f32 0.2548296, %v773_v62 }
 0x7d8   :  { %v777_v0 = vmul.f32 %v775_v63, %v744_v53 }
 0x7da   :  { %v787_v2 = vmul.f32 %v947_v1, %v777_v0 }
 0x7dc   :  { %v789_v3 = vsub.f32 1.0, %v787_v2 }
 0x7de   :  { %v791_v8 = vmul.f32 %v789_v3, %v723_v7 }
 0x7e0   :  { %v793_v10 = vadd.f32 1.0, %v791_v8 }
 0x7e2   :  { %v795_v11 = vmul.f32 %v793_v10, %v717_v9 }
 0x7e4   :  { %889 = vmatmul.msk.f32.vlgmr.msra.gmra.mxu2 %vm809_vm9, %v795_v11 }
 0x800   :  { %v663_v12 = vpop.f32.mrf.mxu3 }
 0x801   :  { %v667_v13 = vadd.f32 %v663_v12, %v1076_v27  ;;  %v911_v27 = vld [vmem:[%s1267_s10] ss:$0 sm:$0xff] }
 0x803   :  { %v673_v23 = vmul.f32 %v1185_v16, %v667_v13 }
 0x805   :  { %v679_v14 = vadd.f32 %v1191_v19, %v673_v23 }
 0x807   :  { %888 = vmatmul.msk.f32.gmra.mxu0 %vm44_vm0, %v679_v14 }
 0x867   :  { %v833_v17 = vpop.f32.mrf.mxu2 }
 0x868   :  { %v834_v18 = vadd.f32 %v909_v15, %v833_v17 }
 0x86a   :  { %v839_v22 = vadd.f32 %v834_v18, %v1195_v21 }
 0x86c   :  { %v845_v16 = vmul.f32 %v910_v20, %v839_v22 }
 0x86e   :  { %v851_v19 = vadd.f32 %v911_v27, %v845_v16 }
 0x870   :  { %853 = vst.msk [vmem:[%s1269_s11] sm:$0xff] %vm44_vm0, %v851_v19 }
 0x884   :  { %v714_v24 = vpop.f32.mrf.mxu0 }
 0x885   :  { %v715_v25 = vadd.f32 %v1206_v28, %v714_v24 }
 0x887   :  { %v720_v5 = vmul.f32 0.70710677, %v715_v25  ;;  %v718_v35 = vmul.f32 0.5, %v715_v25 }
 0x889   :  { %v726_v4 = vand.u32 2147483647, %v720_v5  ;;  %vm722_vm14 = vcmp.ge.f32.partialorder %v720_v5, 0.0 }
 0x88a   :  { %v724_v54 = vsel %vm722_vm14, 1.0, %v966_v6 }
 0x88b   :  { %v728_v26 = vmul.f32 0.3275911, %v726_v4  ;;  %v780_v39 = vsub.f32 0.0, %v726_v4 }
 0x88d   :  { %v730_v29 = vadd.f32 1.0, %v728_v26  ;;  %v782_v42 = vmul.f32 %v780_v39, %v726_v4 }
 0x88f   :  { %948 = vrcp.f32 %v730_v29  ;;  %v757_v32 = vand.u32 2147483648, %v730_v29  ;;  %v755_v34 = vand.u32 2147483647, %v730_v29  ;;  %vm751_vm11 = vweird.f32 %v730_v29 }
 0x890   :  { %v785_v45 = vmul.f32 1.442695, %v782_v42 }
 0x891   :  { %v758_v37 = vor.u32 1.1754944e-38, %v757_v32  ;;  %vm756_vm13 = vcmp.eq.f32.partialorder %v755_v34, 8.507059e+37 }
 0x892   :  { %950 = vpow2.f32 %v785_v45 }
 0x895   :  { %v949_v21 = vpop.eup %948 }
 0x896   :  { %v747_v30 = vmul.f32 %v949_v21, %v730_v29  ;;  %vm752_vm10 = vweird.f32 %v949_v21 }
 0x897   :  { %vm753_vm12 = vmor %vm751_vm11, %vm752_vm10 }
 0x898   :  { %v748_v31 = vsub.f32 1.0, %v747_v30  ;;  %v951_v51 = vpop.eup %950 }
 0x89a   :  { %v749_v33 = vmul.f32 %v949_v21, %v748_v31 }
 0x89c   :  { %v750_v36 = vadd.f32 %v949_v21, %v749_v33 }
 0x89e   :  { %v754_v38 = vsel %vm753_vm12, %v949_v21, %v750_v36 }
 0x89f   :  { %v759_v28 = vsel %vm756_vm13, %v758_v37, %v754_v38 }
 0x8a0   :  { %v762_v40 = vmul.f32 1.0614054, %v759_v28 }
 0x8a2   :  { %v764_v41 = vadd.f32 -1.4531521, %v762_v40 }
 0x8a4   :  { %v766_v43 = vmul.f32 %v764_v41, %v759_v28 }
 0x8a6   :  { %v768_v44 = vadd.f32 1.4214138, %v766_v43 }
 0x8a8   :  { %v770_v46 = vmul.f32 %v768_v44, %v759_v28 }
 0x8aa   :  { %v772_v47 = vadd.f32 -0.28449672, %v770_v46 }
 0x8ac   :  { %v774_v48 = vmul.f32 %v772_v47, %v759_v28 }
 0x8ae   :  { %v776_v49 = vadd.f32 0.2548296, %v774_v48 }
 0x8b0   :  { %v778_v50 = vmul.f32 %v776_v49, %v759_v28 }
 0x8b2   :  { %v788_v52 = vmul.f32 %v951_v51, %v778_v50 }
 0x8b4   :  { %v790_v53 = vsub.f32 1.0, %v788_v52 }
 0x8b6   :  { %v792_v55 = vmul.f32 %v790_v53, %v724_v54 }
 0x8b8   :  { %v794_v56 = vadd.f32 1.0, %v792_v55 }
 0x8ba   :  { %v796_v57 = vmul.f32 %v794_v56, %v718_v35 }
 0x8bc   :  { %890 = vmatmul.msk.f32.gmra.mxu2 %vm809_vm9, %v796_v57 }
 0x93f   :  { %v836_v58 = vpop.f32.mrf.mxu2 }
 0x940   :  { %v837_v59 = vadd.f32 %v909_v15, %v836_v58 }
 0x942   :  { %v840_v60 = vadd.f32 %v837_v59, %v679_v14 }
 0x944   :  { %v846_v61 = vmul.f32 %v910_v20, %v840_v60 }
 0x946   :  { %v852_v62 = vadd.f32 %v911_v27, %v846_v61 }
 0x948   :  { %854 = vst.msk [vmem:[%s1269_s11 + $0x8] sm:$0xff] %vm44_vm0, %v852_v62 }

// kernel: lstm_attention_forward.4
= control target key start
LH: loop header
LB: loop body
LE: loop exit
PB: predicated region body
PF: predicated region fallthrough
CT: control target
= control target key end

     0   :  { %vm35_vm0 = vcmask 1043456   ;;  %vm74_vm1 = vcmask 1041408   ;;  %vm31_vm2 = vcmask 31744   ;;  %vm70_vm3 = vcmask 80896   ;;  %s1156_s12 = smov 64   ;;  %s1479_s4 = inlined_call_operand.vmem [shape: f32[4,16], index: 4, kind: input, shape index: {}]   ;;  %s1480_s3 = inlined_call_operand.vmem [shape: f32[10,16], index: 3, kind: input, shape index: {}]   ;;  %s1481_s6 = inlined_call_operand.vmem [shape: f32[32,128], index: 6, kind: input, shape index: {}]   ;;  %s1482_s2 = inlined_call_operand.vmem [shape: f32[2,4], index: 2, kind: input, shape index: {}]   ;;  %s1483_s1 = inlined_call_operand.vmem [shape: f32[8,2,10], index: 1, kind: input, shape index: {}]   ;;  %s1484_s7 = inlined_call_operand.vmem [shape: f32[1,128], index: 7, kind: input, shape index: {}]   ;;  %s1485_s5 = inlined_call_operand.vmem [shape: f32[16,128], index: 5, kind: input, shape index: {}]   ;;  %s1486_s0 = inlined_call_operand.vmem [shape: f32[8,2,16], index: 0, kind: input, shape index: {}]   ;;  %s1487_s8 = inlined_call_operand.vmem [shape: f32[8,2,32], index: 8, kind: output, shape index: {}]  }
   0x1   :  { %v30_v0 = vld [vmem:[%s1479_s4] sm:$0xf]  ;;  %v1209_v1 = vld [vmem:[%s1480_s3 + $0x8] sm:$0x3]  ;;  %v1214_v2 = vld [vmem:[%s1481_s6 + $0x18] sm:$0xff]  ;;  %v1155_v10 = vmov 0.0  }
   0x2   :  { %1025 = vmatpush.msk.msra.mxu0 %vm35_vm0, %v30_v0  ;;  %1027 = vmatpush.msk.msra.mxu1 %vm74_vm1, %v1209_v1  ;;  %v29_v3 = vld [vmem:[%s1482_s2] sm:$0x3]  ;;  %v1229_v5 = vld [vmem:[%s1481_s6 + $0x10] sm:$0xff]  ;;  %v1239_v7 = vld [vmem:[%s1481_s6 + $0x8] sm:$0xff]  ;;  %vm124_vm4 = vcmask 130048   ;;  %vm193_vm9 = vcmask 254976  }
   0x3   :  { %v1224_v4 = vld [vmem:[%s1480_s3] sm:$0xff]  ;;  %116 = vmatpush.msra.mxu2 %v1214_v2  ;;  %1026 = vmatmul.msk.f32.vlgmr.msra.gmra.mxu0 %vm31_vm2, %v29_v3  ;;  %v1279_v12 = vld [vmem:[%s1485_s5 + $0x8] sm:$0xff]  ;;  %vm100_vm10 = vcmask 261120  }
   0x4   :  { %v69_v6 = vld [vmem:[%s1483_s1] sm:$0x3]  ;;  %93 = vmatpush.msra.mxu1 %v1224_v4  ;;  %1033 = vmatpush.msk.msrb.mxu0 %vm74_vm1, %v1209_v1  ;;  %v1032_v9 = vld [vmem:[%s1483_s1 + $0x2] sm:$0x3]  ;;  %v1040_v11 = vld [vmem:[%s1483_s1 + $0x4] sm:$0x3] }
   0x5   :  { %117 = vmatpush.msra.mxu2 %v1229_v5  ;;  %1028 = vmatmul.msk.f32.vlgmr.msra.gmra.mxu1 %vm70_vm3, %v69_v6  ;;  %v1248_v8 = vld [vmem:[%s1481_s6] sm:$0xff]  ;;  %v1056_v56 = vld [vmem:[%s1483_s1 + $0x8] sm:$0x3] }
   0x6   :  { %217 = vmatpush.msrb.mxu0 %v1224_v4  ;;  %238 = vmatpush.msrb.mxu1 %v1214_v2  ;;  %v1285_v13 = vld [vmem:[%s1485_s5] sm:$0xff] }
   0x7   :  { %118 = vmatpush.msra.mxu2 %v1239_v7  ;;  %142 = vmatpush.msra.mxu3 %v1279_v12  ;;  %v68_v15 = vld [vmem:[%s1486_s0] sm:$0x3]  ;;  %v1031_v19 = vld [vmem:[%s1486_s0 + $0x2] sm:$0x3]  ;;  %v1048_v23 = vld [vmem:[%s1483_s1 + $0x6] sm:$0x3] }
   0x8   :  { %356 = vmatpush.msra.mxu0 %v1214_v2  ;;  %239 = vmatpush.msrb.mxu1 %v1229_v5  ;;  %v1324_v24 = vld [vmem:[%s1484_s7] ss:$0 sm:$0xff]  ;;  %s1157_s7 = smov 32   ;;  %v1039_v51 = vld [vmem:[%s1486_s0 + $0x4] sm:$0x3] }
   0x9   :  { %119 = vmatpush.msra.mxu2 %v1248_v8  ;;  %143 = vmatpush.msra.mxu3 %v1285_v13 }
   0xa   :  { %357 = vmatpush.msra.mxu0 %v1229_v5  ;;  %120 = vmatmul.f32.vlgmr.msra.gmra.mxu2 %v1155_v10 }
   0xb   :  { %240 = vmatpush.msrb.mxu1 %v1239_v7  ;;  %1034 = vmatmul.msk.f32.vlgmr.msrb.gmra.mxu0 %vm70_vm3, %v1032_v9 }
   0xc   :  { %1041 = vmatpush.msk.msrb.mxu2 %vm74_vm1, %v1209_v1  ;;  %358 = vmatpush.msra.mxu0 %v1239_v7 }
   0xd   :  { %241 = vmatpush.msrb.mxu1 %v1248_v8  ;;  %263 = vmatpush.msrb.mxu3 %v1279_v12 }
   0xe   :  { %335 = vmatpush.msrb.mxu2 %v1224_v4  ;;  %359 = vmatpush.msra.mxu0 %v1248_v8 }
   0xf   :  { %381 = vmatpush.msra.mxu1 %v1279_v12  ;;  %264 = vmatpush.msrb.mxu3 %v1285_v13 }
  0x10   :  { %474 = vmatpush.msra.mxu2 %v1214_v2  ;;  %499 = vmatpush.msrb.mxu0 %v1279_v12 }
  0x11   :  { %382 = vmatpush.msra.mxu1 %v1285_v13 }
  0x12   :  { %475 = vmatpush.msra.mxu2 %v1229_v5  ;;  %500 = vmatpush.msrb.mxu0 %v1285_v13 }
  0x13   :  { %1042 = vmatmul.msk.f32.vlgmr.msrb.gmra.mxu2 %vm70_vm3, %v1040_v11 }
  0x14   :  { %476 = vmatpush.msra.mxu2 %v1239_v7 }
  0x16   :  { %477 = vmatpush.msra.mxu2 %v1248_v8 }
  0x18   :  { %617 = vmatpush.msrb.mxu2 %v1279_v12 }
  0x1a   :  { %618 = vmatpush.msrb.mxu2 %v1285_v13 }
  0x80   :  { %v1296_v14 = vpop.f32.mrf.mxu0 }
  0x82   :  { %v95_v16 = vpop.f32.mrf.mxu1 }
  0x83   :  { %v98_v17 = vadd.f32 %v95_v16, %v68_v15 }
  0x85   :  { %v99_v18 = vadd.f32 %v98_v17, %v1296_v14 }
  0x87   :  { %1029 = vmatmul.msk.f32.vlgmr.msra.gmra.mxu3 %vm124_vm4, %v99_v18 }
  0x88   :  { %v219_v20 = vpop.f32.mrf.mxu0  ;;  %1049 = vmatpush.msk.msra.mxu3 %vm74_vm1, %v1209_v1 }
  0x89   :  { %v222_v21 = vadd.f32 %v1031_v19, %v219_v20 }
  0x8a   :  { %453 = vmatpush.msra.mxu3 %v1224_v4 }
  0x8b   :  { %v223_v22 = vadd.f32 %v222_v21, %v1296_v14 }
  0x8d   :  { %v121_v25 = vpop.f32.mrf.mxu2 }
  0x8f   :  { %1036 = vmatmul.msk.f32.vlgmr.msrb.gmra.mxu3 %vm124_vm4, %v223_v22 }
  0x90   :  { %592 = vmatpush.msrb.mxu3 %v1214_v2 }
  0x92   :  { %593 = vmatpush.msrb.mxu3 %v1229_v5 }
  0x94   :  { %594 = vmatpush.msrb.mxu3 %v1239_v7 }
  0x96   :  { %595 = vmatpush.msrb.mxu3 %v1248_v8  ;;  %v337_v52 = vpop.f32.mrf.mxu2 }
  0x97   :  { %1050 = vmatmul.msk.f32.vlgmr.msra.gmra.mxu3 %vm70_vm3, %v1048_v23  ;;  %v340_v54 = vadd.f32 %v1039_v51, %v337_v52 }
  0x98   :  { %735 = vmatpush.msra.mxu3 %v1279_v12 }
  0x99   :  { %v341_v55 = vadd.f32 %v340_v54, %v1296_v14 }
  0x9a   :  { %736 = vmatpush.msra.mxu3 %v1285_v13 }
 0x10a   :  { %v145_v26 = vpop.f32.mrf.mxu3 }
 0x10b   :  { %v146_v27 = vadd.f32 %v145_v26, %v121_v25 }
 0x10d   :  { %v151_v28 = vadd.f32 %v1324_v24, %v146_v27 }
 0x10f   :  { %1091 = vtanh.f32 %v151_v28  ;;  %v1030_v30 = vmul.f32 -1.442695, %v151_v28 }
 0x111   :  { %1093 = vpow2.f32 %v1030_v30 }
 0x112   :  { %v266_v57 = vpop.f32.mrf.mxu3 }
 0x115   :  { %v1092_v29 = vpop.eup %1091 }
 0x116   :  { %174 = vrot.lane.b32.xlu0 %v1092_v29, %s1156_s12  ;;  %v1047_v29 = vld [vmem:[%s1486_s0 + $0x6] sm:$0x3] }
 0x117   :  { %v1094_v31 = vpop.eup %1093 }
 0x118   :  { %v155_v32 = vadd.f32 1.0, %v1094_v31 }
 0x11a   :  { %1095 = vrcp.f32 %v155_v32  ;;  %v167_v38 = vand.u32 2147483648, %v155_v32  ;;  %vm161_vm6 = vweird.f32 %v155_v32  ;;  %v165_v39 = vand.u32 2147483647, %v155_v32  ;;  %v455_v30 = vpop.f32.mrf.mxu3 }
 0x11c   :  { %v168_v41 = vor.u32 1.1754944e-38, %v167_v38  ;;  %vm166_vm8 = vcmp.eq.f32.partialorder %v165_v39, 8.507059e+37 }
 0x120   :  { %v1096_v33 = vpop.eup %1095 }
 0x121   :  { %v157_v34 = vmul.f32 %v1096_v33, %v155_v32  ;;  %vm162_vm5 = vweird.f32 %v1096_v33  ;;  %v458_v32 = vadd.f32 %v1047_v29, %v455_v30 }
 0x122   :  { %vm163_vm7 = vmor %vm161_vm6, %vm162_vm5 }
 0x123   :  { %v158_v35 = vsub.f32 1.0, %v157_v34  ;;  %v1064_v34 = vld [vmem:[%s1483_s1 + $0xa] sm:$0x3] }
 0x125   :  { %v159_v36 = vmul.f32 %v1096_v33, %v158_v35 }
 0x127   :  { %v160_v37 = vadd.f32 %v1096_v33, %v159_v36 }
 0x129   :  { %v164_v40 = vsel %vm163_vm7, %v1096_v33, %v160_v37  ;;  %v459_v33 = vadd.f32 %v458_v32, %v1296_v14 }
 0x12a   :  { %v169_v43 = vsel %vm166_vm8, %v168_v41, %v164_v40 }
 0x12b   :  { %v172_v45 = vmul.f32 0.0, %v169_v43 }
 0x188   :  { %v175_v42 = vpop.permute.xlu0 %174 }
 0x189   :  { %v177_v44 = vmul.f32 %v175_v42, %v169_v43 }
 0x18b   :  { %179 = vrot.lane.b32.xlu0 %v177_v44, %s1157_s7 }
 0x1fd   :  { %v180_v46 = vpop.permute.xlu0 %179 }
 0x1fe   :  { %v182_v47 = vadd.f32 %v180_v46, %v172_v45 }
 0x200   :  { %1097 = vtanh.f32 %v182_v47 }
 0x206   :  { %v1098_v48 = vpop.eup %1097 }
 0x207   :  { %185 = vrot.lane.b32.xlu1 %v1098_v48, %s1156_s12 }
 0x279   :  { %v186_v49 = vpop.permute.xlu1 %185 }
 0x27a   :  { %v188_v50 = vmul.f32 %v186_v49, %v169_v43 }
 0x27c   :  { %190 = vrot.lane.b32.xlu1 %v188_v50, %s1157_s7 }
 0x2ee   :  { %v191_v53 = vpop.permute.xlu1 %190 }
 0x2ef   :  { %194 = vst.msk [vmem:[%s1487_s8] sm:$0x3] %vm193_vm9, %v191_v53  ;;  %1035 = vmatmul.msk.f32.vlgmr.msrb.gmra.mxu1 %vm100_vm10, %v191_v53 }
 0x2f0   :  { %1057 = vmatpush.msk.msrb.mxu1 %vm74_vm1, %v1209_v1 }
 0x2f2   :  { %571 = vmatpush.msrb.mxu1 %v1224_v4 }
 0x2f7   :  { %1044 = vmatmul.msk.f32.vlgmr.msra.gmra.mxu1 %vm124_vm4, %v341_v55 }
 0x2f8   :  { %710 = vmatpush.msra.mxu1 %v1214_v2 }
 0x2fa   :  { %711 = vmatpush.msra.mxu1 %v1229_v5 }
 0x2fc   :  { %712 = vmatpush.msra.mxu1 %v1239_v7 }
 0x2fe   :  { %713 = vmatpush.msra.mxu1 %v1248_v8 }
 0x2ff   :  { %1058 = vmatmul.msk.f32.vlgmr.msrb.gmra.mxu1 %vm70_vm3, %v1056_v56 }
 0x300   :  { %853 = vmatpush.msrb.mxu1 %v1279_v12 }
 0x302   :  { %854 = vmatpush.msrb.mxu1 %v1285_v13 }
 0x36c   :  { %v243_v58 = vpop.f32.mrf.mxu1 }
 0x36d   :  { %v267_v59 = vadd.f32 %v266_v57, %v243_v58 }
 0x36f   :  { %v269_v60 = vadd.f32 %v1324_v24, %v267_v59  ;;  %v1055_v59 = vld [vmem:[%s1486_s0 + $0x8] sm:$0x3] }
 0x371   :  { %1099 = vtanh.f32 %v269_v60  ;;  %v1037_v62 = vmul.f32 -1.442695, %v269_v60 }
 0x373   :  { %1101 = vpow2.f32 %v1037_v62 }
 0x374   :  { %v384_v35 = vpop.f32.mrf.mxu1 }
 0x377   :  { %v1100_v61 = vpop.eup %1099 }
 0x378   :  { %292 = vrot.lane.b32.xlu2 %v1100_v61, %s1156_s12 }
 0x379   :  { %v1102_v63 = vpop.eup %1101 }
 0x37a   :  { %v273_v0 = vadd.f32 1.0, %v1102_v63 }
 0x37c   :  { %1103 = vrcp.f32 %v273_v0  ;;  %v285_v15 = vand.u32 2147483648, %v273_v0  ;;  %vm279_vm12 = vweird.f32 %v273_v0  ;;  %v283_v16 = vand.u32 2147483647, %v273_v0  ;;  %v573_v60 = vpop.f32.mrf.mxu1 }
 0x37d   :  { %v576_v62 = vadd.f32 %v1055_v59, %v573_v60 }
 0x37e   :  { %v286_v18 = vor.u32 1.1754944e-38, %v285_v15  ;;  %vm284_vm14 = vcmp.eq.f32.partialorder %v283_v16, 8.507059e+37 }
 0x37f   :  { %v577_v63 = vadd.f32 %v576_v62, %v1296_v14 }
 0x382   :  { %v1104_v3 = vpop.eup %1103 }
 0x383   :  { %v275_v6 = vmul.f32 %v1104_v3, %v273_v0  ;;  %vm280_vm11 = vweird.f32 %v1104_v3  ;;  %v1072_v0 = vld [vmem:[%s1483_s1 + $0xc] sm:$0x3] }
 0x384   :  { %vm281_vm13 = vmor %vm279_vm12, %vm280_vm11 }
 0x385   :  { %v276_v9 = vsub.f32 1.0, %v275_v6 }
 0x387   :  { %v277_v10 = vmul.f32 %v1104_v3, %v276_v9 }
 0x389   :  { %v278_v11 = vadd.f32 %v1104_v3, %v277_v10 }
 0x38b   :  { %v282_v17 = vsel %vm281_vm13, %v1104_v3, %v278_v11 }
 0x38c   :  { %v287_v20 = vsel %vm284_vm14, %v286_v18, %v282_v17 }
 0x38d   :  { %v290_v22 = vmul.f32 %v287_v20, %v182_v47 }
 0x3d2   :  { %v293_v19 = vpop.permute.xlu2 %292 }
 0x3d3   :  { %v295_v21 = vmul.f32 %v293_v19, %v287_v20 }
 0x3d5   :  { %297 = vrot.lane.b32.xlu2 %v295_v21, %s1157_s7 }
 0x42f   :  { %v298_v23 = vpop.permute.xlu2 %297 }
 0x430   :  { %v300_v25 = vadd.f32 %v298_v23, %v290_v22 }
 0x432   :  { %1105 = vtanh.f32 %v300_v25 }
 0x438   :  { %v1106_v26 = vpop.eup %1105 }
 0x439   :  { %303 = vrot.lane.b32.xlu0 %v1106_v26, %s1156_s12 }
 0x4ab   :  { %v304_v27 = vpop.permute.xlu0 %303 }
 0x4ac   :  { %v306_v28 = vmul.f32 %v304_v27, %v287_v20 }
 0x4ae   :  { %308 = vrot.lane.b32.xlu1 %v306_v28, %s1157_s7 }
 0x520   :  { %v309_v31 = vpop.permute.xlu1 %308 }
 0x521   :  { %1038 = vst.msk [vmem:[%s1487_s8 + $0x2] sm:$0x3] %vm193_vm9, %v309_v31  ;;  %1043 = vmatmul.msk.f32.vlgmr.msra.gmra.mxu0 %vm100_vm10, %v309_v31 }
 0x522   :  { %1065 = vmatpush.msk.msra.mxu0 %vm74_vm1, %v1209_v1 }
 0x524   :  { %689 = vmatpush.msra.mxu0 %v1224_v4 }
 0x529   :  { %1052 = vmatmul.msk.f32.vlgmr.msrb.gmra.mxu0 %vm124_vm4, %v459_v33  ;;  %v1063_v33 = vld [vmem:[%s1486_s0 + $0xa] sm:$0x3] }
 0x52a   :  { %828 = vmatpush.msrb.mxu0 %v1214_v2 }
 0x52c   :  { %829 = vmatpush.msrb.mxu0 %v1229_v5 }
 0x52e   :  { %830 = vmatpush.msrb.mxu0 %v1239_v7 }
 0x530   :  { %831 = vmatpush.msrb.mxu0 %v1248_v8 }
 0x531   :  { %1066 = vmatmul.msk.f32.vlgmr.msra.gmra.mxu0 %vm70_vm3, %v1064_v34 }
 0x532   :  { %971 = vmatpush.msra.mxu0 %v1279_v12 }
 0x534   :  { %972 = vmatpush.msra.mxu0 %v1285_v13 }
 0x59e   :  { %v361_v36 = vpop.f32.mrf.mxu0 }
 0x59f   :  { %v385_v37 = vadd.f32 %v384_v35, %v361_v36 }
 0x5a1   :  { %v387_v38 = vadd.f32 %v1324_v24, %v385_v37 }
 0x5a3   :  { %1107 = vtanh.f32 %v387_v38  ;;  %v1045_v40 = vmul.f32 -1.442695, %v387_v38  ;;  %v1080_v38 = vld [vmem:[%s1483_s1 + $0xe] sm:$0x3] }
 0x5a5   :  { %1109 = vpow2.f32 %v1045_v40 }
 0x5a6   :  { %v502_v3 = vpop.f32.mrf.mxu0 }
 0x5a9   :  { %v1108_v39 = vpop.eup %1107 }
 0x5aa   :  { %410 = vrot.lane.b32.xlu2 %v1108_v39, %s1156_s12 }
 0x5ab   :  { %v1110_v41 = vpop.eup %1109 }
 0x5ac   :  { %v391_v42 = vadd.f32 1.0, %v1110_v41 }
 0x5ae   :  { %1111 = vrcp.f32 %v391_v42  ;;  %v403_v13 = vand.u32 2147483648, %v391_v42  ;;  %vm397_vm0 = vweird.f32 %v391_v42  ;;  %v401_v47 = vand.u32 2147483647, %v391_v42  ;;  %v691_v34 = vpop.f32.mrf.mxu0 }
 0x5af   :  { %v694_v36 = vadd.f32 %v1063_v33, %v691_v34  ;;  %v1079_v34 = vld [vmem:[%s1486_s0 + $0xe] sm:$0x3] }
 0x5b0   :  { %v404_v49 = vor.u32 1.1754944e-38, %v403_v13  ;;  %vm402_vm5 = vcmp.eq.f32.partialorder %v401_v47, 8.507059e+37 }
 0x5b1   :  { %v695_v37 = vadd.f32 %v694_v36, %v1296_v14 }
 0x5b4   :  { %v1112_v43 = vpop.eup %1111 }
 0x5b5   :  { %v393_v44 = vmul.f32 %v1112_v43, %v391_v42  ;;  %vm398_vm15 = vweird.f32 %v1112_v43 }
 0x5b6   :  { %vm399_vm2 = vmor %vm397_vm0, %vm398_vm15 }
 0x5b7   :  { %v394_v45 = vsub.f32 1.0, %v393_v44 }
 0x5b9   :  { %v395_v12 = vmul.f32 %v1112_v43, %v394_v45 }
 0x5bb   :  { %v396_v46 = vadd.f32 %v1112_v43, %v395_v12 }
 0x5bd   :  { %v400_v48 = vsel %vm399_vm2, %v1112_v43, %v396_v46 }
 0x5be   :  { %v405_v51 = vsel %vm402_vm5, %v404_v49, %v400_v48 }
 0x5bf   :  { %v408_v53 = vmul.f32 %v405_v51, %v300_v25 }
 0x604   :  { %v411_v50 = vpop.permute.xlu2 %410 }
 0x605   :  { %v413_v52 = vmul.f32 %v411_v50, %v405_v51 }
 0x607   :  { %415 = vrot.lane.b32.xlu0 %v413_v52, %s1157_s7 }
 0x679   :  { %v416_v54 = vpop.permute.xlu0 %415 }
 0x67a   :  { %v418_v55 = vadd.f32 %v416_v54, %v408_v53 }
 0x67c   :  { %1113 = vtanh.f32 %v418_v55 }
 0x682   :  { %v1114_v56 = vpop.eup %1113 }
 0x683   :  { %421 = vrot.lane.b32.xlu1 %v1114_v56, %s1156_s12 }
 0x6f5   :  { %v422_v57 = vpop.permute.xlu1 %421 }
 0x6f6   :  { %v424_v58 = vmul.f32 %v422_v57, %v405_v51 }
 0x6f8   :  { %426 = vrot.lane.b32.xlu2 %v424_v58, %s1157_s7 }
 0x752   :  { %v427_v61 = vpop.permute.xlu2 %426 }
 0x753   :  { %1046 = vst.msk [vmem:[%s1487_s8 + $0x4] sm:$0x3] %vm193_vm9, %v427_v61  ;;  %1051 = vmatmul.msk.f32.vlgmr.msra.gmra.mxu2 %vm100_vm10, %v427_v61  ;;  %v1071_v61 = vld [vmem:[%s1486_s0 + $0xc] sm:$0x3] }
 0x754   :  { %1073 = vmatpush.msk.msra.mxu2 %vm74_vm1, %v1209_v1 }
 0x756   :  { %807 = vmatpush.msra.mxu2 %v1224_v4 }
 0x75b   :  { %1060 = vmatmul.msk.f32.vlgmr.msrb.gmra.mxu2 %vm124_vm4, %v577_v63 }
 0x75c   :  { %946 = vmatpush.msrb.mxu2 %v1214_v2 }
 0x75e   :  { %947 = vmatpush.msrb.mxu2 %v1229_v5 }
 0x760   :  { %948 = vmatpush.msrb.mxu2 %v1239_v7 }
 0x762   :  { %949 = vmatpush.msrb.mxu2 %v1248_v8 }
 0x763   :  { %1074 = vmatmul.msk.f32.vlgmr.msra.gmra.mxu2 %vm70_vm3, %v1072_v0 }
 0x7d6   :  { %v479_v6 = vpop.f32.mrf.mxu2 }
 0x7d7   :  { %v503_v9 = vadd.f32 %v502_v3, %v479_v6 }
 0x7d9   :  { %v505_v10 = vadd.f32 %v1324_v24, %v503_v9 }
 0x7db   :  { %1115 = vtanh.f32 %v505_v10  ;;  %v1053_v2 = vmul.f32 -1.442695, %v505_v10 }
 0x7dd   :  { %1117 = vpow2.f32 %v1053_v2 }
 0x7de   :  { %v620_v39 = vpop.f32.mrf.mxu2 }
 0x7e1   :  { %v1116_v11 = vpop.eup %1115 }
 0x7e2   :  { %528 = vrot.lane.b32.xlu0 %v1116_v11, %s1156_s12 }
 0x7e3   :  { %v1118_v5 = vpop.eup %1117 }
 0x7e4   :  { %v509_v15 = vadd.f32 1.0, %v1118_v5 }
 0x7e6   :  { %1119 = vrcp.f32 %v509_v15  ;;  %v521_v19 = vand.u32 2147483648, %v509_v15  ;;  %vm515_vm7 = vweird.f32 %v509_v15  ;;  %v519_v20 = vand.u32 2147483647, %v509_v15  ;;  %v809_v62 = vpop.f32.mrf.mxu2 }
 0x7e7   :  { %v812_v0 = vadd.f32 %v1071_v61, %v809_v62 }
 0x7e8   :  { %v522_v22 = vor.u32 1.1754944e-38, %v521_v19  ;;  %vm520_vm11 = vcmp.eq.f32.partialorder %v519_v20, 8.507059e+37 }
 0x7e9   :  { %v813_v3 = vadd.f32 %v812_v0, %v1296_v14 }
 0x7ec   :  { %v1120_v16 = vpop.eup %1119 }
 0x7ed   :  { %v511_v7 = vmul.f32 %v1120_v16, %v509_v15  ;;  %vm516_vm6 = vweird.f32 %v1120_v16 }
 0x7ee   :  { %vm517_vm8 = vmor %vm515_vm7, %vm516_vm6 }
 0x7ef   :  { %v512_v17 = vsub.f32 1.0, %v511_v7 }
 0x7f1   :  { %v513_v8 = vmul.f32 %v1120_v16, %v512_v17 }
 0x7f3   :  { %v514_v18 = vadd.f32 %v1120_v16, %v513_v8 }
 0x7f5   :  { %v518_v21 = vsel %vm517_vm8, %v1120_v16, %v514_v18 }
 0x7f6   :  { %v523_v25 = vsel %vm520_vm11, %v522_v22, %v518_v21 }
 0x7f7   :  { %v526_v27 = vmul.f32 %v523_v25, %v418_v55 }
 0x854   :  { %v529_v23 = vpop.permute.xlu0 %528 }
 0x855   :  { %v531_v26 = vmul.f32 %v529_v23, %v523_v25 }
 0x857   :  { %533 = vrot.lane.b32.xlu1 %v531_v26, %s1157_s7 }
 0x8c9   :  { %v534_v28 = vpop.permute.xlu1 %533 }
 0x8ca   :  { %v536_v29 = vadd.f32 %v534_v28, %v526_v27 }
 0x8cc   :  { %1121 = vtanh.f32 %v536_v29 }
 0x8d2   :  { %v1122_v30 = vpop.eup %1121 }
 0x8d3   :  { %539 = vrot.lane.b32.xlu2 %v1122_v30, %s1156_s12 }
 0x92d   :  { %v540_v31 = vpop.permute.xlu2 %539 }
 0x92e   :  { %v542_v32 = vmul.f32 %v540_v31, %v523_v25 }
 0x930   :  { %544 = vrot.lane.b32.xlu0 %v542_v32, %s1157_s7 }
 0x9a2   :  { %v545_v35 = vpop.permute.xlu0 %544 }
 0x9a3   :  { %1054 = vst.msk [vmem:[%s1487_s8 + $0x6] sm:$0x3] %vm193_vm9, %v545_v35  ;;  %1059 = vmatmul.msk.f32.vlgmr.msrb.gmra.mxu3 %vm100_vm10, %v545_v35 }
 0x9a4   :  { %1081 = vmatpush.msk.msrb.mxu3 %vm74_vm1, %v1209_v1 }
 0x9a6   :  { %925 = vmatpush.msrb.mxu3 %v1224_v4 }
 0x9ab   :  { %1068 = vmatmul.msk.f32.vlgmr.msra.gmra.mxu3 %vm124_vm4, %v695_v37 }
 0x9b3   :  { %1082 = vmatmul.msk.f32.vlgmr.msrb.gmra.mxu3 %vm70_vm3, %v1080_v38 }
 0xa26   :  { %v597_v40 = vpop.f32.mrf.mxu3 }
 0xa27   :  { %v621_v41 = vadd.f32 %v620_v39, %v597_v40 }
 0xa29   :  { %v623_v42 = vadd.f32 %v1324_v24, %v621_v41 }
 0xa2b   :  { %1123 = vtanh.f32 %v623_v42  ;;  %v1061_v4 = vmul.f32 -1.442695, %v623_v42 }
 0xa2d   :  { %1125 = vpow2.f32 %v1061_v4 }
 0xa2e   :  { %v738_v6 = vpop.f32.mrf.mxu3 }
 0xa31   :  { %v1124_v1 = vpop.eup %1123 }
 0xa32   :  { %646 = vrot.lane.b32.xlu1 %v1124_v1, %s1156_s12 }
 0xa33   :  { %v1126_v43 = vpop.eup %1125 }
 0xa34   :  { %v627_v44 = vadd.f32 1.0, %v1126_v43 }
 0xa36   :  { %1127 = vrcp.f32 %v627_v44  ;;  %v639_v48 = vand.u32 2147483648, %v627_v44  ;;  %vm633_vm3 = vweird.f32 %v627_v44  ;;  %v637_v49 = vand.u32 2147483647, %v627_v44  ;;  %v927_v35 = vpop.f32.mrf.mxu3 }
 0xa37   :  { %v930_v37 = vadd.f32 %v1079_v34, %v927_v35 }
 0xa38   :  { %v640_v51 = vor.u32 1.1754944e-38, %v639_v48  ;;  %vm638_vm13 = vcmp.eq.f32.partialorder %v637_v49, 8.507059e+37 }
 0xa39   :  { %v931_v38 = vadd.f32 %v930_v37, %v1296_v14 }
 0xa3c   :  { %v1128_v45 = vpop.eup %1127 }
 0xa3d   :  { %v629_v12 = vmul.f32 %v1128_v45, %v627_v44  ;;  %vm634_vm1 = vweird.f32 %v1128_v45 }
 0xa3e   :  { %vm635_vm12 = vmor %vm633_vm3, %vm634_vm1 }
 0xa3f   :  { %v630_v46 = vsub.f32 1.0, %v629_v12 }
 0xa41   :  { %v631_v13 = vmul.f32 %v1128_v45, %v630_v46 }
 0xa43   :  { %v632_v47 = vadd.f32 %v1128_v45, %v631_v13 }
 0xa45   :  { %v636_v50 = vsel %vm635_vm12, %v1128_v45, %v632_v47 }
 0xa46   :  { %v641_v53 = vsel %vm638_vm13, %v640_v51, %v636_v50 }
 0xa47   :  { %v644_v55 = vmul.f32 %v641_v53, %v536_v29 }
 0xaa4   :  { %v647_v52 = vpop.permute.xlu1 %646 }
 0xaa5   :  { %v649_v54 = vmul.f32 %v647_v52, %v641_v53 }
 0xaa7   :  { %651 = vrot.lane.b32.xlu2 %v649_v54, %s1157_s7 }
 0xb01   :  { %v652_v56 = vpop.permute.xlu2 %651 }
 0xb02   :  { %v654_v57 = vadd.f32 %v652_v56, %v644_v55 }
 0xb04   :  { %1129 = vtanh.f32 %v654_v57 }
 0xb0a   :  { %v1130_v58 = vpop.eup %1129 }
 0xb0b   :  { %657 = vrot.lane.b32.xlu0 %v1130_v58, %s1156_s12 }
 0xb7d   :  { %v658_v59 = vpop.permute.xlu0 %657 }
 0xb7e   :  { %v660_v60 = vmul.f32 %v658_v59, %v641_v53 }
 0xb80   :  { %662 = vrot.lane.b32.xlu1 %v660_v60, %s1157_s7 }
 0xbf2   :  { %v663_v63 = vpop.permute.xlu1 %662 }
 0xbf3   :  { %1062 = vst.msk [vmem:[%s1487_s8 + $0x8] sm:$0x3] %vm193_vm9, %v663_v63  ;;  %1067 = vmatmul.msk.f32.vlgmr.msra.gmra.mxu1 %vm100_vm10, %v663_v63 }
 0xbfb   :  { %1076 = vmatmul.msk.f32.vlgmr.msrb.gmra.mxu1 %vm124_vm4, %v813_v3 }
 0xc70   :  { %v715_v9 = vpop.f32.mrf.mxu1 }
 0xc71   :  { %v739_v10 = vadd.f32 %v738_v6, %v715_v9 }
 0xc73   :  { %v741_v11 = vadd.f32 %v1324_v24, %v739_v10 }
 0xc75   :  { %1131 = vtanh.f32 %v741_v11  ;;  %v1069_v5 = vmul.f32 -1.442695, %v741_v11 }
 0xc77   :  { %1133 = vpow2.f32 %v1069_v5 }
 0xc78   :  { %v856_v39 = vpop.f32.mrf.mxu1 }
 0xc7b   :  { %v1132_v2 = vpop.eup %1131 }
 0xc7c   :  { %764 = vrot.lane.b32.xlu2 %v1132_v2, %s1156_s12 }
 0xc7d   :  { %v1134_v15 = vpop.eup %1133 }
 0xc7e   :  { %v745_v16 = vadd.f32 1.0, %v1134_v15 }
 0xc80   :  { %1135 = vrcp.f32 %v745_v16  ;;  %v757_v20 = vand.u32 2147483648, %v745_v16  ;;  %vm751_vm15 = vweird.f32 %v745_v16  ;;  %v755_v21 = vand.u32 2147483647, %v745_v16 }
 0xc82   :  { %v758_v23 = vor.u32 1.1754944e-38, %v757_v20  ;;  %vm756_vm2 = vcmp.eq.f32.partialorder %v755_v21, 8.507059e+37 }
 0xc86   :  { %v1136_v7 = vpop.eup %1135 }
 0xc87   :  { %v747_v17 = vmul.f32 %v1136_v7, %v745_v16  ;;  %vm752_vm14 = vweird.f32 %v1136_v7 }
 0xc88   :  { %vm753_vm0 = vmor %vm751_vm15, %vm752_vm14 }
 0xc89   :  { %v748_v8 = vsub.f32 1.0, %v747_v17 }
 0xc8b   :  { %v749_v18 = vmul.f32 %v1136_v7, %v748_v8 }
 0xc8d   :  { %v750_v19 = vadd.f32 %v1136_v7, %v749_v18 }
 0xc8f   :  { %v754_v22 = vsel %vm753_vm0, %v1136_v7, %v750_v19 }
 0xc90   :  { %v759_v26 = vsel %vm756_vm2, %v758_v23, %v754_v22 }
 0xc91   :  { %v762_v28 = vmul.f32 %v759_v26, %v654_v57 }
 0xcd6   :  { %v765_v25 = vpop.permute.xlu2 %764 }
 0xcd7   :  { %v767_v27 = vmul.f32 %v765_v25, %v759_v26 }
 0xcd9   :  { %769 = vrot.lane.b32.xlu0 %v767_v27, %s1157_s7 }
 0xd4b   :  { %v770_v29 = vpop.permute.xlu0 %769 }
 0xd4c   :  { %v772_v30 = vadd.f32 %v770_v29, %v762_v28 }
 0xd4e   :  { %1137 = vtanh.f32 %v772_v30 }
 0xd54   :  { %v1138_v31 = vpop.eup %1137 }
 0xd55   :  { %775 = vrot.lane.b32.xlu1 %v1138_v31, %s1156_s12 }
 0xdc7   :  { %v776_v32 = vpop.permute.xlu1 %775 }
 0xdc8   :  { %v778_v33 = vmul.f32 %v776_v32, %v759_v26 }
 0xdca   :  { %780 = vrot.lane.b32.xlu2 %v778_v33, %s1157_s7 }
 0xe24   :  { %v781_v36 = vpop.permute.xlu2 %780 }
 0xe25   :  { %1070 = vst.msk [vmem:[%s1487_s8 + $0xa] sm:$0x3] %vm193_vm9, %v781_v36  ;;  %1075 = vmatmul.msk.f32.vlgmr.msrb.gmra.mxu0 %vm100_vm10, %v781_v36 }
 0xe2d   :  { %1084 = vmatmul.msk.f32.vlgmr.msra.gmra.mxu0 %vm124_vm4, %v931_v38 }
 0xea2   :  { %v833_v40 = vpop.f32.mrf.mxu0 }
 0xea3   :  { %v857_v41 = vadd.f32 %v856_v39, %v833_v40 }
 0xea5   :  { %v859_v42 = vadd.f32 %v1324_v24, %v857_v41 }
 0xea7   :  { %1139 = vtanh.f32 %v859_v42  ;;  %v1077_v4 = vmul.f32 -1.442695, %v859_v42 }
 0xea9   :  { %1141 = vpow2.f32 %v1077_v4 }
 0xeaa   :  { %v974_v61 = vpop.f32.mrf.mxu0 }
 0xead   :  { %v1140_v1 = vpop.eup %1139 }
 0xeae   :  { %882 = vrot.lane.b32.xlu0 %v1140_v1, %s1156_s12 }
 0xeaf   :  { %v1142_v43 = vpop.eup %1141 }
 0xeb0   :  { %v863_v44 = vadd.f32 1.0, %v1142_v43 }
 0xeb2   :  { %1143 = vrcp.f32 %v863_v44  ;;  %v875_v47 = vand.u32 2147483648, %v863_v44  ;;  %vm869_vm5 = vweird.f32 %v863_v44  ;;  %v873_v48 = vand.u32 2147483647, %v863_v44 }
 0xeb4   :  { %v876_v50 = vor.u32 1.1754944e-38, %v875_v47  ;;  %vm874_vm7 = vcmp.eq.f32.partialorder %v873_v48, 8.507059e+37 }
 0xeb8   :  { %v1144_v45 = vpop.eup %1143 }
 0xeb9   :  { %v865_v12 = vmul.f32 %v1144_v45, %v863_v44  ;;  %vm870_vm4 = vweird.f32 %v1144_v45 }
 0xeba   :  { %vm871_vm6 = vmor %vm869_vm5, %vm870_vm4 }
 0xebb   :  { %v866_v46 = vsub.f32 1.0, %v865_v12 }
 0xebd   :  { %v867_v14 = vmul.f32 %v1144_v45, %v866_v46 }
 0xebf   :  { %v868_v13 = vadd.f32 %v1144_v45, %v867_v14 }
 0xec1   :  { %v872_v49 = vsel %vm871_vm6, %v1144_v45, %v868_v13 }
 0xec2   :  { %v877_v52 = vsel %vm874_vm7, %v876_v50, %v872_v49 }
 0xec3   :  { %v880_v54 = vmul.f32 %v877_v52, %v772_v30 }
 0xf20   :  { %v883_v51 = vpop.permute.xlu0 %882 }
 0xf21   :  { %v885_v53 = vmul.f32 %v883_v51, %v877_v52 }
 0xf23   :  { %887 = vrot.lane.b32.xlu1 %v885_v53, %s1157_s7 }
 0xf95   :  { %v888_v55 = vpop.permute.xlu1 %887 }
 0xf96   :  { %v890_v56 = vadd.f32 %v888_v55, %v880_v54 }
 0xf98   :  { %1145 = vtanh.f32 %v890_v56 }
 0xf9e   :  { %v1146_v57 = vpop.eup %1145 }
 0xf9f   :  { %893 = vrot.lane.b32.xlu2 %v1146_v57, %s1156_s12 }
 0xff9   :  { %v894_v58 = vpop.permute.xlu2 %893 }
 0xffa   :  { %v896_v59 = vmul.f32 %v894_v58, %v877_v52 }
 0xffc   :  { %898 = vrot.lane.b32.xlu0 %v896_v59, %s1157_s7 }
0x106e   :  { %v899_v60 = vpop.permute.xlu0 %898 }
0x106f   :  { %1078 = vst.msk [vmem:[%s1487_s8 + $0xc] sm:$0x3] %vm193_vm9, %v899_v60  ;;  %1083 = vmatmul.msk.f32.vlgmr.msrb.gmra.mxu2 %vm100_vm10, %v899_v60 }
0x10f2   :  { %v951_v62 = vpop.f32.mrf.mxu2 }
0x10f3   :  { %v975_v63 = vadd.f32 %v974_v61, %v951_v62 }
0x10f5   :  { %v977_v0 = vadd.f32 %v1324_v24, %v975_v63 }
0x10f7   :  { %1147 = vtanh.f32 %v977_v0  ;;  %v1085_v6 = vmul.f32 -1.442695, %v977_v0 }
0x10f9   :  { %1149 = vpow2.f32 %v1085_v6 }
0x10fd   :  { %v1148_v3 = vpop.eup %1147 }
0x10fe   :  { %1000 = vrot.lane.b32.xlu1 %v1148_v3, %s1156_s12 }
0x10ff   :  { %v1150_v9 = vpop.eup %1149 }
0x1100   :  { %v981_v10 = vadd.f32 1.0, %v1150_v9 }
0x1102   :  { %1151 = vrcp.f32 %v981_v10  ;;  %v993_v7 = vand.u32 2147483648, %v981_v10  ;;  %vm987_vm8 = vweird.f32 %v981_v10  ;;  %v991_v17 = vand.u32 2147483647, %v981_v10 }
0x1104   :  { %v994_v8 = vor.u32 1.1754944e-38, %v993_v7  ;;  %vm992_vm1 = vcmp.eq.f32.partialorder %v991_v17, 8.507059e+37 }
0x1108   :  { %v1152_v11 = vpop.eup %1151 }
0x1109   :  { %v983_v2 = vmul.f32 %v1152_v11, %v981_v10  ;;  %vm988_vm10 = vweird.f32 %v1152_v11 }
0x110a   :  { %vm989_vm11 = vmor %vm987_vm8, %vm988_vm10 }
0x110b   :  { %v984_v5 = vsub.f32 1.0, %v983_v2 }
0x110d   :  { %v985_v15 = vmul.f32 %v1152_v11, %v984_v5 }
0x110f   :  { %v986_v16 = vadd.f32 %v1152_v11, %v985_v15 }
0x1111   :  { %v990_v24 = vsel %vm989_vm11, %v1152_v11, %v986_v16 }
0x1112   :  { %v995_v19 = vsel %vm992_vm1, %v994_v8, %v990_v24 }
0x1113   :  { %v998_v21 = vmul.f32 %v995_v19, %v890_v56 }
0x1170   :  { %v1001_v18 = vpop.permute.xlu1 %1000 }
0x1171   :  { %v1003_v20 = vmul.f32 %v1001_v18, %v995_v19 }
0x1173   :  { %1005 = vrot.lane.b32.xlu2 %v1003_v20, %s1157_s7 }
0x11cd   :  { %v1006_v22 = vpop.permute.xlu2 %1005 }
0x11ce   :  { %v1008_v23 = vadd.f32 %v1006_v22, %v998_v21 }
0x11d0   :  { %1153 = vtanh.f32 %v1008_v23 }
0x11d6   :  { %v1154_v25 = vpop.eup %1153 }
0x11d7   :  { %1011 = vrot.lane.b32.xlu0 %v1154_v25, %s1156_s12 }
0x1249   :  { %v1012_v26 = vpop.permute.xlu0 %1011 }
0x124a   :  { %v1014_v27 = vmul.f32 %v1012_v26, %v995_v19 }
0x124c   :  { %1016 = vrot.lane.b32.xlu1 %v1014_v27, %s1157_s7 }
0x12be   :  { %v1017_v28 = vpop.permute.xlu1 %1016 }
0x12bf   :  { %1086 = vst.msk [vmem:[%s1487_s8 + $0xe] sm:$0x3] %vm193_vm9, %v1017_v28 }

</bundles_post_ra>
